<compile_context>
chip_gen: v6e
topology: v6e:2x2x1
jax: 0.10.0
libtpu: 0.0.40
codegen_flags: <defaults>
</compile_context>

<pallas_src>
import functools

import jax
import jax.numpy as jnp
from jax import lax
from jax.experimental import pallas as pl
from jax.experimental.pallas import tpu as pltpu

_ROWS = 8  # batch rows per mean-kernel grid step (f32 sublane tile)


def _round_up(x: int, m: int) -> int:
    return (x + m - 1) // m * m


def _mean_embedding_kernel(idx_ref, emb_hbm, mean_ref, staging, copy_sem):
    """Gather C embedding rows per batch row via HBM row-DMA and mean them.

    idx_ref : (b_pad, C) int32  SMEM (scalar prefetch) context indices
    emb_hbm : (V, d_pad) f32    HBM (pl.ANY) embedding table — never fully DMA'd
    mean_ref: (_ROWS, d_pad)    VMEM output block (mean context embedding)
    staging : (_ROWS*C, d_pad)  VMEM gather staging buffer
    copy_sem: (1,)              DMA semaphore shared by the identical row copies
    """
    rows, d = mean_ref.shape
    c = idx_ref.shape[1]
    base = pl.program_id(0) * rows

    # Issue every row-gather DMA up front so they are all in flight at once.
    for ci in range(c):
        for r in range(rows):
            slot = ci * rows + r           # context-word-major layout
            wid = idx_ref[base + r, ci]    # SMEM scalar read (dynamic row id)
            pltpu.make_async_copy(
                emb_hbm.at[pl.ds(wid, 1), :],
                staging.at[pl.ds(slot, 1), :],
                copy_sem.at[0],
            ).start()

    # All copies have identical shape, so N waits on the shared sem are exact.
    for slot in range(rows * c):
        pltpu.make_async_copy(
            emb_hbm.at[pl.ds(0, 1), :],
            staging.at[pl.ds(slot, 1), :],
            copy_sem.at[0],
        ).wait()

    # Contiguous (rows, d) slabs per context word -> vectorized accumulation.
    acc = staging[pl.ds(0, rows), :]
    for ci in range(1, c):
        acc = acc + staging[pl.ds(ci * rows, rows), :]
    mean_ref[...] = acc * (1.0 / c)


def _linear_kernel(mean_ref, w_ref, bias_ref, out_ref):
    """One vocab tile of logits = mean @ W_tile.T + b_tile (MXU)."""
    m = mean_ref[...].astype(w_ref.dtype)  # bf16 MXU path when W is bf16
    acc = lax.dot_general(
        m, w_ref[...],
        dimension_numbers=(((1,), (1,)), ((), ())),   # contract D on both sides
        preferred_element_type=jnp.float32)
    out_ref[...] = (acc + bias_ref[...]).astype(out_ref.dtype)


def prepare_cbow_params(emb_table, w, b, *, tile_v: int = 1024,
                        param_dtype=jnp.bfloat16):
    """One-time pad/cast of the parameters (hoisted out of the forward)."""
    V, D = emb_table.shape
    d_pad = _round_up(D, 128)
    tv = min(tile_v, _round_up(V, 128))
    v_pad = _round_up(V, tv)

    emb_p = (jnp.zeros((V, d_pad), jnp.float32)
             .at[:, :D].set(emb_table.astype(jnp.float32)))
    # Native nn.Linear layout (V, D): row tiles, no transpose ever.
    w_p = (jnp.zeros((v_pad, d_pad), param_dtype)
           .at[:V, :D].set(w.astype(param_dtype)))
    bias_p = (jnp.zeros((1, v_pad), jnp.float32)
              .at[:, :V].set(b.astype(jnp.float32)[None, :]))
    return emb_p, w_p, bias_p


@functools.partial(jax.jit, static_argnames=("vocab_size", "tile_v"))
def cbow_forward(idx, emb_p, w_p, bias_p, *, vocab_size: int, tile_v: int = 1024):
    """CBOW forward. idx: (B, C) int context indices. Returns (B, V) f32 logits."""
    B, C = idx.shape
    _, d_pad = emb_p.shape
    v_pad, _ = w_p.shape
    b_pad = _round_up(max(B, _ROWS), _ROWS)
    tv = min(tile_v, _round_up(vocab_size, 128))
    assert v_pad % tv == 0, "prepare_cbow_params and cbow_forward tile_v must match"

    idx_p = jnp.zeros((b_pad, C), jnp.int32).at[:B, :].set(idx.astype(jnp.int32))

    # --- Stage 1: mean context embedding (DMA row gather, table stays in HBM) ---
    mean = pl.pallas_call(
        _mean_embedding_kernel,
        out_shape=jax.ShapeDtypeStruct((b_pad, d_pad), jnp.float32),
        grid_spec=pltpu.PrefetchScalarGridSpec(
            num_scalar_prefetch=1,                       # idx lands in SMEM
            grid=(b_pad // _ROWS,),
            in_specs=[pl.BlockSpec(memory_space=pl.ANY)],  # embedding table in HBM
            out_specs=pl.BlockSpec((_ROWS, d_pad), lambda i, idx_s: (i, 0)),
            scratch_shapes=[
                pltpu.VMEM((_ROWS * C, d_pad), jnp.float32),
                pltpu.SemaphoreType.DMA((1,)),
            ]),
        compiler_params=pltpu.CompilerParams(dimension_semantics=("arbitrary",)),
    )(idx_p, emb_p)

    # --- Stage 2: vocab-tiled Linear (mean @ W.T + b), megacore-parallel --------
    w_itemsize = jnp.dtype(w_p.dtype).itemsize
    cost = pl.CostEstimate(
        flops=2 * b_pad * d_pad * v_pad,
        transcendentals=0,
        bytes_accessed=(v_pad * d_pad * w_itemsize + b_pad * d_pad * 4
                        + v_pad * 4 + b_pad * v_pad * 4))

    out_padded = pl.pallas_call(
        _linear_kernel,
        out_shape=jax.ShapeDtypeStruct((b_pad, v_pad), jnp.float32),
        grid=(v_pad // tv,),
        in_specs=[
            pl.BlockSpec((b_pad, d_pad), lambda j: (0, 0)),   # small constant block
            pl.BlockSpec((tv, d_pad), lambda j: (j, 0)),      # streamed W row tile
            pl.BlockSpec((1, tv), lambda j: (0, j)),          # streamed bias tile
        ],
        out_specs=pl.BlockSpec((b_pad, tv), lambda j: (0, j)),
        compiler_params=pltpu.CompilerParams(dimension_semantics=("parallel",)),
        cost_estimate=cost,
    )(mean, w_p, bias_p)

    return out_padded[:B, :vocab_size]


if __name__ == "__main__":
    # Small, deterministic synthetic setup (no checkpoint loading).
    vocab_size = 64
    embedding_dim = 32
    batch = 2
    context_size = 8

    key = jax.random.PRNGKey(0)
    k_emb, k_w, k_b, k_idx = jax.random.split(key, 4)

    # nn.Embedding default init: N(0, 1)
    emb_table = jax.random.normal(k_emb, (vocab_size, embedding_dim),
                                  dtype=jnp.float32)
    # nn.Linear default init: U(-1/sqrt(fan_in), 1/sqrt(fan_in))
    bound = 1.0 / (embedding_dim ** 0.5)
    w = jax.random.uniform(k_w, (vocab_size, embedding_dim),
                           minval=-bound, maxval=bound, dtype=jnp.float32)
    b = jax.random.uniform(k_b, (vocab_size,),
                           minval=-bound, maxval=bound, dtype=jnp.float32)
    idx = jax.random.randint(k_idx, (batch, context_size), 0, vocab_size,
                             dtype=jnp.int32)

    # One-time pad/cast, hoisted out of the jitted forward.
    emb_p, w_p, bias_p = prepare_cbow_params(emb_table, w, b,
                                             tile_v=1024,
                                             param_dtype=jnp.bfloat16)

    out = cbow_forward(idx, emb_p, w_p, bias_p,
                       vocab_size=vocab_size, tile_v=1024)
    out = jax.block_until_ready(out)

    # Pure-JAX f32 reference (bf16 weight stream -> loose-but-tight tolerance).
    ref = jnp.mean(emb_table[idx], axis=1) @ w.T + b
    assert out.shape == (batch, vocab_size)
    assert jnp.allclose(out, ref, atol=1e-2, rtol=1e-2), \
        float(jnp.max(jnp.abs(out - ref)))

    print("KERNEL_OK")
</pallas_src>

<mosaic_0001>
module attributes {stable_mosaic.version = 11 : i64} {
  func.func @_linear_kernel(%arg0: i32, %arg1: memref<8x128xf32, #tpu.memory_space<vmem>>, %arg2: memref<128x128xbf16, #tpu.memory_space<vmem>>, %arg3: memref<1x128xf32, #tpu.memory_space<vmem>>, %arg4: memref<8x128xf32, #tpu.memory_space<vmem>>) attributes {dimension_semantics = [#tpu.dimension_semantics<parallel>], iteration_bounds = array<i64: 1>, scalar_prefetch = 0 : i64, scratch_operands = 0 : i64, tpu.core_type = #tpu.core_type<tc>, window_params = [{pipeline_mode = #tpu.pipeline_mode<synchronous>, transform_indices = @transform_0, window_bounds = array<i64: 8, 128>}, {transform_indices = @transform_1, window_bounds = array<i64: 128, 128>}, {transform_indices = @transform_2, window_bounds = array<i64: 1, 128>}, {transform_indices = @transform_3, window_bounds = array<i64: 8, 128>}]} {
    %c0 = arith.constant 0 : index
    %c0_0 = arith.constant 0 : index
    %0 = vector.load %arg1[%c0, %c0_0] : memref<8x128xf32, #tpu.memory_space<vmem>>, vector<8x128xf32>
    %1 = arith.truncf %0 : vector<8x128xf32> to vector<8x128xbf16>
    %c0_1 = arith.constant 0 : index
    %c0_2 = arith.constant 0 : index
    %2 = vector.load %arg2[%c0_1, %c0_2] : memref<128x128xbf16, #tpu.memory_space<vmem>>, vector<128x128xbf16>
    %cst = arith.constant dense<0.000000e+00> : vector<8x128xf32>
    %3 = tpu.matmul %1, %2, %cst {dimension_numbers = #tpu.dot_dimension_numbers<[1], [1], [0], [0], [0, 0, 1, 0], [], []>} : vector<8x128xbf16>, vector<128x128xbf16>, vector<8x128xf32> -> vector<8x128xf32>
    %c0_3 = arith.constant 0 : index
    %c0_4 = arith.constant 0 : index
    %4 = vector.load %arg3[%c0_3, %c0_4] : memref<1x128xf32, #tpu.memory_space<vmem>>, vector<1x128xf32>
    %5 = vector.broadcast %4 : vector<1x128xf32> to vector<8x128xf32>
    %6 = arith.addf %3, %5 : vector<8x128xf32>
    %c0_5 = arith.constant 0 : index
    %c0_6 = arith.constant 0 : index
    %7 = vector.load %arg4[%c0_5, %c0_6] : memref<8x128xf32, #tpu.memory_space<vmem>>, vector<8x128xf32>
    tpu.vector_store %arg4[%c0_5, %c0_6], %6 {strides = array<i32>} : memref<8x128xf32, #tpu.memory_space<vmem>>, vector<8x128xf32>,
    return
  }
  func.func @transform_0(%arg0: i32) -> (i32, i32) {
    %c0_i32 = arith.constant 0 : i32
    %c0_i32_0 = arith.constant 0 : i32
    %c0_i32_1 = arith.constant 0 : i32
    return %c0_i32, %c0_i32_0 : i32, i32
  }
  func.func @transform_1(%arg0: i32) -> (i32, i32) {
    %c0_i32 = arith.constant 0 : i32
    %c0_i32_0 = arith.constant 0 : i32
    return %arg0, %c0_i32 : i32, i32
  }
  func.func @transform_2(%arg0: i32) -> (i32, i32) {
    %c0_i32 = arith.constant 0 : i32
    %c0_i32_0 = arith.constant 0 : i32
    return %c0_i32, %arg0 : i32, i32
  }
  func.func @transform_3(%arg0: i32) -> (i32, i32) {
    %c0_i32 = arith.constant 0 : i32
    %c0_i32_0 = arith.constant 0 : i32
    return %c0_i32, %arg0 : i32, i32
  }
}

module attributes {stable_mosaic.version = 11 : i64} {
  func.func @_mean_embedding_kernel(%arg0: i32, %arg1: memref<8x8xi32, #tpu.memory_space<smem>>, %arg2: memref<64x128xf32, #tpu.memory_space<any>>, %arg3: memref<8x128xf32, #tpu.memory_space<vmem>>, %arg4: memref<64x128xf32, #tpu.memory_space<vmem>>, %arg5: memref<1x!tpu.dma_semaphore, #tpu.memory_space<semaphore_mem>>) attributes {dimension_semantics = [#tpu.dimension_semantics<arbitrary>], iteration_bounds = array<i64: 1>, scalar_prefetch = 1 : i64, scratch_operands = 2 : i64, tpu.core_type = #tpu.core_type<tc>, window_params = [{}, {transform_indices = @transform_1, window_bounds = array<i64: 8, 128>}]} {
    %c8_i32 = arith.constant 8 : i32
    %0 = arith.muli %arg0, %c8_i32 : i32
    %c0_i32 = arith.constant 0 : i32
    %1 = arith.addi %0, %c0_i32 : i32
    %2 = arith.index_cast %1 : i32 to index
    %c0 = arith.constant 0 : index
    %3 = memref.load %arg1[%2, %c0] : memref<8x8xi32, #tpu.memory_space<smem>>
    %c0_i32_0 = arith.constant 0 : i32
    %c0_i32_1 = arith.constant 0 : i32
    %4 = tpu.memref_slice %arg2[%3, %c0_i32_1] : memref<64x128xf32, #tpu.memory_space<any>> -> memref<1x128xf32, #tpu.memory_space<any>>
    %c0_i32_2 = arith.constant 0 : i32
    %c0_i32_3 = arith.constant 0 : i32
    %5 = tpu.memref_slice %arg4[%c0_i32_2, %c0_i32_3] : memref<64x128xf32, #tpu.memory_space<vmem>> -> memref<1x128xf32, #tpu.memory_space<vmem>>
    %6 = tpu.memref_slice %arg5[%c0_i32_0] : memref<1x!tpu.dma_semaphore, #tpu.memory_space<semaphore_mem>> -> memref<1x!tpu.dma_semaphore, #tpu.memory_space<semaphore_mem>>
    %7 = tpu.memref_squeeze %6 : memref<1x!tpu.dma_semaphore, #tpu.memory_space<semaphore_mem>> -> memref<!tpu.dma_semaphore, #tpu.memory_space<semaphore_mem>>
    tpu.enqueue_dma source(%4 : memref<1x128xf32, #tpu.memory_space<any>>) target(%5 : memref<1x128xf32, #tpu.memory_space<vmem>>) target_semaphore(%7 : memref<!tpu.dma_semaphore, #tpu.memory_space<semaphore_mem>>)
    %c1_i32 = arith.constant 1 : i32
    %8 = arith.addi %0, %c1_i32 : i32
    %9 = arith.index_cast %8 : i32 to index
    %c0_4 = arith.constant 0 : index
    %10 = memref.load %arg1[%9, %c0_4] : memref<8x8xi32, #tpu.memory_space<smem>>
    %c0_i32_5 = arith.constant 0 : i32
    %c0_i32_6 = arith.constant 0 : i32
    %11 = tpu.memref_slice %arg2[%10, %c0_i32_6] : memref<64x128xf32, #tpu.memory_space<any>> -> memref<1x128xf32, #tpu.memory_space<any>>
    %c1_i32_7 = arith.constant 1 : i32
    %c0_i32_8 = arith.constant 0 : i32
    %12 = tpu.memref_slice %arg4[%c1_i32_7, %c0_i32_8] : memref<64x128xf32, #tpu.memory_space<vmem>> -> memref<1x128xf32, #tpu.memory_space<vmem>>
    %13 = tpu.memref_slice %arg5[%c0_i32_5] : memref<1x!tpu.dma_semaphore, #tpu.memory_space<semaphore_mem>> -> memref<1x!tpu.dma_semaphore, #tpu.memory_space<semaphore_mem>>
    %14 = tpu.memref_squeeze %13 : memref<1x!tpu.dma_semaphore, #tpu.memory_space<semaphore_mem>> -> memref<!tpu.dma_semaphore, #tpu.memory_space<semaphore_mem>>
    tpu.enqueue_dma source(%11 : memref<1x128xf32, #tpu.memory_space<any>>) target(%12 : memref<1x128xf32, #tpu.memory_space<vmem>>) target_semaphore(%14 : memref<!tpu.dma_semaphore, #tpu.memory_space<semaphore_mem>>)
    %c2_i32 = arith.constant 2 : i32
    %15 = arith.addi %0, %c2_i32 : i32
    %16 = arith.index_cast %15 : i32 to index
    %c0_9 = arith.constant 0 : index
    %17 = memref.load %arg1[%16, %c0_9] : memref<8x8xi32, #tpu.memory_space<smem>>
    %c0_i32_10 = arith.constant 0 : i32
    %c0_i32_11 = arith.constant 0 : i32
    %18 = tpu.memref_slice %arg2[%17, %c0_i32_11] : memref<64x128xf32, #tpu.memory_space<any>> -> memref<1x128xf32, #tpu.memory_space<any>>
    %c2_i32_12 = arith.constant 2 : i32
    %c0_i32_13 = arith.constant 0 : i32
    %19 = tpu.memref_slice %arg4[%c2_i32_12, %c0_i32_13] : memref<64x128xf32, #tpu.memory_space<vmem>> -> memref<1x128xf32, #tpu.memory_space<vmem>>
    %20 = tpu.memref_slice %arg5[%c0_i32_10] : memref<1x!tpu.dma_semaphore, #tpu.memory_space<semaphore_mem>> -> memref<1x!tpu.dma_semaphore, #tpu.memory_space<semaphore_mem>>
    %21 = tpu.memref_squeeze %20 : memref<1x!tpu.dma_semaphore, #tpu.memory_space<semaphore_mem>> -> memref<!tpu.dma_semaphore, #tpu.memory_space<semaphore_mem>>
    tpu.enqueue_dma source(%18 : memref<1x128xf32, #tpu.memory_space<any>>) target(%19 : memref<1x128xf32, #tpu.memory_space<vmem>>) target_semaphore(%21 : memref<!tpu.dma_semaphore, #tpu.memory_space<semaphore_mem>>)
    %c3_i32 = arith.constant 3 : i32
    %22 = arith.addi %0, %c3_i32 : i32
    %23 = arith.index_cast %22 : i32 to index
    %c0_14 = arith.constant 0 : index
    %24 = memref.load %arg1[%23, %c0_14] : memref<8x8xi32, #tpu.memory_space<smem>>
    %c0_i32_15 = arith.constant 0 : i32
    %c0_i32_16 = arith.constant 0 : i32
    %25 = tpu.memref_slice %arg2[%24, %c0_i32_16] : memref<64x128xf32, #tpu.memory_space<any>> -> memref<1x128xf32, #tpu.memory_space<any>>
    %c3_i32_17 = arith.constant 3 : i32
    %c0_i32_18 = arith.constant 0 : i32
    %26 = tpu.memref_slice %arg4[%c3_i32_17, %c0_i32_18] : memref<64x128xf32, #tpu.memory_space<vmem>> -> memref<1x128xf32, #tpu.memory_space<vmem>>
    %27 = tpu.memref_slice %arg5[%c0_i32_15] : memref<1x!tpu.dma_semaphore, #tpu.memory_space<semaphore_mem>> -> memref<1x!tpu.dma_semaphore, #tpu.memory_space<semaphore_mem>>
    %28 = tpu.memref_squeeze %27 : memref<1x!tpu.dma_semaphore, #tpu.memory_space<semaphore_mem>> -> memref<!tpu.dma_semaphore, #tpu.memory_space<semaphore_mem>>
    tpu.enqueue_dma source(%25 : memref<1x128xf32, #tpu.memory_space<any>>) target(%26 : memref<1x128xf32, #tpu.memory_space<vmem>>) target_semaphore(%28 : memref<!tpu.dma_semaphore, #tpu.memory_space<semaphore_mem>>)
    %c4_i32 = arith.constant 4 : i32
    %29 = arith.addi %0, %c4_i32 : i32
    %30 = arith.index_cast %29 : i32 to index
    %c0_19 = arith.constant 0 : index
    %31 = memref.load %arg1[%30, %c0_19] : memref<8x8xi32, #tpu.memory_space<smem>>
    %c0_i32_20 = arith.constant 0 : i32
    %c0_i32_21 = arith.constant 0 : i32
    %32 = tpu.memref_slice %arg2[%31, %c0_i32_21] : memref<64x128xf32, #tpu.memory_space<any>> -> memref<1x128xf32, #tpu.memory_space<any>>
    %c4_i32_22 = arith.constant 4 : i32
    %c0_i32_23 = arith.constant 0 : i32
    %33 = tpu.memref_slice %arg4[%c4_i32_22, %c0_i32_23] : memref<64x128xf32, #tpu.memory_space<vmem>> -> memref<1x128xf32, #tpu.memory_space<vmem>>
    %34 = tpu.memref_slice %arg5[%c0_i32_20] : memref<1x!tpu.dma_semaphore, #tpu.memory_space<semaphore_mem>> -> memref<1x!tpu.dma_semaphore, #tpu.memory_space<semaphore_mem>>
    %35 = tpu.memref_squeeze %34 : memref<1x!tpu.dma_semaphore, #tpu.memory_space<semaphore_mem>> -> memref<!tpu.dma_semaphore, #tpu.memory_space<semaphore_mem>>
    tpu.enqueue_dma source(%32 : memref<1x128xf32, #tpu.memory_space<any>>) target(%33 : memref<1x128xf32, #tpu.memory_space<vmem>>) target_semaphore(%35 : memref<!tpu.dma_semaphore, #tpu.memory_space<semaphore_mem>>)
    %c5_i32 = arith.constant 5 : i32
    %36 = arith.addi %0, %c5_i32 : i32
    %37 = arith.index_cast %36 : i32 to index
    %c0_24 = arith.constant 0 : index
    %38 = memref.load %arg1[%37, %c0_24] : memref<8x8xi32, #tpu.memory_space<smem>>
    %c0_i32_25 = arith.constant 0 : i32
    %c0_i32_26 = arith.constant 0 : i32
    %39 = tpu.memref_slice %arg2[%38, %c0_i32_26] : memref<64x128xf32, #tpu.memory_space<any>> -> memref<1x128xf32, #tpu.memory_space<any>>
    %c5_i32_27 = arith.constant 5 : i32
    %c0_i32_28 = arith.constant 0 : i32
    %40 = tpu.memref_slice %arg4[%c5_i32_27, %c0_i32_28] : memref<64x128xf32, #tpu.memory_space<vmem>> -> memref<1x128xf32, #tpu.memory_space<vmem>>
    %41 = tpu.memref_slice %arg5[%c0_i32_25] : memref<1x!tpu.dma_semaphore, #tpu.memory_space<semaphore_mem>> -> memref<1x!tpu.dma_semaphore, #tpu.memory_space<semaphore_mem>>
    %42 = tpu.memref_squeeze %41 : memref<1x!tpu.dma_semaphore, #tpu.memory_space<semaphore_mem>> -> memref<!tpu.dma_semaphore, #tpu.memory_space<semaphore_mem>>
    tpu.enqueue_dma source(%39 : memref<1x128xf32, #tpu.memory_space<any>>) target(%40 : memref<1x128xf32, #tpu.memory_space<vmem>>) target_semaphore(%42 : memref<!tpu.dma_semaphore, #tpu.memory_space<semaphore_mem>>)
    %c6_i32 = arith.constant 6 : i32
    %43 = arith.addi %0, %c6_i32 : i32
    %44 = arith.index_cast %43 : i32 to index
    %c0_29 = arith.constant 0 : index
    %45 = memref.load %arg1[%44, %c0_29] : memref<8x8xi32, #tpu.memory_space<smem>>
    %c0_i32_30 = arith.constant 0 : i32
    %c0_i32_31 = arith.constant 0 : i32
    %46 = tpu.memref_slice %arg2[%45, %c0_i32_31] : memref<64x128xf32, #tpu.memory_space<any>> -> memref<1x128xf32, #tpu.memory_space<any>>
    %c6_i32_32 = arith.constant 6 : i32
    %c0_i32_33 = arith.constant 0 : i32
    %47 = tpu.memref_slice %arg4[%c6_i32_32, %c0_i32_33] : memref<64x128xf32, #tpu.memory_space<vmem>> -> memref<1x128xf32, #tpu.memory_space<vmem>>
    %48 = tpu.memref_slice %arg5[%c0_i32_30] : memref<1x!tpu.dma_semaphore, #tpu.memory_space<semaphore_mem>> -> memref<1x!tpu.dma_semaphore, #tpu.memory_space<semaphore_mem>>
    %49 = tpu.memref_squeeze %48 : memref<1x!tpu.dma_semaphore, #tpu.memory_space<semaphore_mem>> -> memref<!tpu.dma_semaphore, #tpu.memory_space<semaphore_mem>>
    tpu.enqueue_dma source(%46 : memref<1x128xf32, #tpu.memory_space<any>>) target(%47 : memref<1x128xf32, #tpu.memory_space<vmem>>) target_semaphore(%49 : memref<!tpu.dma_semaphore, #tpu.memory_space<semaphore_mem>>)
    %c7_i32 = arith.constant 7 : i32
    %50 = arith.addi %0, %c7_i32 : i32
    %51 = arith.index_cast %50 : i32 to index
    %c0_34 = arith.constant 0 : index
    %52 = memref.load %arg1[%51, %c0_34] : memref<8x8xi32, #tpu.memory_space<smem>>
    %c0_i32_35 = arith.constant 0 : i32
    %c0_i32_36 = arith.constant 0 : i32
    %53 = tpu.memref_slice %arg2[%52, %c0_i32_36] : memref<64x128xf32, #tpu.memory_space<any>> -> memref<1x128xf32, #tpu.memory_space<any>>
    %c7_i32_37 = arith.constant 7 : i32
    %c0_i32_38 = arith.constant 0 : i32
    %54 = tpu.memref_slice %arg4[%c7_i32_37, %c0_i32_38] : memref<64x128xf32, #tpu.memory_space<vmem>> -> memref<1x128xf32, #tpu.memory_space<vmem>>
    %55 = tpu.memref_slice %arg5[%c0_i32_35] : memref<1x!tpu.dma_semaphore, #tpu.memory_space<semaphore_mem>> -> memref<1x!tpu.dma_semaphore, #tpu.memory_space<semaphore_mem>>
    %56 = tpu.memref_squeeze %55 : memref<1x!tpu.dma_semaphore, #tpu.memory_space<semaphore_mem>> -> memref<!tpu.dma_semaphore, #tpu.memory_space<semaphore_mem>>
    tpu.enqueue_dma source(%53 : memref<1x128xf32, #tpu.memory_space<any>>) target(%54 : memref<1x128xf32, #tpu.memory_space<vmem>>) target_semaphore(%56 : memref<!tpu.dma_semaphore, #tpu.memory_space<semaphore_mem>>)
    %c0_i32_39 = arith.constant 0 : i32
    %57 = arith.addi %0, %c0_i32_39 : i32
    %58 = arith.index_cast %57 : i32 to index
    %c1 = arith.constant 1 : index
    %59 = memref.load %arg1[%58, %c1] : memref<8x8xi32, #tpu.memory_space<smem>>
    %c0_i32_40 = arith.constant 0 : i32
    %c0_i32_41 = arith.constant 0 : i32
    %60 = tpu.memref_slice %arg2[%59, %c0_i32_41] : memref<64x128xf32, #tpu.memory_space<any>> -> memref<1x128xf32, #tpu.memory_space<any>>
    %c8_i32_42 = arith.constant 8 : i32
    %c0_i32_43 = arith.constant 0 : i32
    %61 = tpu.memref_slice %arg4[%c8_i32_42, %c0_i32_43] : memref<64x128xf32, #tpu.memory_space<vmem>> -> memref<1x128xf32, #tpu.memory_space<vmem>>
    %62 = tpu.memref_slice %arg5[%c0_i32_40] : memref<1x!tpu.dma_semaphore, #tpu.memory_space<semaphore_mem>> -> memref<1x!tpu.dma_semaphore, #tpu.memory_space<semaphore_mem>>
    %63 = tpu.memref_squeeze %62 : memref<1x!tpu.dma_semaphore, #tpu.memory_space<semaphore_mem>> -> memref<!tpu.dma_semaphore, #tpu.memory_space<semaphore_mem>>
    tpu.enqueue_dma source(%60 : memref<1x128xf32, #tpu.memory_space<any>>) target(%61 : memref<1x128xf32, #tpu.memory_space<vmem>>) target_semaphore(%63 : memref<!tpu.dma_semaphore, #tpu.memory_space<semaphore_mem>>)
    %c1_i32_44 = arith.constant 1 : i32
    %64 = arith.addi %0, %c1_i32_44 : i32
    %65 = arith.index_cast %64 : i32 to index
    %c1_45 = arith.constant 1 : index
    %66 = memref.load %arg1[%65, %c1_45] : memref<8x8xi32, #tpu.memory_space<smem>>
    %c0_i32_46 = arith.constant 0 : i32
    %c0_i32_47 = arith.constant 0 : i32
    %67 = tpu.memref_slice %arg2[%66, %c0_i32_47] : memref<64x128xf32, #tpu.memory_space<any>> -> memref<1x128xf32, #tpu.memory_space<any>>
    %c9_i32 = arith.constant 9 : i32
    %c0_i32_48 = arith.constant 0 : i32
    %68 = tpu.memref_slice %arg4[%c9_i32, %c0_i32_48] : memref<64x128xf32, #tpu.memory_space<vmem>> -> memref<1x128xf32, #tpu.memory_space<vmem>>
    %69 = tpu.memref_slice %arg5[%c0_i32_46] : memref<1x!tpu.dma_semaphore, #tpu.memory_space<semaphore_mem>> -> memref<1x!tpu.dma_semaphore, #tpu.memory_space<semaphore_mem>>
    %70 = tpu.memref_squeeze %69 : memref<1x!tpu.dma_semaphore, #tpu.memory_space<semaphore_mem>> -> memref<!tpu.dma_semaphore, #tpu.memory_space<semaphore_mem>>
    tpu.enqueue_dma source(%67 : memref<1x128xf32, #tpu.memory_space<any>>) target(%68 : memref<1x128xf32, #tpu.memory_space<vmem>>) target_semaphore(%70 : memref<!tpu.dma_semaphore, #tpu.memory_space<semaphore_mem>>)
    %c2_i32_49 = arith.constant 2 : i32
    %71 = arith.addi %0, %c2_i32_49 : i32
    %72 = arith.index_cast %71 : i32 to index
    %c1_50 = arith.constant 1 : index
    %73 = memref.load %arg1[%72, %c1_50] : memref<8x8xi32, #tpu.memory_space<smem>>
    %c0_i32_51 = arith.constant 0 : i32
    %c0_i32_52 = arith.constant 0 : i32
    %74 = tpu.memref_slice %arg2[%73, %c0_i32_52] : memref<64x128xf32, #tpu.memory_space<any>> -> memref<1x128xf32, #tpu.memory_space<any>>
    %c10_i32 = arith.constant 10 : i32
    %c0_i32_53 = arith.constant 0 : i32
    %75 = tpu.memref_slice %arg4[%c10_i32, %c0_i32_53] : memref<64x128xf32, #tpu.memory_space<vmem>> -> memref<1x128xf32, #tpu.memory_space<vmem>>
    %76 = tpu.memref_slice %arg5[%c0_i32_51] : memref<1x!tpu.dma_semaphore, #tpu.memory_space<semaphore_mem>> -> memref<1x!tpu.dma_semaphore, #tpu.memory_space<semaphore_mem>>
    %77 = tpu.memref_squeeze %76 : memref<1x!tpu.dma_semaphore, #tpu.memory_space<semaphore_mem>> -> memref<!tpu.dma_semaphore, #tpu.memory_space<semaphore_mem>>
    tpu.enqueue_dma source(%74 : memref<1x128xf32, #tpu.memory_space<any>>) target(%75 : memref<1x128xf32, #tpu.memory_space<vmem>>) target_semaphore(%77 : memref<!tpu.dma_semaphore, #tpu.memory_space<semaphore_mem>>)
    %c3_i32_54 = arith.constant 3 : i32
    %78 = arith.addi %0, %c3_i32_54 : i32
    %79 = arith.index_cast %78 : i32 to index
    %c1_55 = arith.constant 1 : index
    %80 = memref.load %arg1[%79, %c1_55] : memref<8x8xi32, #tpu.memory_space<smem>>
    %c0_i32_56 = arith.constant 0 : i32
    %c0_i32_57 = arith.constant 0 : i32
    %81 = tpu.memref_slice %arg2[%80, %c0_i32_57] : memref<64x128xf32, #tpu.memory_space<any>> -> memref<1x128xf32, #tpu.memory_space<any>>
    %c11_i32 = arith.constant 11 : i32
    %c0_i32_58 = arith.constant 0 : i32
    %82 = tpu.memref_slice %arg4[%c11_i32, %c0_i32_58] : memref<64x128xf32, #tpu.memory_space<vmem>> -> memref<1x128xf32, #tpu.memory_space<vmem>>
    %83 = tpu.memref_slice %arg5[%c0_i32_56] : memref<1x!tpu.dma_semaphore, #tpu.memory_space<semaphore_mem>> -> memref<1x!tpu.dma_semaphore, #tpu.memory_space<semaphore_mem>>
    %84 = tpu.memref_squeeze %83 : memref<1x!tpu.dma_semaphore, #tpu.memory_space<semaphore_mem>> -> memref<!tpu.dma_semaphore, #tpu.memory_space<semaphore_mem>>
    tpu.enqueue_dma source(%81 : memref<1x128xf32, #tpu.memory_space<any>>) target(%82 : memref<1x128xf32, #tpu.memory_space<vmem>>) target_semaphore(%84 : memref<!tpu.dma_semaphore, #tpu.memory_space<semaphore_mem>>)
    %c4_i32_59 = arith.constant 4 : i32
    %85 = arith.addi %0, %c4_i32_59 : i32
    %86 = arith.index_cast %85 : i32 to index
    %c1_60 = arith.constant 1 : index
    %87 = memref.load %arg1[%86, %c1_60] : memref<8x8xi32, #tpu.memory_space<smem>>
    %c0_i32_61 = arith.constant 0 : i32
    %c0_i32_62 = arith.constant 0 : i32
    %88 = tpu.memref_slice %arg2[%87, %c0_i32_62] : memref<64x128xf32, #tpu.memory_space<any>> -> memref<1x128xf32, #tpu.memory_space<any>>
    %c12_i32 = arith.constant 12 : i32
    %c0_i32_63 = arith.constant 0 : i32
    %89 = tpu.memref_slice %arg4[%c12_i32, %c0_i32_63] : memref<64x128xf32, #tpu.memory_space<vmem>> -> memref<1x128xf32, #tpu.memory_space<vmem>>
    %90 = tpu.memref_slice %arg5[%c0_i32_61] : memref<1x!tpu.dma_semaphore, #tpu.memory_space<semaphore_mem>> -> memref<1x!tpu.dma_semaphore, #tpu.memory_space<semaphore_mem>>
    %91 = tpu.memref_squeeze %90 : memref<1x!tpu.dma_semaphore, #tpu.memory_space<semaphore_mem>> -> memref<!tpu.dma_semaphore, #tpu.memory_space<semaphore_mem>>
    tpu.enqueue_dma source(%88 : memref<1x128xf32, #tpu.memory_space<any>>) target(%89 : memref<1x128xf32, #tpu.memory_space<vmem>>) target_semaphore(%91 : memref<!tpu.dma_semaphore, #tpu.memory_space<semaphore_mem>>)
    %c5_i32_64 = arith.constant 5 : i32
    %92 = arith.addi %0, %c5_i32_64 : i32
    %93 = arith.index_cast %92 : i32 to index
    %c1_65 = arith.constant 1 : index
    %94 = memref.load %arg1[%93, %c1_65] : memref<8x8xi32, #tpu.memory_space<smem>>
    %c0_i32_66 = arith.constant 0 : i32
    %c0_i32_67 = arith.constant 0 : i32
    %95 = tpu.memref_slice %arg2[%94, %c0_i32_67] : memref<64x128xf32, #tpu.memory_space<any>> -> memref<1x128xf32, #tpu.memory_space<any>>
    %c13_i32 = arith.constant 13 : i32
    %c0_i32_68 = arith.constant 0 : i32
    %96 = tpu.memref_slice %arg4[%c13_i32, %c0_i32_68] : memref<64x128xf32, #tpu.memory_space<vmem>> -> memref<1x128xf32, #tpu.memory_space<vmem>>
    %97 = tpu.memref_slice %arg5[%c0_i32_66] : memref<1x!tpu.dma_semaphore, #tpu.memory_space<semaphore_mem>> -> memref<1x!tpu.dma_semaphore, #tpu.memory_space<semaphore_mem>>
    %98 = tpu.memref_squeeze %97 : memref<1x!tpu.dma_semaphore, #tpu.memory_space<semaphore_mem>> -> memref<!tpu.dma_semaphore, #tpu.memory_space<semaphore_mem>>
    tpu.enqueue_dma source(%95 : memref<1x128xf32, #tpu.memory_space<any>>) target(%96 : memref<1x128xf32, #tpu.memory_space<vmem>>) target_semaphore(%98 : memref<!tpu.dma_semaphore, #tpu.memory_space<semaphore_mem>>)
    %c6_i32_69 = arith.constant 6 : i32
    %99 = arith.addi %0, %c6_i32_69 : i32
    %100 = arith.index_cast %99 : i32 to index
    %c1_70 = arith.constant 1 : index
    %101 = memref.load %arg1[%100, %c1_70] : memref<8x8xi32, #tpu.memory_space<smem>>
    %c0_i32_71 = arith.constant 0 : i32
    %c0_i32_72 = arith.constant 0 : i32
    %102 = tpu.memref_slice %arg2[%101, %c0_i32_72] : memref<64x128xf32, #tpu.memory_space<any>> -> memref<1x128xf32, #tpu.memory_space<any>>
    %c14_i32 = arith.constant 14 : i32
    %c0_i32_73 = arith.constant 0 : i32
    %103 = tpu.memref_slice %arg4[%c14_i32, %c0_i32_73] : memref<64x128xf32, #tpu.memory_space<vmem>> -> memref<1x128xf32, #tpu.memory_space<vmem>>
    %104 = tpu.memref_slice %arg5[%c0_i32_71] : memref<1x!tpu.dma_semaphore, #tpu.memory_space<semaphore_mem>> -> memref<1x!tpu.dma_semaphore, #tpu.memory_space<semaphore_mem>>
    %105 = tpu.memref_squeeze %104 : memref<1x!tpu.dma_semaphore, #tpu.memory_space<semaphore_mem>> -> memref<!tpu.dma_semaphore, #tpu.memory_space<semaphore_mem>>
    tpu.enqueue_dma source(%102 : memref<1x128xf32, #tpu.memory_space<any>>) target(%103 : memref<1x128xf32, #tpu.memory_space<vmem>>) target_semaphore(%105 : memref<!tpu.dma_semaphore, #tpu.memory_space<semaphore_mem>>)
    %c7_i32_74 = arith.constant 7 : i32
    %106 = arith.addi %0, %c7_i32_74 : i32
    %107 = arith.index_cast %106 : i32 to index
    %c1_75 = arith.constant 1 : index
    %108 = memref.load %arg1[%107, %c1_75] : memref<8x8xi32, #tpu.memory_space<smem>>
    %c0_i32_76 = arith.constant 0 : i32
    %c0_i32_77 = arith.constant 0 : i32
    %109 = tpu.memref_slice %arg2[%108, %c0_i32_77] : memref<64x128xf32, #tpu.memory_space<any>> -> memref<1x128xf32, #tpu.memory_space<any>>
    %c15_i32 = arith.constant 15 : i32
    %c0_i32_78 = arith.constant 0 : i32
    %110 = tpu.memref_slice %arg4[%c15_i32, %c0_i32_78] : memref<64x128xf32, #tpu.memory_space<vmem>> -> memref<1x128xf32, #tpu.memory_space<vmem>>
    %111 = tpu.memref_slice %arg5[%c0_i32_76] : memref<1x!tpu.dma_semaphore, #tpu.memory_space<semaphore_mem>> -> memref<1x!tpu.dma_semaphore, #tpu.memory_space<semaphore_mem>>
    %112 = tpu.memref_squeeze %111 : memref<1x!tpu.dma_semaphore, #tpu.memory_space<semaphore_mem>> -> memref<!tpu.dma_semaphore, #tpu.memory_space<semaphore_mem>>
    tpu.enqueue_dma source(%109 : memref<1x128xf32, #tpu.memory_space<any>>) target(%110 : memref<1x128xf32, #tpu.memory_space<vmem>>) target_semaphore(%112 : memref<!tpu.dma_semaphore, #tpu.memory_space<semaphore_mem>>)
    %c0_i32_79 = arith.constant 0 : i32
    %113 = arith.addi %0, %c0_i32_79 : i32
    %114 = arith.index_cast %113 : i32 to index
    %c2 = arith.constant 2 : index
    %115 = memref.load %arg1[%114, %c2] : memref<8x8xi32, #tpu.memory_space<smem>>
    %c0_i32_80 = arith.constant 0 : i32
    %c0_i32_81 = arith.constant 0 : i32
    %116 = tpu.memref_slice %arg2[%115, %c0_i32_81] : memref<64x128xf32, #tpu.memory_space<any>> -> memref<1x128xf32, #tpu.memory_space<any>>
    %c16_i32 = arith.constant 16 : i32
    %c0_i32_82 = arith.constant 0 : i32
    %117 = tpu.memref_slice %arg4[%c16_i32, %c0_i32_82] : memref<64x128xf32, #tpu.memory_space<vmem>> -> memref<1x128xf32, #tpu.memory_space<vmem>>
    %118 = tpu.memref_slice %arg5[%c0_i32_80] : memref<1x!tpu.dma_semaphore, #tpu.memory_space<semaphore_mem>> -> memref<1x!tpu.dma_semaphore, #tpu.memory_space<semaphore_mem>>
    %119 = tpu.memref_squeeze %118 : memref<1x!tpu.dma_semaphore, #tpu.memory_space<semaphore_mem>> -> memref<!tpu.dma_semaphore, #tpu.memory_space<semaphore_mem>>
    tpu.enqueue_dma source(%116 : memref<1x128xf32, #tpu.memory_space<any>>) target(%117 : memref<1x128xf32, #tpu.memory_space<vmem>>) target_semaphore(%119 : memref<!tpu.dma_semaphore, #tpu.memory_space<semaphore_mem>>)
    %c1_i32_83 = arith.constant 1 : i32
    %120 = arith.addi %0, %c1_i32_83 : i32
    %121 = arith.index_cast %120 : i32 to index
    %c2_84 = arith.constant 2 : index
    %122 = memref.load %arg1[%121, %c2_84] : memref<8x8xi32, #tpu.memory_space<smem>>
    %c0_i32_85 = arith.constant 0 : i32
    %c0_i32_86 = arith.constant 0 : i32
    %123 = tpu.memref_slice %arg2[%122, %c0_i32_86] : memref<64x128xf32, #tpu.memory_space<any>> -> memref<1x128xf32, #tpu.memory_space<any>>
    %c17_i32 = arith.constant 17 : i32
    %c0_i32_87 = arith.constant 0 : i32
    %124 = tpu.memref_slice %arg4[%c17_i32, %c0_i32_87] : memref<64x128xf32, #tpu.memory_space<vmem>> -> memref<1x128xf32, #tpu.memory_space<vmem>>
    %125 = tpu.memref_slice %arg5[%c0_i32_85] : memref<1x!tpu.dma_semaphore, #tpu.memory_space<semaphore_mem>> -> memref<1x!tpu.dma_semaphore, #tpu.memory_space<semaphore_mem>>
    %126 = tpu.memref_squeeze %125 : memref<1x!tpu.dma_semaphore, #tpu.memory_space<semaphore_mem>> -> memref<!tpu.dma_semaphore, #tpu.memory_space<semaphore_mem>>
    tpu.enqueue_dma source(%123 : memref<1x128xf32, #tpu.memory_space<any>>) target(%124 : memref<1x128xf32, #tpu.memory_space<vmem>>) target_semaphore(%126 : memref<!tpu.dma_semaphore, #tpu.memory_space<semaphore_mem>>)
    %c2_i32_88 = arith.constant 2 : i32
    %127 = arith.addi %0, %c2_i32_88 : i32
    %128 = arith.index_cast %127 : i32 to index
    %c2_89 = arith.constant 2 : index
    %129 = memref.load %arg1[%128, %c2_89] : memref<8x8xi32, #tpu.memory_space<smem>>
    %c0_i32_90 = arith.constant 0 : i32
    %c0_i32_91 = arith.constant 0 : i32
    %130 = tpu.memref_slice %arg2[%129, %c0_i32_91] : memref<64x128xf32, #tpu.memory_space<any>> -> memref<1x128xf32, #tpu.memory_space<any>>
    %c18_i32 = arith.constant 18 : i32
    %c0_i32_92 = arith.constant 0 : i32
    %131 = tpu.memref_slice %arg4[%c18_i32, %c0_i32_92] : memref<64x128xf32, #tpu.memory_space<vmem>> -> memref<1x128xf32, #tpu.memory_space<vmem>>
    %132 = tpu.memref_slice %arg5[%c0_i32_90] : memref<1x!tpu.dma_semaphore, #tpu.memory_space<semaphore_mem>> -> memref<1x!tpu.dma_semaphore, #tpu.memory_space<semaphore_mem>>
    %133 = tpu.memref_squeeze %132 : memref<1x!tpu.dma_semaphore, #tpu.memory_space<semaphore_mem>> -> memref<!tpu.dma_semaphore, #tpu.memory_space<semaphore_mem>>
    tpu.enqueue_dma source(%130 : memref<1x128xf32, #tpu.memory_space<any>>) target(%131 : memref<1x128xf32, #tpu.memory_space<vmem>>) target_semaphore(%133 : memref<!tpu.dma_semaphore, #tpu.memory_space<semaphore_mem>>)
    %c3_i32_93 = arith.constant 3 : i32
    %134 = arith.addi %0, %c3_i32_93 : i32
    %135 = arith.index_cast %134 : i32 to index
    %c2_94 = arith.constant 2 : index
    %136 = memref.load %arg1[%135, %c2_94] : memref<8x8xi32, #tpu.memory_space<smem>>
    %c0_i32_95 = arith.constant 0 : i32
    %c0_i32_96 = arith.constant 0 : i32
    %137 = tpu.memref_slice %arg2[%136, %c0_i32_96] : memref<64x128xf32, #tpu.memory_space<any>> -> memref<1x128xf32, #tpu.memory_space<any>>
    %c19_i32 = arith.constant 19 : i32
    %c0_i32_97 = arith.constant 0 : i32
    %138 = tpu.memref_slice %arg4[%c19_i32, %c0_i32_97] : memref<64x128xf32, #tpu.memory_space<vmem>> -> memref<1x128xf32, #tpu.memory_space<vmem>>
    %139 = tpu.memref_slice %arg5[%c0_i32_95] : memref<1x!tpu.dma_semaphore, #tpu.memory_space<semaphore_mem>> -> memref<1x!tpu.dma_semaphore, #tpu.memory_space<semaphore_mem>>
    %140 = tpu.memref_squeeze %139 : memref<1x!tpu.dma_semaphore, #tpu.memory_space<semaphore_mem>> -> memref<!tpu.dma_semaphore, #tpu.memory_space<semaphore_mem>>
    tpu.enqueue_dma source(%137 : memref<1x128xf32, #tpu.memory_space<any>>) target(%138 : memref<1x128xf32, #tpu.memory_space<vmem>>) target_semaphore(%140 : memref<!tpu.dma_semaphore, #tpu.memory_space<semaphore_mem>>)
    %c4_i32_98 = arith.constant 4 : i32
    %141 = arith.addi %0, %c4_i32_98 : i32
    %142 = arith.index_cast %141 : i32 to index
    %c2_99 = arith.constant 2 : index
    %143 = memref.load %arg1[%142, %c2_99] : memref<8x8xi32, #tpu.memory_space<smem>>
    %c0_i32_100 = arith.constant 0 : i32
    %c0_i32_101 = arith.constant 0 : i32
    %144 = tpu.memref_slice %arg2[%143, %c0_i32_101] : memref<64x128xf32, #tpu.memory_space<any>> -> memref<1x128xf32, #tpu.memory_space<any>>
    %c20_i32 = arith.constant 20 : i32
    %c0_i32_102 = arith.constant 0 : i32
    %145 = tpu.memref_slice %arg4[%c20_i32, %c0_i32_102] : memref<64x128xf32, #tpu.memory_space<vmem>> -> memref<1x128xf32, #tpu.memory_space<vmem>>
    %146 = tpu.memref_slice %arg5[%c0_i32_100] : memref<1x!tpu.dma_semaphore, #tpu.memory_space<semaphore_mem>> -> memref<1x!tpu.dma_semaphore, #tpu.memory_space<semaphore_mem>>
    %147 = tpu.memref_squeeze %146 : memref<1x!tpu.dma_semaphore, #tpu.memory_space<semaphore_mem>> -> memref<!tpu.dma_semaphore, #tpu.memory_space<semaphore_mem>>
    tpu.enqueue_dma source(%144 : memref<1x128xf32, #tpu.memory_space<any>>) target(%145 : memref<1x128xf32, #tpu.memory_space<vmem>>) target_semaphore(%147 : memref<!tpu.dma_semaphore, #tpu.memory_space<semaphore_mem>>)
    %c5_i32_103 = arith.constant 5 : i32
    %148 = arith.addi %0, %c5_i32_103 : i32
    %149 = arith.index_cast %148 : i32 to index
    %c2_104 = arith.constant 2 : index
    %150 = memref.load %arg1[%149, %c2_104] : memref<8x8xi32, #tpu.memory_space<smem>>
    %c0_i32_105 = arith.constant 0 : i32
    %c0_i32_106 = arith.constant 0 : i32
    %151 = tpu.memref_slice %arg2[%150, %c0_i32_106] : memref<64x128xf32, #tpu.memory_space<any>> -> memref<1x128xf32, #tpu.memory_space<any>>
    %c21_i32 = arith.constant 21 : i32
    %c0_i32_107 = arith.constant 0 : i32
    %152 = tpu.memref_slice %arg4[%c21_i32, %c0_i32_107] : memref<64x128xf32, #tpu.memory_space<vmem>> -> memref<1x128xf32, #tpu.memory_space<vmem>>
    %153 = tpu.memref_slice %arg5[%c0_i32_105] : memref<1x!tpu.dma_semaphore, #tpu.memory_space<semaphore_mem>> -> memref<1x!tpu.dma_semaphore, #tpu.memory_space<semaphore_mem>>
    %154 = tpu.memref_squeeze %153 : memref<1x!tpu.dma_semaphore, #tpu.memory_space<semaphore_mem>> -> memref<!tpu.dma_semaphore, #tpu.memory_space<semaphore_mem>>
    tpu.enqueue_dma source(%151 : memref<1x128xf32, #tpu.memory_space<any>>) target(%152 : memref<1x128xf32, #tpu.memory_space<vmem>>) target_semaphore(%154 : memref<!tpu.dma_semaphore, #tpu.memory_space<semaphore_mem>>)
    %c6_i32_108 = arith.constant 6 : i32
    %155 = arith.addi %0, %c6_i32_108 : i32
    %156 = arith.index_cast %155 : i32 to index
    %c2_109 = arith.constant 2 : index
    %157 = memref.load %arg1[%156, %c2_109] : memref<8x8xi32, #tpu.memory_space<smem>>
    %c0_i32_110 = arith.constant 0 : i32
    %c0_i32_111 = arith.constant 0 : i32
    %158 = tpu.memref_slice %arg2[%157, %c0_i32_111] : memref<64x128xf32, #tpu.memory_space<any>> -> memref<1x128xf32, #tpu.memory_space<any>>
    %c22_i32 = arith.constant 22 : i32
    %c0_i32_112 = arith.constant 0 : i32
    %159 = tpu.memref_slice %arg4[%c22_i32, %c0_i32_112] : memref<64x128xf32, #tpu.memory_space<vmem>> -> memref<1x128xf32, #tpu.memory_space<vmem>>
    %160 = tpu.memref_slice %arg5[%c0_i32_110] : memref<1x!tpu.dma_semaphore, #tpu.memory_space<semaphore_mem>> -> memref<1x!tpu.dma_semaphore, #tpu.memory_space<semaphore_mem>>
    %161 = tpu.memref_squeeze %160 : memref<1x!tpu.dma_semaphore, #tpu.memory_space<semaphore_mem>> -> memref<!tpu.dma_semaphore, #tpu.memory_space<semaphore_mem>>
    tpu.enqueue_dma source(%158 : memref<1x128xf32, #tpu.memory_space<any>>) target(%159 : memref<1x128xf32, #tpu.memory_space<vmem>>) target_semaphore(%161 : memref<!tpu.dma_semaphore, #tpu.memory_space<semaphore_mem>>)
    %c7_i32_113 = arith.constant 7 : i32
    %162 = arith.addi %0, %c7_i32_113 : i32
    %163 = arith.index_cast %162 : i32 to index
    %c2_114 = arith.constant 2 : index
    %164 = memref.load %arg1[%163, %c2_114] : memref<8x8xi32, #tpu.memory_space<smem>>
    %c0_i32_115 = arith.constant 0 : i32
    %c0_i32_116 = arith.constant 0 : i32
    %165 = tpu.memref_slice %arg2[%164, %c0_i32_116] : memref<64x128xf32, #tpu.memory_space<any>> -> memref<1x128xf32, #tpu.memory_space<any>>
    %c23_i32 = arith.constant 23 : i32
    %c0_i32_117 = arith.constant 0 : i32
    %166 = tpu.memref_slice %arg4[%c23_i32, %c0_i32_117] : memref<64x128xf32, #tpu.memory_space<vmem>> -> memref<1x128xf32, #tpu.memory_space<vmem>>
    %167 = tpu.memref_slice %arg5[%c0_i32_115] : memref<1x!tpu.dma_semaphore, #tpu.memory_space<semaphore_mem>> -> memref<1x!tpu.dma_semaphore, #tpu.memory_space<semaphore_mem>>
    %168 = tpu.memref_squeeze %167 : memref<1x!tpu.dma_semaphore, #tpu.memory_space<semaphore_mem>> -> memref<!tpu.dma_semaphore, #tpu.memory_space<semaphore_mem>>
    tpu.enqueue_dma source(%165 : memref<1x128xf32, #tpu.memory_space<any>>) target(%166 : memref<1x128xf32, #tpu.memory_space<vmem>>) target_semaphore(%168 : memref<!tpu.dma_semaphore, #tpu.memory_space<semaphore_mem>>)
    %c0_i32_118 = arith.constant 0 : i32
    %169 = arith.addi %0, %c0_i32_118 : i32
    %170 = arith.index_cast %169 : i32 to index
    %c3 = arith.constant 3 : index
    %171 = memref.load %arg1[%170, %c3] : memref<8x8xi32, #tpu.memory_space<smem>>
    %c0_i32_119 = arith.constant 0 : i32
    %c0_i32_120 = arith.constant 0 : i32
    %172 = tpu.memref_slice %arg2[%171, %c0_i32_120] : memref<64x128xf32, #tpu.memory_space<any>> -> memref<1x128xf32, #tpu.memory_space<any>>
    %c24_i32 = arith.constant 24 : i32
    %c0_i32_121 = arith.constant 0 : i32
    %173 = tpu.memref_slice %arg4[%c24_i32, %c0_i32_121] : memref<64x128xf32, #tpu.memory_space<vmem>> -> memref<1x128xf32, #tpu.memory_space<vmem>>
    %174 = tpu.memref_slice %arg5[%c0_i32_119] : memref<1x!tpu.dma_semaphore, #tpu.memory_space<semaphore_mem>> -> memref<1x!tpu.dma_semaphore, #tpu.memory_space<semaphore_mem>>
    %175 = tpu.memref_squeeze %174 : memref<1x!tpu.dma_semaphore, #tpu.memory_space<semaphore_mem>> -> memref<!tpu.dma_semaphore, #tpu.memory_space<semaphore_mem>>
    tpu.enqueue_dma source(%172 : memref<1x128xf32, #tpu.memory_space<any>>) target(%173 : memref<1x128xf32, #tpu.memory_space<vmem>>) target_semaphore(%175 : memref<!tpu.dma_semaphore, #tpu.memory_space<semaphore_mem>>)
    %c1_i32_122 = arith.constant 1 : i32
    %176 = arith.addi %0, %c1_i32_122 : i32
    %177 = arith.index_cast %176 : i32 to index
    %c3_123 = arith.constant 3 : index
    %178 = memref.load %arg1[%177, %c3_123] : memref<8x8xi32, #tpu.memory_space<smem>>
    %c0_i32_124 = arith.constant 0 : i32
    %c0_i32_125 = arith.constant 0 : i32
    %179 = tpu.memref_slice %arg2[%178, %c0_i32_125] : memref<64x128xf32, #tpu.memory_space<any>> -> memref<1x128xf32, #tpu.memory_space<any>>
    %c25_i32 = arith.constant 25 : i32
    %c0_i32_126 = arith.constant 0 : i32
    %180 = tpu.memref_slice %arg4[%c25_i32, %c0_i32_126] : memref<64x128xf32, #tpu.memory_space<vmem>> -> memref<1x128xf32, #tpu.memory_space<vmem>>
    %181 = tpu.memref_slice %arg5[%c0_i32_124] : memref<1x!tpu.dma_semaphore, #tpu.memory_space<semaphore_mem>> -> memref<1x!tpu.dma_semaphore, #tpu.memory_space<semaphore_mem>>
    %182 = tpu.memref_squeeze %181 : memref<1x!tpu.dma_semaphore, #tpu.memory_space<semaphore_mem>> -> memref<!tpu.dma_semaphore, #tpu.memory_space<semaphore_mem>>
    tpu.enqueue_dma source(%179 : memref<1x128xf32, #tpu.memory_space<any>>) target(%180 : memref<1x128xf32, #tpu.memory_space<vmem>>) target_semaphore(%182 : memref<!tpu.dma_semaphore, #tpu.memory_space<semaphore_mem>>)
    %c2_i32_127 = arith.constant 2 : i32
    %183 = arith.addi %0, %c2_i32_127 : i32
    %184 = arith.index_cast %183 : i32 to index
    %c3_128 = arith.constant 3 : index
    %185 = memref.load %arg1[%184, %c3_128] : memref<8x8xi32, #tpu.memory_space<smem>>
    %c0_i32_129 = arith.constant 0 : i32
    %c0_i32_130 = arith.constant 0 : i32
    %186 = tpu.memref_slice %arg2[%185, %c0_i32_130] : memref<64x128xf32, #tpu.memory_space<any>> -> memref<1x128xf32, #tpu.memory_space<any>>
    %c26_i32 = arith.constant 26 : i32
    %c0_i32_131 = arith.constant 0 : i32
    %187 = tpu.memref_slice %arg4[%c26_i32, %c0_i32_131] : memref<64x128xf32, #tpu.memory_space<vmem>> -> memref<1x128xf32, #tpu.memory_space<vmem>>
    %188 = tpu.memref_slice %arg5[%c0_i32_129] : memref<1x!tpu.dma_semaphore, #tpu.memory_space<semaphore_mem>> -> memref<1x!tpu.dma_semaphore, #tpu.memory_space<semaphore_mem>>
    %189 = tpu.memref_squeeze %188 : memref<1x!tpu.dma_semaphore, #tpu.memory_space<semaphore_mem>> -> memref<!tpu.dma_semaphore, #tpu.memory_space<semaphore_mem>>
    tpu.enqueue_dma source(%186 : memref<1x128xf32, #tpu.memory_space<any>>) target(%187 : memref<1x128xf32, #tpu.memory_space<vmem>>) target_semaphore(%189 : memref<!tpu.dma_semaphore, #tpu.memory_space<semaphore_mem>>)
    %c3_i32_132 = arith.constant 3 : i32
    %190 = arith.addi %0, %c3_i32_132 : i32
    %191 = arith.index_cast %190 : i32 to index
    %c3_133 = arith.constant 3 : index
    %192 = memref.load %arg1[%191, %c3_133] : memref<8x8xi32, #tpu.memory_space<smem>>
    %c0_i32_134 = arith.constant 0 : i32
    %c0_i32_135 = arith.constant 0 : i32
    %193 = tpu.memref_slice %arg2[%192, %c0_i32_135] : memref<64x128xf32, #tpu.memory_space<any>> -> memref<1x128xf32, #tpu.memory_space<any>>
    %c27_i32 = arith.constant 27 : i32
    %c0_i32_136 = arith.constant 0 : i32
    %194 = tpu.memref_slice %arg4[%c27_i32, %c0_i32_136] : memref<64x128xf32, #tpu.memory_space<vmem>> -> memref<1x128xf32, #tpu.memory_space<vmem>>
    %195 = tpu.memref_slice %arg5[%c0_i32_134] : memref<1x!tpu.dma_semaphore, #tpu.memory_space<semaphore_mem>> -> memref<1x!tpu.dma_semaphore, #tpu.memory_space<semaphore_mem>>
    %196 = tpu.memref_squeeze %195 : memref<1x!tpu.dma_semaphore, #tpu.memory_space<semaphore_mem>> -> memref<!tpu.dma_semaphore, #tpu.memory_space<semaphore_mem>>
    tpu.enqueue_dma source(%193 : memref<1x128xf32, #tpu.memory_space<any>>) target(%194 : memref<1x128xf32, #tpu.memory_space<vmem>>) target_semaphore(%196 : memref<!tpu.dma_semaphore, #tpu.memory_space<semaphore_mem>>)
    %c4_i32_137 = arith.constant 4 : i32
    %197 = arith.addi %0, %c4_i32_137 : i32
    %198 = arith.index_cast %197 : i32 to index
    %c3_138 = arith.constant 3 : index
    %199 = memref.load %arg1[%198, %c3_138] : memref<8x8xi32, #tpu.memory_space<smem>>
    %c0_i32_139 = arith.constant 0 : i32
    %c0_i32_140 = arith.constant 0 : i32
    %200 = tpu.memref_slice %arg2[%199, %c0_i32_140] : memref<64x128xf32, #tpu.memory_space<any>> -> memref<1x128xf32, #tpu.memory_space<any>>
    %c28_i32 = arith.constant 28 : i32
    %c0_i32_141 = arith.constant 0 : i32
    %201 = tpu.memref_slice %arg4[%c28_i32, %c0_i32_141] : memref<64x128xf32, #tpu.memory_space<vmem>> -> memref<1x128xf32, #tpu.memory_space<vmem>>
    %202 = tpu.memref_slice %arg5[%c0_i32_139] : memref<1x!tpu.dma_semaphore, #tpu.memory_space<semaphore_mem>> -> memref<1x!tpu.dma_semaphore, #tpu.memory_space<semaphore_mem>>
    %203 = tpu.memref_squeeze %202 : memref<1x!tpu.dma_semaphore, #tpu.memory_space<semaphore_mem>> -> memref<!tpu.dma_semaphore, #tpu.memory_space<semaphore_mem>>
    tpu.enqueue_dma source(%200 : memref<1x128xf32, #tpu.memory_space<any>>) target(%201 : memref<1x128xf32, #tpu.memory_space<vmem>>) target_semaphore(%203 : memref<!tpu.dma_semaphore, #tpu.memory_space<semaphore_mem>>)
    %c5_i32_142 = arith.constant 5 : i32
    %204 = arith.addi %0, %c5_i32_142 : i32
    %205 = arith.index_cast %204 : i32 to index
    %c3_143 = arith.constant 3 : index
    %206 = memref.load %arg1[%205, %c3_143] : memref<8x8xi32, #tpu.memory_space<smem>>
    %c0_i32_144 = arith.constant 0 : i32
    %c0_i32_145 = arith.constant 0 : i32
    %207 = tpu.memref_slice %arg2[%206, %c0_i32_145] : memref<64x128xf32, #tpu.memory_space<any>> -> memref<1x128xf32, #tpu.memory_space<any>>
    %c29_i32 = arith.constant 29 : i32
    %c0_i32_146 = arith.constant 0 : i32
    %208 = tpu.memref_slice %arg4[%c29_i32, %c0_i32_146] : memref<64x128xf32, #tpu.memory_space<vmem>> -> memref<1x128xf32, #tpu.memory_space<vmem>>
    %209 = tpu.memref_slice %arg5[%c0_i32_144] : memref<1x!tpu.dma_semaphore, #tpu.memory_space<semaphore_mem>> -> memref<1x!tpu.dma_semaphore, #tpu.memory_space<semaphore_mem>>
    %210 = tpu.memref_squeeze %209 : memref<1x!tpu.dma_semaphore, #tpu.memory_space<semaphore_mem>> -> memref<!tpu.dma_semaphore, #tpu.memory_space<semaphore_mem>>
    tpu.enqueue_dma source(%207 : memref<1x128xf32, #tpu.memory_space<any>>) target(%208 : memref<1x128xf32, #tpu.memory_space<vmem>>) target_semaphore(%210 : memref<!tpu.dma_semaphore, #tpu.memory_space<semaphore_mem>>)
    %c6_i32_147 = arith.constant 6 : i32
    %211 = arith.addi %0, %c6_i32_147 : i32
    %212 = arith.index_cast %211 : i32 to index
    %c3_148 = arith.constant 3 : index
    %213 = memref.load %arg1[%212, %c3_148] : memref<8x8xi32, #tpu.memory_space<smem>>
    %c0_i32_149 = arith.constant 0 : i32
    %c0_i32_150 = arith.constant 0 : i32
    %214 = tpu.memref_slice %arg2[%213, %c0_i32_150] : memref<64x128xf32, #tpu.memory_space<any>> -> memref<1x128xf32, #tpu.memory_space<any>>
    %c30_i32 = arith.constant 30 : i32
    %c0_i32_151 = arith.constant 0 : i32
    %215 = tpu.memref_slice %arg4[%c30_i32, %c0_i32_151] : memref<64x128xf32, #tpu.memory_space<vmem>> -> memref<1x128xf32, #tpu.memory_space<vmem>>
    %216 = tpu.memref_slice %arg5[%c0_i32_149] : memref<1x!tpu.dma_semaphore, #tpu.memory_space<semaphore_mem>> -> memref<1x!tpu.dma_semaphore, #tpu.memory_space<semaphore_mem>>
    %217 = tpu.memref_squeeze %216 : memref<1x!tpu.dma_semaphore, #tpu.memory_space<semaphore_mem>> -> memref<!tpu.dma_semaphore, #tpu.memory_space<semaphore_mem>>
    tpu.enqueue_dma source(%214 : memref<1x128xf32, #tpu.memory_space<any>>) target(%215 : memref<1x128xf32, #tpu.memory_space<vmem>>) target_semaphore(%217 : memref<!tpu.dma_semaphore, #tpu.memory_space<semaphore_mem>>)
    %c7_i32_152 = arith.constant 7 : i32
    %218 = arith.addi %0, %c7_i32_152 : i32
    %219 = arith.index_cast %218 : i32 to index
    %c3_153 = arith.constant 3 : index
    %220 = memref.load %arg1[%219, %c3_153] : memref<8x8xi32, #tpu.memory_space<smem>>
    %c0_i32_154 = arith.constant 0 : i32
    %c0_i32_155 = arith.constant 0 : i32
    %221 = tpu.memref_slice %arg2[%220, %c0_i32_155] : memref<64x128xf32, #tpu.memory_space<any>> -> memref<1x128xf32, #tpu.memory_space<any>>
    %c31_i32 = arith.constant 31 : i32
    %c0_i32_156 = arith.constant 0 : i32
    %222 = tpu.memref_slice %arg4[%c31_i32, %c0_i32_156] : memref<64x128xf32, #tpu.memory_space<vmem>> -> memref<1x128xf32, #tpu.memory_space<vmem>>
    %223 = tpu.memref_slice %arg5[%c0_i32_154] : memref<1x!tpu.dma_semaphore, #tpu.memory_space<semaphore_mem>> -> memref<1x!tpu.dma_semaphore, #tpu.memory_space<semaphore_mem>>
    %224 = tpu.memref_squeeze %223 : memref<1x!tpu.dma_semaphore, #tpu.memory_space<semaphore_mem>> -> memref<!tpu.dma_semaphore, #tpu.memory_space<semaphore_mem>>
    tpu.enqueue_dma source(%221 : memref<1x128xf32, #tpu.memory_space<any>>) target(%222 : memref<1x128xf32, #tpu.memory_space<vmem>>) target_semaphore(%224 : memref<!tpu.dma_semaphore, #tpu.memory_space<semaphore_mem>>)
    %c0_i32_157 = arith.constant 0 : i32
    %225 = arith.addi %0, %c0_i32_157 : i32
    %226 = arith.index_cast %225 : i32 to index
    %c4 = arith.constant 4 : index
    %227 = memref.load %arg1[%226, %c4] : memref<8x8xi32, #tpu.memory_space<smem>>
    %c0_i32_158 = arith.constant 0 : i32
    %c0_i32_159 = arith.constant 0 : i32
    %228 = tpu.memref_slice %arg2[%227, %c0_i32_159] : memref<64x128xf32, #tpu.memory_space<any>> -> memref<1x128xf32, #tpu.memory_space<any>>
    %c32_i32 = arith.constant 32 : i32
    %c0_i32_160 = arith.constant 0 : i32
    %229 = tpu.memref_slice %arg4[%c32_i32, %c0_i32_160] : memref<64x128xf32, #tpu.memory_space<vmem>> -> memref<1x128xf32, #tpu.memory_space<vmem>>
    %230 = tpu.memref_slice %arg5[%c0_i32_158] : memref<1x!tpu.dma_semaphore, #tpu.memory_space<semaphore_mem>> -> memref<1x!tpu.dma_semaphore, #tpu.memory_space<semaphore_mem>>
    %231 = tpu.memref_squeeze %230 : memref<1x!tpu.dma_semaphore, #tpu.memory_space<semaphore_mem>> -> memref<!tpu.dma_semaphore, #tpu.memory_space<semaphore_mem>>
    tpu.enqueue_dma source(%228 : memref<1x128xf32, #tpu.memory_space<any>>) target(%229 : memref<1x128xf32, #tpu.memory_space<vmem>>) target_semaphore(%231 : memref<!tpu.dma_semaphore, #tpu.memory_space<semaphore_mem>>)
    %c1_i32_161 = arith.constant 1 : i32
    %232 = arith.addi %0, %c1_i32_161 : i32
    %233 = arith.index_cast %232 : i32 to index
    %c4_162 = arith.constant 4 : index
    %234 = memref.load %arg1[%233, %c4_162] : memref<8x8xi32, #tpu.memory_space<smem>>
    %c0_i32_163 = arith.constant 0 : i32
    %c0_i32_164 = arith.constant 0 : i32
    %235 = tpu.memref_slice %arg2[%234, %c0_i32_164] : memref<64x128xf32, #tpu.memory_space<any>> -> memref<1x128xf32, #tpu.memory_space<any>>
    %c33_i32 = arith.constant 33 : i32
    %c0_i32_165 = arith.constant 0 : i32
    %236 = tpu.memref_slice %arg4[%c33_i32, %c0_i32_165] : memref<64x128xf32, #tpu.memory_space<vmem>> -> memref<1x128xf32, #tpu.memory_space<vmem>>
    %237 = tpu.memref_slice %arg5[%c0_i32_163] : memref<1x!tpu.dma_semaphore, #tpu.memory_space<semaphore_mem>> -> memref<1x!tpu.dma_semaphore, #tpu.memory_space<semaphore_mem>>
    %238 = tpu.memref_squeeze %237 : memref<1x!tpu.dma_semaphore, #tpu.memory_space<semaphore_mem>> -> memref<!tpu.dma_semaphore, #tpu.memory_space<semaphore_mem>>
    tpu.enqueue_dma source(%235 : memref<1x128xf32, #tpu.memory_space<any>>) target(%236 : memref<1x128xf32, #tpu.memory_space<vmem>>) target_semaphore(%238 : memref<!tpu.dma_semaphore, #tpu.memory_space<semaphore_mem>>)
    %c2_i32_166 = arith.constant 2 : i32
    %239 = arith.addi %0, %c2_i32_166 : i32
    %240 = arith.index_cast %239 : i32 to index
    %c4_167 = arith.constant 4 : index
    %241 = memref.load %arg1[%240, %c4_167] : memref<8x8xi32, #tpu.memory_space<smem>>
    %c0_i32_168 = arith.constant 0 : i32
    %c0_i32_169 = arith.constant 0 : i32
    %242 = tpu.memref_slice %arg2[%241, %c0_i32_169] : memref<64x128xf32, #tpu.memory_space<any>> -> memref<1x128xf32, #tpu.memory_space<any>>
    %c34_i32 = arith.constant 34 : i32
    %c0_i32_170 = arith.constant 0 : i32
    %243 = tpu.memref_slice %arg4[%c34_i32, %c0_i32_170] : memref<64x128xf32, #tpu.memory_space<vmem>> -> memref<1x128xf32, #tpu.memory_space<vmem>>
    %244 = tpu.memref_slice %arg5[%c0_i32_168] : memref<1x!tpu.dma_semaphore, #tpu.memory_space<semaphore_mem>> -> memref<1x!tpu.dma_semaphore, #tpu.memory_space<semaphore_mem>>
    %245 = tpu.memref_squeeze %244 : memref<1x!tpu.dma_semaphore, #tpu.memory_space<semaphore_mem>> -> memref<!tpu.dma_semaphore, #tpu.memory_space<semaphore_mem>>
    tpu.enqueue_dma source(%242 : memref<1x128xf32, #tpu.memory_space<any>>) target(%243 : memref<1x128xf32, #tpu.memory_space<vmem>>) target_semaphore(%245 : memref<!tpu.dma_semaphore, #tpu.memory_space<semaphore_mem>>)
    %c3_i32_171 = arith.constant 3 : i32
    %246 = arith.addi %0, %c3_i32_171 : i32
    %247 = arith.index_cast %246 : i32 to index
    %c4_172 = arith.constant 4 : index
    %248 = memref.load %arg1[%247, %c4_172] : memref<8x8xi32, #tpu.memory_space<smem>>
    %c0_i32_173 = arith.constant 0 : i32
    %c0_i32_174 = arith.constant 0 : i32
    %249 = tpu.memref_slice %arg2[%248, %c0_i32_174] : memref<64x128xf32, #tpu.memory_space<any>> -> memref<1x128xf32, #tpu.memory_space<any>>
    %c35_i32 = arith.constant 35 : i32
    %c0_i32_175 = arith.constant 0 : i32
    %250 = tpu.memref_slice %arg4[%c35_i32, %c0_i32_175] : memref<64x128xf32, #tpu.memory_space<vmem>> -> memref<1x128xf32, #tpu.memory_space<vmem>>
    %251 = tpu.memref_slice %arg5[%c0_i32_173] : memref<1x!tpu.dma_semaphore, #tpu.memory_space<semaphore_mem>> -> memref<1x!tpu.dma_semaphore, #tpu.memory_space<semaphore_mem>>
    %252 = tpu.memref_squeeze %251 : memref<1x!tpu.dma_semaphore, #tpu.memory_space<semaphore_mem>> -> memref<!tpu.dma_semaphore, #tpu.memory_space<semaphore_mem>>
    tpu.enqueue_dma source(%249 : memref<1x128xf32, #tpu.memory_space<any>>) target(%250 : memref<1x128xf32, #tpu.memory_space<vmem>>) target_semaphore(%252 : memref<!tpu.dma_semaphore, #tpu.memory_space<semaphore_mem>>)
    %c4_i32_176 = arith.constant 4 : i32
    %253 = arith.addi %0, %c4_i32_176 : i32
    %254 = arith.index_cast %253 : i32 to index
    %c4_177 = arith.constant 4 : index
    %255 = memref.load %arg1[%254, %c4_177] : memref<8x8xi32, #tpu.memory_space<smem>>
    %c0_i32_178 = arith.constant 0 : i32
    %c0_i32_179 = arith.constant 0 : i32
    %256 = tpu.memref_slice %arg2[%255, %c0_i32_179] : memref<64x128xf32, #tpu.memory_space<any>> -> memref<1x128xf32, #tpu.memory_space<any>>
    %c36_i32 = arith.constant 36 : i32
    %c0_i32_180 = arith.constant 0 : i32
    %257 = tpu.memref_slice %arg4[%c36_i32, %c0_i32_180] : memref<64x128xf32, #tpu.memory_space<vmem>> -> memref<1x128xf32, #tpu.memory_space<vmem>>
    %258 = tpu.memref_slice %arg5[%c0_i32_178] : memref<1x!tpu.dma_semaphore, #tpu.memory_space<semaphore_mem>> -> memref<1x!tpu.dma_semaphore, #tpu.memory_space<semaphore_mem>>
    %259 = tpu.memref_squeeze %258 : memref<1x!tpu.dma_semaphore, #tpu.memory_space<semaphore_mem>> -> memref<!tpu.dma_semaphore, #tpu.memory_space<semaphore_mem>>
    tpu.enqueue_dma source(%256 : memref<1x128xf32, #tpu.memory_space<any>>) target(%257 : memref<1x128xf32, #tpu.memory_space<vmem>>) target_semaphore(%259 : memref<!tpu.dma_semaphore, #tpu.memory_space<semaphore_mem>>)
    %c5_i32_181 = arith.constant 5 : i32
    %260 = arith.addi %0, %c5_i32_181 : i32
    %261 = arith.index_cast %260 : i32 to index
    %c4_182 = arith.constant 4 : index
    %262 = memref.load %arg1[%261, %c4_182] : memref<8x8xi32, #tpu.memory_space<smem>>
    %c0_i32_183 = arith.constant 0 : i32
    %c0_i32_184 = arith.constant 0 : i32
    %263 = tpu.memref_slice %arg2[%262, %c0_i32_184] : memref<64x128xf32, #tpu.memory_space<any>> -> memref<1x128xf32, #tpu.memory_space<any>>
    %c37_i32 = arith.constant 37 : i32
    %c0_i32_185 = arith.constant 0 : i32
    %264 = tpu.memref_slice %arg4[%c37_i32, %c0_i32_185] : memref<64x128xf32, #tpu.memory_space<vmem>> -> memref<1x128xf32, #tpu.memory_space<vmem>>
    %265 = tpu.memref_slice %arg5[%c0_i32_183] : memref<1x!tpu.dma_semaphore, #tpu.memory_space<semaphore_mem>> -> memref<1x!tpu.dma_semaphore, #tpu.memory_space<semaphore_mem>>
    %266 = tpu.memref_squeeze %265 : memref<1x!tpu.dma_semaphore, #tpu.memory_space<semaphore_mem>> -> memref<!tpu.dma_semaphore, #tpu.memory_space<semaphore_mem>>
    tpu.enqueue_dma source(%263 : memref<1x128xf32, #tpu.memory_space<any>>) target(%264 : memref<1x128xf32, #tpu.memory_space<vmem>>) target_semaphore(%266 : memref<!tpu.dma_semaphore, #tpu.memory_space<semaphore_mem>>)
    %c6_i32_186 = arith.constant 6 : i32
    %267 = arith.addi %0, %c6_i32_186 : i32
    %268 = arith.index_cast %267 : i32 to index
    %c4_187 = arith.constant 4 : index
    %269 = memref.load %arg1[%268, %c4_187] : memref<8x8xi32, #tpu.memory_space<smem>>
    %c0_i32_188 = arith.constant 0 : i32
    %c0_i32_189 = arith.constant 0 : i32
    %270 = tpu.memref_slice %arg2[%269, %c0_i32_189] : memref<64x128xf32, #tpu.memory_space<any>> -> memref<1x128xf32, #tpu.memory_space<any>>
    %c38_i32 = arith.constant 38 : i32
    %c0_i32_190 = arith.constant 0 : i32
    %271 = tpu.memref_slice %arg4[%c38_i32, %c0_i32_190] : memref<64x128xf32, #tpu.memory_space<vmem>> -> memref<1x128xf32, #tpu.memory_space<vmem>>
    %272 = tpu.memref_slice %arg5[%c0_i32_188] : memref<1x!tpu.dma_semaphore, #tpu.memory_space<semaphore_mem>> -> memref<1x!tpu.dma_semaphore, #tpu.memory_space<semaphore_mem>>
    %273 = tpu.memref_squeeze %272 : memref<1x!tpu.dma_semaphore, #tpu.memory_space<semaphore_mem>> -> memref<!tpu.dma_semaphore, #tpu.memory_space<semaphore_mem>>
    tpu.enqueue_dma source(%270 : memref<1x128xf32, #tpu.memory_space<any>>) target(%271 : memref<1x128xf32, #tpu.memory_space<vmem>>) target_semaphore(%273 : memref<!tpu.dma_semaphore, #tpu.memory_space<semaphore_mem>>)
    %c7_i32_191 = arith.constant 7 : i32
    %274 = arith.addi %0, %c7_i32_191 : i32
    %275 = arith.index_cast %274 : i32 to index
    %c4_192 = arith.constant 4 : index
    %276 = memref.load %arg1[%275, %c4_192] : memref<8x8xi32, #tpu.memory_space<smem>>
    %c0_i32_193 = arith.constant 0 : i32
    %c0_i32_194 = arith.constant 0 : i32
    %277 = tpu.memref_slice %arg2[%276, %c0_i32_194] : memref<64x128xf32, #tpu.memory_space<any>> -> memref<1x128xf32, #tpu.memory_space<any>>
    %c39_i32 = arith.constant 39 : i32
    %c0_i32_195 = arith.constant 0 : i32
    %278 = tpu.memref_slice %arg4[%c39_i32, %c0_i32_195] : memref<64x128xf32, #tpu.memory_space<vmem>> -> memref<1x128xf32, #tpu.memory_space<vmem>>
    %279 = tpu.memref_slice %arg5[%c0_i32_193] : memref<1x!tpu.dma_semaphore, #tpu.memory_space<semaphore_mem>> -> memref<1x!tpu.dma_semaphore, #tpu.memory_space<semaphore_mem>>
    %280 = tpu.memref_squeeze %279 : memref<1x!tpu.dma_semaphore, #tpu.memory_space<semaphore_mem>> -> memref<!tpu.dma_semaphore, #tpu.memory_space<semaphore_mem>>
    tpu.enqueue_dma source(%277 : memref<1x128xf32, #tpu.memory_space<any>>) target(%278 : memref<1x128xf32, #tpu.memory_space<vmem>>) target_semaphore(%280 : memref<!tpu.dma_semaphore, #tpu.memory_space<semaphore_mem>>)
    %c0_i32_196 = arith.constant 0 : i32
    %281 = arith.addi %0, %c0_i32_196 : i32
    %282 = arith.index_cast %281 : i32 to index
    %c5 = arith.constant 5 : index
    %283 = memref.load %arg1[%282, %c5] : memref<8x8xi32, #tpu.memory_space<smem>>
    %c0_i32_197 = arith.constant 0 : i32
    %c0_i32_198 = arith.constant 0 : i32
    %284 = tpu.memref_slice %arg2[%283, %c0_i32_198] : memref<64x128xf32, #tpu.memory_space<any>> -> memref<1x128xf32, #tpu.memory_space<any>>
    %c40_i32 = arith.constant 40 : i32
    %c0_i32_199 = arith.constant 0 : i32
    %285 = tpu.memref_slice %arg4[%c40_i32, %c0_i32_199] : memref<64x128xf32, #tpu.memory_space<vmem>> -> memref<1x128xf32, #tpu.memory_space<vmem>>
    %286 = tpu.memref_slice %arg5[%c0_i32_197] : memref<1x!tpu.dma_semaphore, #tpu.memory_space<semaphore_mem>> -> memref<1x!tpu.dma_semaphore, #tpu.memory_space<semaphore_mem>>
    %287 = tpu.memref_squeeze %286 : memref<1x!tpu.dma_semaphore, #tpu.memory_space<semaphore_mem>> -> memref<!tpu.dma_semaphore, #tpu.memory_space<semaphore_mem>>
    tpu.enqueue_dma source(%284 : memref<1x128xf32, #tpu.memory_space<any>>) target(%285 : memref<1x128xf32, #tpu.memory_space<vmem>>) target_semaphore(%287 : memref<!tpu.dma_semaphore, #tpu.memory_space<semaphore_mem>>)
    %c1_i32_200 = arith.constant 1 : i32
    %288 = arith.addi %0, %c1_i32_200 : i32
    %289 = arith.index_cast %288 : i32 to index
    %c5_201 = arith.constant 5 : index
    %290 = memref.load %arg1[%289, %c5_201] : memref<8x8xi32, #tpu.memory_space<smem>>
    %c0_i32_202 = arith.constant 0 : i32
    %c0_i32_203 = arith.constant 0 : i32
    %291 = tpu.memref_slice %arg2[%290, %c0_i32_203] : memref<64x128xf32, #tpu.memory_space<any>> -> memref<1x128xf32, #tpu.memory_space<any>>
    %c41_i32 = arith.constant 41 : i32
    %c0_i32_204 = arith.constant 0 : i32
    %292 = tpu.memref_slice %arg4[%c41_i32, %c0_i32_204] : memref<64x128xf32, #tpu.memory_space<vmem>> -> memref<1x128xf32, #tpu.memory_space<vmem>>
    %293 = tpu.memref_slice %arg5[%c0_i32_202] : memref<1x!tpu.dma_semaphore, #tpu.memory_space<semaphore_mem>> -> memref<1x!tpu.dma_semaphore, #tpu.memory_space<semaphore_mem>>
    %294 = tpu.memref_squeeze %293 : memref<1x!tpu.dma_semaphore, #tpu.memory_space<semaphore_mem>> -> memref<!tpu.dma_semaphore, #tpu.memory_space<semaphore_mem>>
    tpu.enqueue_dma source(%291 : memref<1x128xf32, #tpu.memory_space<any>>) target(%292 : memref<1x128xf32, #tpu.memory_space<vmem>>) target_semaphore(%294 : memref<!tpu.dma_semaphore, #tpu.memory_space<semaphore_mem>>)
    %c2_i32_205 = arith.constant 2 : i32
    %295 = arith.addi %0, %c2_i32_205 : i32
    %296 = arith.index_cast %295 : i32 to index
    %c5_206 = arith.constant 5 : index
    %297 = memref.load %arg1[%296, %c5_206] : memref<8x8xi32, #tpu.memory_space<smem>>
    %c0_i32_207 = arith.constant 0 : i32
    %c0_i32_208 = arith.constant 0 : i32
    %298 = tpu.memref_slice %arg2[%297, %c0_i32_208] : memref<64x128xf32, #tpu.memory_space<any>> -> memref<1x128xf32, #tpu.memory_space<any>>
    %c42_i32 = arith.constant 42 : i32
    %c0_i32_209 = arith.constant 0 : i32
    %299 = tpu.memref_slice %arg4[%c42_i32, %c0_i32_209] : memref<64x128xf32, #tpu.memory_space<vmem>> -> memref<1x128xf32, #tpu.memory_space<vmem>>
    %300 = tpu.memref_slice %arg5[%c0_i32_207] : memref<1x!tpu.dma_semaphore, #tpu.memory_space<semaphore_mem>> -> memref<1x!tpu.dma_semaphore, #tpu.memory_space<semaphore_mem>>
    %301 = tpu.memref_squeeze %300 : memref<1x!tpu.dma_semaphore, #tpu.memory_space<semaphore_mem>> -> memref<!tpu.dma_semaphore, #tpu.memory_space<semaphore_mem>>
    tpu.enqueue_dma source(%298 : memref<1x128xf32, #tpu.memory_space<any>>) target(%299 : memref<1x128xf32, #tpu.memory_space<vmem>>) target_semaphore(%301 : memref<!tpu.dma_semaphore, #tpu.memory_space<semaphore_mem>>)
    %c3_i32_210 = arith.constant 3 : i32
    %302 = arith.addi %0, %c3_i32_210 : i32
    %303 = arith.index_cast %302 : i32 to index
    %c5_211 = arith.constant 5 : index
    %304 = memref.load %arg1[%303, %c5_211] : memref<8x8xi32, #tpu.memory_space<smem>>
    %c0_i32_212 = arith.constant 0 : i32
    %c0_i32_213 = arith.constant 0 : i32
    %305 = tpu.memref_slice %arg2[%304, %c0_i32_213] : memref<64x128xf32, #tpu.memory_space<any>> -> memref<1x128xf32, #tpu.memory_space<any>>
    %c43_i32 = arith.constant 43 : i32
    %c0_i32_214 = arith.constant 0 : i32
    %306 = tpu.memref_slice %arg4[%c43_i32, %c0_i32_214] : memref<64x128xf32, #tpu.memory_space<vmem>> -> memref<1x128xf32, #tpu.memory_space<vmem>>
    %307 = tpu.memref_slice %arg5[%c0_i32_212] : memref<1x!tpu.dma_semaphore, #tpu.memory_space<semaphore_mem>> -> memref<1x!tpu.dma_semaphore, #tpu.memory_space<semaphore_mem>>
    %308 = tpu.memref_squeeze %307 : memref<1x!tpu.dma_semaphore, #tpu.memory_space<semaphore_mem>> -> memref<!tpu.dma_semaphore, #tpu.memory_space<semaphore_mem>>
    tpu.enqueue_dma source(%305 : memref<1x128xf32, #tpu.memory_space<any>>) target(%306 : memref<1x128xf32, #tpu.memory_space<vmem>>) target_semaphore(%308 : memref<!tpu.dma_semaphore, #tpu.memory_space<semaphore_mem>>)
    %c4_i32_215 = arith.constant 4 : i32
    %309 = arith.addi %0, %c4_i32_215 : i32
    %310 = arith.index_cast %309 : i32 to index
    %c5_216 = arith.constant 5 : index
    %311 = memref.load %arg1[%310, %c5_216] : memref<8x8xi32, #tpu.memory_space<smem>>
    %c0_i32_217 = arith.constant 0 : i32
    %c0_i32_218 = arith.constant 0 : i32
    %312 = tpu.memref_slice %arg2[%311, %c0_i32_218] : memref<64x128xf32, #tpu.memory_space<any>> -> memref<1x128xf32, #tpu.memory_space<any>>
    %c44_i32 = arith.constant 44 : i32
    %c0_i32_219 = arith.constant 0 : i32
    %313 = tpu.memref_slice %arg4[%c44_i32, %c0_i32_219] : memref<64x128xf32, #tpu.memory_space<vmem>> -> memref<1x128xf32, #tpu.memory_space<vmem>>
    %314 = tpu.memref_slice %arg5[%c0_i32_217] : memref<1x!tpu.dma_semaphore, #tpu.memory_space<semaphore_mem>> -> memref<1x!tpu.dma_semaphore, #tpu.memory_space<semaphore_mem>>
    %315 = tpu.memref_squeeze %314 : memref<1x!tpu.dma_semaphore, #tpu.memory_space<semaphore_mem>> -> memref<!tpu.dma_semaphore, #tpu.memory_space<semaphore_mem>>
    tpu.enqueue_dma source(%312 : memref<1x128xf32, #tpu.memory_space<any>>) target(%313 : memref<1x128xf32, #tpu.memory_space<vmem>>) target_semaphore(%315 : memref<!tpu.dma_semaphore, #tpu.memory_space<semaphore_mem>>)
    %c5_i32_220 = arith.constant 5 : i32
    %316 = arith.addi %0, %c5_i32_220 : i32
    %317 = arith.index_cast %316 : i32 to index
    %c5_221 = arith.constant 5 : index
    %318 = memref.load %arg1[%317, %c5_221] : memref<8x8xi32, #tpu.memory_space<smem>>
    %c0_i32_222 = arith.constant 0 : i32
    %c0_i32_223 = arith.constant 0 : i32
    %319 = tpu.memref_slice %arg2[%318, %c0_i32_223] : memref<64x128xf32, #tpu.memory_space<any>> -> memref<1x128xf32, #tpu.memory_space<any>>
    %c45_i32 = arith.constant 45 : i32
    %c0_i32_224 = arith.constant 0 : i32
    %320 = tpu.memref_slice %arg4[%c45_i32, %c0_i32_224] : memref<64x128xf32, #tpu.memory_space<vmem>> -> memref<1x128xf32, #tpu.memory_space<vmem>>
    %321 = tpu.memref_slice %arg5[%c0_i32_222] : memref<1x!tpu.dma_semaphore, #tpu.memory_space<semaphore_mem>> -> memref<1x!tpu.dma_semaphore, #tpu.memory_space<semaphore_mem>>
    %322 = tpu.memref_squeeze %321 : memref<1x!tpu.dma_semaphore, #tpu.memory_space<semaphore_mem>> -> memref<!tpu.dma_semaphore, #tpu.memory_space<semaphore_mem>>
    tpu.enqueue_dma source(%319 : memref<1x128xf32, #tpu.memory_space<any>>) target(%320 : memref<1x128xf32, #tpu.memory_space<vmem>>) target_semaphore(%322 : memref<!tpu.dma_semaphore, #tpu.memory_space<semaphore_mem>>)
    %c6_i32_225 = arith.constant 6 : i32
    %323 = arith.addi %0, %c6_i32_225 : i32
    %324 = arith.index_cast %323 : i32 to index
    %c5_226 = arith.constant 5 : index
    %325 = memref.load %arg1[%324, %c5_226] : memref<8x8xi32, #tpu.memory_space<smem>>
    %c0_i32_227 = arith.constant 0 : i32
    %c0_i32_228 = arith.constant 0 : i32
    %326 = tpu.memref_slice %arg2[%325, %c0_i32_228] : memref<64x128xf32, #tpu.memory_space<any>> -> memref<1x128xf32, #tpu.memory_space<any>>
    %c46_i32 = arith.constant 46 : i32
    %c0_i32_229 = arith.constant 0 : i32
    %327 = tpu.memref_slice %arg4[%c46_i32, %c0_i32_229] : memref<64x128xf32, #tpu.memory_space<vmem>> -> memref<1x128xf32, #tpu.memory_space<vmem>>
    %328 = tpu.memref_slice %arg5[%c0_i32_227] : memref<1x!tpu.dma_semaphore, #tpu.memory_space<semaphore_mem>> -> memref<1x!tpu.dma_semaphore, #tpu.memory_space<semaphore_mem>>
    %329 = tpu.memref_squeeze %328 : memref<1x!tpu.dma_semaphore, #tpu.memory_space<semaphore_mem>> -> memref<!tpu.dma_semaphore, #tpu.memory_space<semaphore_mem>>
    tpu.enqueue_dma source(%326 : memref<1x128xf32, #tpu.memory_space<any>>) target(%327 : memref<1x128xf32, #tpu.memory_space<vmem>>) target_semaphore(%329 : memref<!tpu.dma_semaphore, #tpu.memory_space<semaphore_mem>>)
    %c7_i32_230 = arith.constant 7 : i32
    %330 = arith.addi %0, %c7_i32_230 : i32
    %331 = arith.index_cast %330 : i32 to index
    %c5_231 = arith.constant 5 : index
    %332 = memref.load %arg1[%331, %c5_231] : memref<8x8xi32, #tpu.memory_space<smem>>
    %c0_i32_232 = arith.constant 0 : i32
    %c0_i32_233 = arith.constant 0 : i32
    %333 = tpu.memref_slice %arg2[%332, %c0_i32_233] : memref<64x128xf32, #tpu.memory_space<any>> -> memref<1x128xf32, #tpu.memory_space<any>>
    %c47_i32 = arith.constant 47 : i32
    %c0_i32_234 = arith.constant 0 : i32
    %334 = tpu.memref_slice %arg4[%c47_i32, %c0_i32_234] : memref<64x128xf32, #tpu.memory_space<vmem>> -> memref<1x128xf32, #tpu.memory_space<vmem>>
    %335 = tpu.memref_slice %arg5[%c0_i32_232] : memref<1x!tpu.dma_semaphore, #tpu.memory_space<semaphore_mem>> -> memref<1x!tpu.dma_semaphore, #tpu.memory_space<semaphore_mem>>
    %336 = tpu.memref_squeeze %335 : memref<1x!tpu.dma_semaphore, #tpu.memory_space<semaphore_mem>> -> memref<!tpu.dma_semaphore, #tpu.memory_space<semaphore_mem>>
    tpu.enqueue_dma source(%333 : memref<1x128xf32, #tpu.memory_space<any>>) target(%334 : memref<1x128xf32, #tpu.memory_space<vmem>>) target_semaphore(%336 : memref<!tpu.dma_semaphore, #tpu.memory_space<semaphore_mem>>)
    %c0_i32_235 = arith.constant 0 : i32
    %337 = arith.addi %0, %c0_i32_235 : i32
    %338 = arith.index_cast %337 : i32 to index
    %c6 = arith.constant 6 : index
    %339 = memref.load %arg1[%338, %c6] : memref<8x8xi32, #tpu.memory_space<smem>>
    %c0_i32_236 = arith.constant 0 : i32
    %c0_i32_237 = arith.constant 0 : i32
    %340 = tpu.memref_slice %arg2[%339, %c0_i32_237] : memref<64x128xf32, #tpu.memory_space<any>> -> memref<1x128xf32, #tpu.memory_space<any>>
    %c48_i32 = arith.constant 48 : i32
    %c0_i32_238 = arith.constant 0 : i32
    %341 = tpu.memref_slice %arg4[%c48_i32, %c0_i32_238] : memref<64x128xf32, #tpu.memory_space<vmem>> -> memref<1x128xf32, #tpu.memory_space<vmem>>
    %342 = tpu.memref_slice %arg5[%c0_i32_236] : memref<1x!tpu.dma_semaphore, #tpu.memory_space<semaphore_mem>> -> memref<1x!tpu.dma_semaphore, #tpu.memory_space<semaphore_mem>>
    %343 = tpu.memref_squeeze %342 : memref<1x!tpu.dma_semaphore, #tpu.memory_space<semaphore_mem>> -> memref<!tpu.dma_semaphore, #tpu.memory_space<semaphore_mem>>
    tpu.enqueue_dma source(%340 : memref<1x128xf32, #tpu.memory_space<any>>) target(%341 : memref<1x128xf32, #tpu.memory_space<vmem>>) target_semaphore(%343 : memref<!tpu.dma_semaphore, #tpu.memory_space<semaphore_mem>>)
    %c1_i32_239 = arith.constant 1 : i32
    %344 = arith.addi %0, %c1_i32_239 : i32
    %345 = arith.index_cast %344 : i32 to index
    %c6_240 = arith.constant 6 : index
    %346 = memref.load %arg1[%345, %c6_240] : memref<8x8xi32, #tpu.memory_space<smem>>
    %c0_i32_241 = arith.constant 0 : i32
    %c0_i32_242 = arith.constant 0 : i32
    %347 = tpu.memref_slice %arg2[%346, %c0_i32_242] : memref<64x128xf32, #tpu.memory_space<any>> -> memref<1x128xf32, #tpu.memory_space<any>>
    %c49_i32 = arith.constant 49 : i32
    %c0_i32_243 = arith.constant 0 : i32
    %348 = tpu.memref_slice %arg4[%c49_i32, %c0_i32_243] : memref<64x128xf32, #tpu.memory_space<vmem>> -> memref<1x128xf32, #tpu.memory_space<vmem>>
    %349 = tpu.memref_slice %arg5[%c0_i32_241] : memref<1x!tpu.dma_semaphore, #tpu.memory_space<semaphore_mem>> -> memref<1x!tpu.dma_semaphore, #tpu.memory_space<semaphore_mem>>
    %350 = tpu.memref_squeeze %349 : memref<1x!tpu.dma_semaphore, #tpu.memory_space<semaphore_mem>> -> memref<!tpu.dma_semaphore, #tpu.memory_space<semaphore_mem>>
    tpu.enqueue_dma source(%347 : memref<1x128xf32, #tpu.memory_space<any>>) target(%348 : memref<1x128xf32, #tpu.memory_space<vmem>>) target_semaphore(%350 : memref<!tpu.dma_semaphore, #tpu.memory_space<semaphore_mem>>)
    %c2_i32_244 = arith.constant 2 : i32
    %351 = arith.addi %0, %c2_i32_244 : i32
    %352 = arith.index_cast %351 : i32 to index
    %c6_245 = arith.constant 6 : index
    %353 = memref.load %arg1[%352, %c6_245] : memref<8x8xi32, #tpu.memory_space<smem>>
    %c0_i32_246 = arith.constant 0 : i32
    %c0_i32_247 = arith.constant 0 : i32
    %354 = tpu.memref_slice %arg2[%353, %c0_i32_247] : memref<64x128xf32, #tpu.memory_space<any>> -> memref<1x128xf32, #tpu.memory_space<any>>
    %c50_i32 = arith.constant 50 : i32
    %c0_i32_248 = arith.constant 0 : i32
    %355 = tpu.memref_slice %arg4[%c50_i32, %c0_i32_248] : memref<64x128xf32, #tpu.memory_space<vmem>> -> memref<1x128xf32, #tpu.memory_space<vmem>>
    %356 = tpu.memref_slice %arg5[%c0_i32_246] : memref<1x!tpu.dma_semaphore, #tpu.memory_space<semaphore_mem>> -> memref<1x!tpu.dma_semaphore, #tpu.memory_space<semaphore_mem>>
    %357 = tpu.memref_squeeze %356 : memref<1x!tpu.dma_semaphore, #tpu.memory_space<semaphore_mem>> -> memref<!tpu.dma_semaphore, #tpu.memory_space<semaphore_mem>>
    tpu.enqueue_dma source(%354 : memref<1x128xf32, #tpu.memory_space<any>>) target(%355 : memref<1x128xf32, #tpu.memory_space<vmem>>) target_semaphore(%357 : memref<!tpu.dma_semaphore, #tpu.memory_space<semaphore_mem>>)
    %c3_i32_249 = arith.constant 3 : i32
    %358 = arith.addi %0, %c3_i32_249 : i32
    %359 = arith.index_cast %358 : i32 to index
    %c6_250 = arith.constant 6 : index
    %360 = memref.load %arg1[%359, %c6_250] : memref<8x8xi32, #tpu.memory_space<smem>>
    %c0_i32_251 = arith.constant 0 : i32
    %c0_i32_252 = arith.constant 0 : i32
    %361 = tpu.memref_slice %arg2[%360, %c0_i32_252] : memref<64x128xf32, #tpu.memory_space<any>> -> memref<1x128xf32, #tpu.memory_space<any>>
    %c51_i32 = arith.constant 51 : i32
    %c0_i32_253 = arith.constant 0 : i32
    %362 = tpu.memref_slice %arg4[%c51_i32, %c0_i32_253] : memref<64x128xf32, #tpu.memory_space<vmem>> -> memref<1x128xf32, #tpu.memory_space<vmem>>
    %363 = tpu.memref_slice %arg5[%c0_i32_251] : memref<1x!tpu.dma_semaphore, #tpu.memory_space<semaphore_mem>> -> memref<1x!tpu.dma_semaphore, #tpu.memory_space<semaphore_mem>>
    %364 = tpu.memref_squeeze %363 : memref<1x!tpu.dma_semaphore, #tpu.memory_space<semaphore_mem>> -> memref<!tpu.dma_semaphore, #tpu.memory_space<semaphore_mem>>
    tpu.enqueue_dma source(%361 : memref<1x128xf32, #tpu.memory_space<any>>) target(%362 : memref<1x128xf32, #tpu.memory_space<vmem>>) target_semaphore(%364 : memref<!tpu.dma_semaphore, #tpu.memory_space<semaphore_mem>>)
    %c4_i32_254 = arith.constant 4 : i32
    %365 = arith.addi %0, %c4_i32_254 : i32
    %366 = arith.index_cast %365 : i32 to index
    %c6_255 = arith.constant 6 : index
    %367 = memref.load %arg1[%366, %c6_255] : memref<8x8xi32, #tpu.memory_space<smem>>
    %c0_i32_256 = arith.constant 0 : i32
    %c0_i32_257 = arith.constant 0 : i32
    %368 = tpu.memref_slice %arg2[%367, %c0_i32_257] : memref<64x128xf32, #tpu.memory_space<any>> -> memref<1x128xf32, #tpu.memory_space<any>>
    %c52_i32 = arith.constant 52 : i32
    %c0_i32_258 = arith.constant 0 : i32
    %369 = tpu.memref_slice %arg4[%c52_i32, %c0_i32_258] : memref<64x128xf32, #tpu.memory_space<vmem>> -> memref<1x128xf32, #tpu.memory_space<vmem>>
    %370 = tpu.memref_slice %arg5[%c0_i32_256] : memref<1x!tpu.dma_semaphore, #tpu.memory_space<semaphore_mem>> -> memref<1x!tpu.dma_semaphore, #tpu.memory_space<semaphore_mem>>
    %371 = tpu.memref_squeeze %370 : memref<1x!tpu.dma_semaphore, #tpu.memory_space<semaphore_mem>> -> memref<!tpu.dma_semaphore, #tpu.memory_space<semaphore_mem>>
    tpu.enqueue_dma source(%368 : memref<1x128xf32, #tpu.memory_space<any>>) target(%369 : memref<1x128xf32, #tpu.memory_space<vmem>>) target_semaphore(%371 : memref<!tpu.dma_semaphore, #tpu.memory_space<semaphore_mem>>)
    %c5_i32_259 = arith.constant 5 : i32
    %372 = arith.addi %0, %c5_i32_259 : i32
    %373 = arith.index_cast %372 : i32 to index
    %c6_260 = arith.constant 6 : index
    %374 = memref.load %arg1[%373, %c6_260] : memref<8x8xi32, #tpu.memory_space<smem>>
    %c0_i32_261 = arith.constant 0 : i32
    %c0_i32_262 = arith.constant 0 : i32
    %375 = tpu.memref_slice %arg2[%374, %c0_i32_262] : memref<64x128xf32, #tpu.memory_space<any>> -> memref<1x128xf32, #tpu.memory_space<any>>
    %c53_i32 = arith.constant 53 : i32
    %c0_i32_263 = arith.constant 0 : i32
    %376 = tpu.memref_slice %arg4[%c53_i32, %c0_i32_263] : memref<64x128xf32, #tpu.memory_space<vmem>> -> memref<1x128xf32, #tpu.memory_space<vmem>>
    %377 = tpu.memref_slice %arg5[%c0_i32_261] : memref<1x!tpu.dma_semaphore, #tpu.memory_space<semaphore_mem>> -> memref<1x!tpu.dma_semaphore, #tpu.memory_space<semaphore_mem>>
    %378 = tpu.memref_squeeze %377 : memref<1x!tpu.dma_semaphore, #tpu.memory_space<semaphore_mem>> -> memref<!tpu.dma_semaphore, #tpu.memory_space<semaphore_mem>>
    tpu.enqueue_dma source(%375 : memref<1x128xf32, #tpu.memory_space<any>>) target(%376 : memref<1x128xf32, #tpu.memory_space<vmem>>) target_semaphore(%378 : memref<!tpu.dma_semaphore, #tpu.memory_space<semaphore_mem>>)
    %c6_i32_264 = arith.constant 6 : i32
    %379 = arith.addi %0, %c6_i32_264 : i32
    %380 = arith.index_cast %379 : i32 to index
    %c6_265 = arith.constant 6 : index
    %381 = memref.load %arg1[%380, %c6_265] : memref<8x8xi32, #tpu.memory_space<smem>>
    %c0_i32_266 = arith.constant 0 : i32
    %c0_i32_267 = arith.constant 0 : i32
    %382 = tpu.memref_slice %arg2[%381, %c0_i32_267] : memref<64x128xf32, #tpu.memory_space<any>> -> memref<1x128xf32, #tpu.memory_space<any>>
    %c54_i32 = arith.constant 54 : i32
    %c0_i32_268 = arith.constant 0 : i32
    %383 = tpu.memref_slice %arg4[%c54_i32, %c0_i32_268] : memref<64x128xf32, #tpu.memory_space<vmem>> -> memref<1x128xf32, #tpu.memory_space<vmem>>
    %384 = tpu.memref_slice %arg5[%c0_i32_266] : memref<1x!tpu.dma_semaphore, #tpu.memory_space<semaphore_mem>> -> memref<1x!tpu.dma_semaphore, #tpu.memory_space<semaphore_mem>>
    %385 = tpu.memref_squeeze %384 : memref<1x!tpu.dma_semaphore, #tpu.memory_space<semaphore_mem>> -> memref<!tpu.dma_semaphore, #tpu.memory_space<semaphore_mem>>
    tpu.enqueue_dma source(%382 : memref<1x128xf32, #tpu.memory_space<any>>) target(%383 : memref<1x128xf32, #tpu.memory_space<vmem>>) target_semaphore(%385 : memref<!tpu.dma_semaphore, #tpu.memory_space<semaphore_mem>>)
    %c7_i32_269 = arith.constant 7 : i32
    %386 = arith.addi %0, %c7_i32_269 : i32
    %387 = arith.index_cast %386 : i32 to index
    %c6_270 = arith.constant 6 : index
    %388 = memref.load %arg1[%387, %c6_270] : memref<8x8xi32, #tpu.memory_space<smem>>
    %c0_i32_271 = arith.constant 0 : i32
    %c0_i32_272 = arith.constant 0 : i32
    %389 = tpu.memref_slice %arg2[%388, %c0_i32_272] : memref<64x128xf32, #tpu.memory_space<any>> -> memref<1x128xf32, #tpu.memory_space<any>>
    %c55_i32 = arith.constant 55 : i32
    %c0_i32_273 = arith.constant 0 : i32
    %390 = tpu.memref_slice %arg4[%c55_i32, %c0_i32_273] : memref<64x128xf32, #tpu.memory_space<vmem>> -> memref<1x128xf32, #tpu.memory_space<vmem>>
    %391 = tpu.memref_slice %arg5[%c0_i32_271] : memref<1x!tpu.dma_semaphore, #tpu.memory_space<semaphore_mem>> -> memref<1x!tpu.dma_semaphore, #tpu.memory_space<semaphore_mem>>
    %392 = tpu.memref_squeeze %391 : memref<1x!tpu.dma_semaphore, #tpu.memory_space<semaphore_mem>> -> memref<!tpu.dma_semaphore, #tpu.memory_space<semaphore_mem>>
    tpu.enqueue_dma source(%389 : memref<1x128xf32, #tpu.memory_space<any>>) target(%390 : memref<1x128xf32, #tpu.memory_space<vmem>>) target_semaphore(%392 : memref<!tpu.dma_semaphore, #tpu.memory_space<semaphore_mem>>)
    %c0_i32_274 = arith.constant 0 : i32
    %393 = arith.addi %0, %c0_i32_274 : i32
    %394 = arith.index_cast %393 : i32 to index
    %c7 = arith.constant 7 : index
    %395 = memref.load %arg1[%394, %c7] : memref<8x8xi32, #tpu.memory_space<smem>>
    %c0_i32_275 = arith.constant 0 : i32
    %c0_i32_276 = arith.constant 0 : i32
    %396 = tpu.memref_slice %arg2[%395, %c0_i32_276] : memref<64x128xf32, #tpu.memory_space<any>> -> memref<1x128xf32, #tpu.memory_space<any>>
    %c56_i32 = arith.constant 56 : i32
    %c0_i32_277 = arith.constant 0 : i32
    %397 = tpu.memref_slice %arg4[%c56_i32, %c0_i32_277] : memref<64x128xf32, #tpu.memory_space<vmem>> -> memref<1x128xf32, #tpu.memory_space<vmem>>
    %398 = tpu.memref_slice %arg5[%c0_i32_275] : memref<1x!tpu.dma_semaphore, #tpu.memory_space<semaphore_mem>> -> memref<1x!tpu.dma_semaphore, #tpu.memory_space<semaphore_mem>>
    %399 = tpu.memref_squeeze %398 : memref<1x!tpu.dma_semaphore, #tpu.memory_space<semaphore_mem>> -> memref<!tpu.dma_semaphore, #tpu.memory_space<semaphore_mem>>
    tpu.enqueue_dma source(%396 : memref<1x128xf32, #tpu.memory_space<any>>) target(%397 : memref<1x128xf32, #tpu.memory_space<vmem>>) target_semaphore(%399 : memref<!tpu.dma_semaphore, #tpu.memory_space<semaphore_mem>>)
    %c1_i32_278 = arith.constant 1 : i32
    %400 = arith.addi %0, %c1_i32_278 : i32
    %401 = arith.index_cast %400 : i32 to index
    %c7_279 = arith.constant 7 : index
    %402 = memref.load %arg1[%401, %c7_279] : memref<8x8xi32, #tpu.memory_space<smem>>
    %c0_i32_280 = arith.constant 0 : i32
    %c0_i32_281 = arith.constant 0 : i32
    %403 = tpu.memref_slice %arg2[%402, %c0_i32_281] : memref<64x128xf32, #tpu.memory_space<any>> -> memref<1x128xf32, #tpu.memory_space<any>>
    %c57_i32 = arith.constant 57 : i32
    %c0_i32_282 = arith.constant 0 : i32
    %404 = tpu.memref_slice %arg4[%c57_i32, %c0_i32_282] : memref<64x128xf32, #tpu.memory_space<vmem>> -> memref<1x128xf32, #tpu.memory_space<vmem>>
    %405 = tpu.memref_slice %arg5[%c0_i32_280] : memref<1x!tpu.dma_semaphore, #tpu.memory_space<semaphore_mem>> -> memref<1x!tpu.dma_semaphore, #tpu.memory_space<semaphore_mem>>
    %406 = tpu.memref_squeeze %405 : memref<1x!tpu.dma_semaphore, #tpu.memory_space<semaphore_mem>> -> memref<!tpu.dma_semaphore, #tpu.memory_space<semaphore_mem>>
    tpu.enqueue_dma source(%403 : memref<1x128xf32, #tpu.memory_space<any>>) target(%404 : memref<1x128xf32, #tpu.memory_space<vmem>>) target_semaphore(%406 : memref<!tpu.dma_semaphore, #tpu.memory_space<semaphore_mem>>)
    %c2_i32_283 = arith.constant 2 : i32
    %407 = arith.addi %0, %c2_i32_283 : i32
    %408 = arith.index_cast %407 : i32 to index
    %c7_284 = arith.constant 7 : index
    %409 = memref.load %arg1[%408, %c7_284] : memref<8x8xi32, #tpu.memory_space<smem>>
    %c0_i32_285 = arith.constant 0 : i32
    %c0_i32_286 = arith.constant 0 : i32
    %410 = tpu.memref_slice %arg2[%409, %c0_i32_286] : memref<64x128xf32, #tpu.memory_space<any>> -> memref<1x128xf32, #tpu.memory_space<any>>
    %c58_i32 = arith.constant 58 : i32
    %c0_i32_287 = arith.constant 0 : i32
    %411 = tpu.memref_slice %arg4[%c58_i32, %c0_i32_287] : memref<64x128xf32, #tpu.memory_space<vmem>> -> memref<1x128xf32, #tpu.memory_space<vmem>>
    %412 = tpu.memref_slice %arg5[%c0_i32_285] : memref<1x!tpu.dma_semaphore, #tpu.memory_space<semaphore_mem>> -> memref<1x!tpu.dma_semaphore, #tpu.memory_space<semaphore_mem>>
    %413 = tpu.memref_squeeze %412 : memref<1x!tpu.dma_semaphore, #tpu.memory_space<semaphore_mem>> -> memref<!tpu.dma_semaphore, #tpu.memory_space<semaphore_mem>>
    tpu.enqueue_dma source(%410 : memref<1x128xf32, #tpu.memory_space<any>>) target(%411 : memref<1x128xf32, #tpu.memory_space<vmem>>) target_semaphore(%413 : memref<!tpu.dma_semaphore, #tpu.memory_space<semaphore_mem>>)
    %c3_i32_288 = arith.constant 3 : i32
    %414 = arith.addi %0, %c3_i32_288 : i32
    %415 = arith.index_cast %414 : i32 to index
    %c7_289 = arith.constant 7 : index
    %416 = memref.load %arg1[%415, %c7_289] : memref<8x8xi32, #tpu.memory_space<smem>>
    %c0_i32_290 = arith.constant 0 : i32
    %c0_i32_291 = arith.constant 0 : i32
    %417 = tpu.memref_slice %arg2[%416, %c0_i32_291] : memref<64x128xf32, #tpu.memory_space<any>> -> memref<1x128xf32, #tpu.memory_space<any>>
    %c59_i32 = arith.constant 59 : i32
    %c0_i32_292 = arith.constant 0 : i32
    %418 = tpu.memref_slice %arg4[%c59_i32, %c0_i32_292] : memref<64x128xf32, #tpu.memory_space<vmem>> -> memref<1x128xf32, #tpu.memory_space<vmem>>
    %419 = tpu.memref_slice %arg5[%c0_i32_290] : memref<1x!tpu.dma_semaphore, #tpu.memory_space<semaphore_mem>> -> memref<1x!tpu.dma_semaphore, #tpu.memory_space<semaphore_mem>>
    %420 = tpu.memref_squeeze %419 : memref<1x!tpu.dma_semaphore, #tpu.memory_space<semaphore_mem>> -> memref<!tpu.dma_semaphore, #tpu.memory_space<semaphore_mem>>
    tpu.enqueue_dma source(%417 : memref<1x128xf32, #tpu.memory_space<any>>) target(%418 : memref<1x128xf32, #tpu.memory_space<vmem>>) target_semaphore(%420 : memref<!tpu.dma_semaphore, #tpu.memory_space<semaphore_mem>>)
    %c4_i32_293 = arith.constant 4 : i32
    %421 = arith.addi %0, %c4_i32_293 : i32
    %422 = arith.index_cast %421 : i32 to index
    %c7_294 = arith.constant 7 : index
    %423 = memref.load %arg1[%422, %c7_294] : memref<8x8xi32, #tpu.memory_space<smem>>
    %c0_i32_295 = arith.constant 0 : i32
    %c0_i32_296 = arith.constant 0 : i32
    %424 = tpu.memref_slice %arg2[%423, %c0_i32_296] : memref<64x128xf32, #tpu.memory_space<any>> -> memref<1x128xf32, #tpu.memory_space<any>>
    %c60_i32 = arith.constant 60 : i32
    %c0_i32_297 = arith.constant 0 : i32
    %425 = tpu.memref_slice %arg4[%c60_i32, %c0_i32_297] : memref<64x128xf32, #tpu.memory_space<vmem>> -> memref<1x128xf32, #tpu.memory_space<vmem>>
    %426 = tpu.memref_slice %arg5[%c0_i32_295] : memref<1x!tpu.dma_semaphore, #tpu.memory_space<semaphore_mem>> -> memref<1x!tpu.dma_semaphore, #tpu.memory_space<semaphore_mem>>
    %427 = tpu.memref_squeeze %426 : memref<1x!tpu.dma_semaphore, #tpu.memory_space<semaphore_mem>> -> memref<!tpu.dma_semaphore, #tpu.memory_space<semaphore_mem>>
    tpu.enqueue_dma source(%424 : memref<1x128xf32, #tpu.memory_space<any>>) target(%425 : memref<1x128xf32, #tpu.memory_space<vmem>>) target_semaphore(%427 : memref<!tpu.dma_semaphore, #tpu.memory_space<semaphore_mem>>)
    %c5_i32_298 = arith.constant 5 : i32
    %428 = arith.addi %0, %c5_i32_298 : i32
    %429 = arith.index_cast %428 : i32 to index
    %c7_299 = arith.constant 7 : index
    %430 = memref.load %arg1[%429, %c7_299] : memref<8x8xi32, #tpu.memory_space<smem>>
    %c0_i32_300 = arith.constant 0 : i32
    %c0_i32_301 = arith.constant 0 : i32
    %431 = tpu.memref_slice %arg2[%430, %c0_i32_301] : memref<64x128xf32, #tpu.memory_space<any>> -> memref<1x128xf32, #tpu.memory_space<any>>
    %c61_i32 = arith.constant 61 : i32
    %c0_i32_302 = arith.constant 0 : i32
    %432 = tpu.memref_slice %arg4[%c61_i32, %c0_i32_302] : memref<64x128xf32, #tpu.memory_space<vmem>> -> memref<1x128xf32, #tpu.memory_space<vmem>>
    %433 = tpu.memref_slice %arg5[%c0_i32_300] : memref<1x!tpu.dma_semaphore, #tpu.memory_space<semaphore_mem>> -> memref<1x!tpu.dma_semaphore, #tpu.memory_space<semaphore_mem>>
    %434 = tpu.memref_squeeze %433 : memref<1x!tpu.dma_semaphore, #tpu.memory_space<semaphore_mem>> -> memref<!tpu.dma_semaphore, #tpu.memory_space<semaphore_mem>>
    tpu.enqueue_dma source(%431 : memref<1x128xf32, #tpu.memory_space<any>>) target(%432 : memref<1x128xf32, #tpu.memory_space<vmem>>) target_semaphore(%434 : memref<!tpu.dma_semaphore, #tpu.memory_space<semaphore_mem>>)
    %c6_i32_303 = arith.constant 6 : i32
    %435 = arith.addi %0, %c6_i32_303 : i32
    %436 = arith.index_cast %435 : i32 to index
    %c7_304 = arith.constant 7 : index
    %437 = memref.load %arg1[%436, %c7_304] : memref<8x8xi32, #tpu.memory_space<smem>>
    %c0_i32_305 = arith.constant 0 : i32
    %c0_i32_306 = arith.constant 0 : i32
    %438 = tpu.memref_slice %arg2[%437, %c0_i32_306] : memref<64x128xf32, #tpu.memory_space<any>> -> memref<1x128xf32, #tpu.memory_space<any>>
    %c62_i32 = arith.constant 62 : i32
    %c0_i32_307 = arith.constant 0 : i32
    %439 = tpu.memref_slice %arg4[%c62_i32, %c0_i32_307] : memref<64x128xf32, #tpu.memory_space<vmem>> -> memref<1x128xf32, #tpu.memory_space<vmem>>
    %440 = tpu.memref_slice %arg5[%c0_i32_305] : memref<1x!tpu.dma_semaphore, #tpu.memory_space<semaphore_mem>> -> memref<1x!tpu.dma_semaphore, #tpu.memory_space<semaphore_mem>>
    %441 = tpu.memref_squeeze %440 : memref<1x!tpu.dma_semaphore, #tpu.memory_space<semaphore_mem>> -> memref<!tpu.dma_semaphore, #tpu.memory_space<semaphore_mem>>
    tpu.enqueue_dma source(%438 : memref<1x128xf32, #tpu.memory_space<any>>) target(%439 : memref<1x128xf32, #tpu.memory_space<vmem>>) target_semaphore(%441 : memref<!tpu.dma_semaphore, #tpu.memory_space<semaphore_mem>>)
    %c7_i32_308 = arith.constant 7 : i32
    %442 = arith.addi %0, %c7_i32_308 : i32
    %443 = arith.index_cast %442 : i32 to index
    %c7_309 = arith.constant 7 : index
    %444 = memref.load %arg1[%443, %c7_309] : memref<8x8xi32, #tpu.memory_space<smem>>
    %c0_i32_310 = arith.constant 0 : i32
    %c0_i32_311 = arith.constant 0 : i32
    %445 = tpu.memref_slice %arg2[%444, %c0_i32_311] : memref<64x128xf32, #tpu.memory_space<any>> -> memref<1x128xf32, #tpu.memory_space<any>>
    %c63_i32 = arith.constant 63 : i32
    %c0_i32_312 = arith.constant 0 : i32
    %446 = tpu.memref_slice %arg4[%c63_i32, %c0_i32_312] : memref<64x128xf32, #tpu.memory_space<vmem>> -> memref<1x128xf32, #tpu.memory_space<vmem>>
    %447 = tpu.memref_slice %arg5[%c0_i32_310] : memref<1x!tpu.dma_semaphore, #tpu.memory_space<semaphore_mem>> -> memref<1x!tpu.dma_semaphore, #tpu.memory_space<semaphore_mem>>
    %448 = tpu.memref_squeeze %447 : memref<1x!tpu.dma_semaphore, #tpu.memory_space<semaphore_mem>> -> memref<!tpu.dma_semaphore, #tpu.memory_space<semaphore_mem>>
    tpu.enqueue_dma source(%445 : memref<1x128xf32, #tpu.memory_space<any>>) target(%446 : memref<1x128xf32, #tpu.memory_space<vmem>>) target_semaphore(%448 : memref<!tpu.dma_semaphore, #tpu.memory_space<semaphore_mem>>)
    %c0_i32_313 = arith.constant 0 : i32
    %c0_i32_314 = arith.constant 0 : i32
    %c0_i32_315 = arith.constant 0 : i32
    %449 = tpu.memref_slice %arg2[%c0_i32_314, %c0_i32_315] : memref<64x128xf32, #tpu.memory_space<any>> -> memref<1x128xf32, #tpu.memory_space<any>>
    %c0_i32_316 = arith.constant 0 : i32
    %c0_i32_317 = arith.constant 0 : i32
    %450 = tpu.memref_slice %arg4[%c0_i32_316, %c0_i32_317] : memref<64x128xf32, #tpu.memory_space<vmem>> -> memref<1x128xf32, #tpu.memory_space<vmem>>
    %451 = tpu.memref_slice %arg5[%c0_i32_313] : memref<1x!tpu.dma_semaphore, #tpu.memory_space<semaphore_mem>> -> memref<1x!tpu.dma_semaphore, #tpu.memory_space<semaphore_mem>>
    %452 = tpu.memref_squeeze %451 : memref<1x!tpu.dma_semaphore, #tpu.memory_space<semaphore_mem>> -> memref<!tpu.dma_semaphore, #tpu.memory_space<semaphore_mem>>
    tpu.wait_dma2 semaphore(%452 : memref<!tpu.dma_semaphore, #tpu.memory_space<semaphore_mem>>) src(%449 : memref<1x128xf32, #tpu.memory_space<any>>) dst(%450 : memref<1x128xf32, #tpu.memory_space<vmem>>)
    %c0_i32_318 = arith.constant 0 : i32
    %c0_i32_319 = arith.constant 0 : i32
    %c0_i32_320 = arith.constant 0 : i32
    %453 = tpu.memref_slice %arg2[%c0_i32_319, %c0_i32_320] : memref<64x128xf32, #tpu.memory_space<any>> -> memref<1x128xf32, #tpu.memory_space<any>>
    %c1_i32_321 = arith.constant 1 : i32
    %c0_i32_322 = arith.constant 0 : i32
    %454 = tpu.memref_slice %arg4[%c1_i32_321, %c0_i32_322] : memref<64x128xf32, #tpu.memory_space<vmem>> -> memref<1x128xf32, #tpu.memory_space<vmem>>
    %455 = tpu.memref_slice %arg5[%c0_i32_318] : memref<1x!tpu.dma_semaphore, #tpu.memory_space<semaphore_mem>> -> memref<1x!tpu.dma_semaphore, #tpu.memory_space<semaphore_mem>>
    %456 = tpu.memref_squeeze %455 : memref<1x!tpu.dma_semaphore, #tpu.memory_space<semaphore_mem>> -> memref<!tpu.dma_semaphore, #tpu.memory_space<semaphore_mem>>
    tpu.wait_dma2 semaphore(%456 : memref<!tpu.dma_semaphore, #tpu.memory_space<semaphore_mem>>) src(%453 : memref<1x128xf32, #tpu.memory_space<any>>) dst(%454 : memref<1x128xf32, #tpu.memory_space<vmem>>)
    %c0_i32_323 = arith.constant 0 : i32
    %c0_i32_324 = arith.constant 0 : i32
    %c0_i32_325 = arith.constant 0 : i32
    %457 = tpu.memref_slice %arg2[%c0_i32_324, %c0_i32_325] : memref<64x128xf32, #tpu.memory_space<any>> -> memref<1x128xf32, #tpu.memory_space<any>>
    %c2_i32_326 = arith.constant 2 : i32
    %c0_i32_327 = arith.constant 0 : i32
    %458 = tpu.memref_slice %arg4[%c2_i32_326, %c0_i32_327] : memref<64x128xf32, #tpu.memory_space<vmem>> -> memref<1x128xf32, #tpu.memory_space<vmem>>
    %459 = tpu.memref_slice %arg5[%c0_i32_323] : memref<1x!tpu.dma_semaphore, #tpu.memory_space<semaphore_mem>> -> memref<1x!tpu.dma_semaphore, #tpu.memory_space<semaphore_mem>>
    %460 = tpu.memref_squeeze %459 : memref<1x!tpu.dma_semaphore, #tpu.memory_space<semaphore_mem>> -> memref<!tpu.dma_semaphore, #tpu.memory_space<semaphore_mem>>
    tpu.wait_dma2 semaphore(%460 : memref<!tpu.dma_semaphore, #tpu.memory_space<semaphore_mem>>) src(%457 : memref<1x128xf32, #tpu.memory_space<any>>) dst(%458 : memref<1x128xf32, #tpu.memory_space<vmem>>)
    %c0_i32_328 = arith.constant 0 : i32
    %c0_i32_329 = arith.constant 0 : i32
    %c0_i32_330 = arith.constant 0 : i32
    %461 = tpu.memref_slice %arg2[%c0_i32_329, %c0_i32_330] : memref<64x128xf32, #tpu.memory_space<any>> -> memref<1x128xf32, #tpu.memory_space<any>>
    %c3_i32_331 = arith.constant 3 : i32
    %c0_i32_332 = arith.constant 0 : i32
    %462 = tpu.memref_slice %arg4[%c3_i32_331, %c0_i32_332] : memref<64x128xf32, #tpu.memory_space<vmem>> -> memref<1x128xf32, #tpu.memory_space<vmem>>
    %463 = tpu.memref_slice %arg5[%c0_i32_328] : memref<1x!tpu.dma_semaphore, #tpu.memory_space<semaphore_mem>> -> memref<1x!tpu.dma_semaphore, #tpu.memory_space<semaphore_mem>>
    %464 = tpu.memref_squeeze %463 : memref<1x!tpu.dma_semaphore, #tpu.memory_space<semaphore_mem>> -> memref<!tpu.dma_semaphore, #tpu.memory_space<semaphore_mem>>
    tpu.wait_dma2 semaphore(%464 : memref<!tpu.dma_semaphore, #tpu.memory_space<semaphore_mem>>) src(%461 : memref<1x128xf32, #tpu.memory_space<any>>) dst(%462 : memref<1x128xf32, #tpu.memory_space<vmem>>)
    %c0_i32_333 = arith.constant 0 : i32
    %c0_i32_334 = arith.constant 0 : i32
    %c0_i32_335 = arith.constant 0 : i32
    %465 = tpu.memref_slice %arg2[%c0_i32_334, %c0_i32_335] : memref<64x128xf32, #tpu.memory_space<any>> -> memref<1x128xf32, #tpu.memory_space<any>>
    %c4_i32_336 = arith.constant 4 : i32
    %c0_i32_337 = arith.constant 0 : i32
    %466 = tpu.memref_slice %arg4[%c4_i32_336, %c0_i32_337] : memref<64x128xf32, #tpu.memory_space<vmem>> -> memref<1x128xf32, #tpu.memory_space<vmem>>
    %467 = tpu.memref_slice %arg5[%c0_i32_333] : memref<1x!tpu.dma_semaphore, #tpu.memory_space<semaphore_mem>> -> memref<1x!tpu.dma_semaphore, #tpu.memory_space<semaphore_mem>>
    %468 = tpu.memref_squeeze %467 : memref<1x!tpu.dma_semaphore, #tpu.memory_space<semaphore_mem>> -> memref<!tpu.dma_semaphore, #tpu.memory_space<semaphore_mem>>
    tpu.wait_dma2 semaphore(%468 : memref<!tpu.dma_semaphore, #tpu.memory_space<semaphore_mem>>) src(%465 : memref<1x128xf32, #tpu.memory_space<any>>) dst(%466 : memref<1x128xf32, #tpu.memory_space<vmem>>)
    %c0_i32_338 = arith.constant 0 : i32
    %c0_i32_339 = arith.constant 0 : i32
    %c0_i32_340 = arith.constant 0 : i32
    %469 = tpu.memref_slice %arg2[%c0_i32_339, %c0_i32_340] : memref<64x128xf32, #tpu.memory_space<any>> -> memref<1x128xf32, #tpu.memory_space<any>>
    %c5_i32_341 = arith.constant 5 : i32
    %c0_i32_342 = arith.constant 0 : i32
    %470 = tpu.memref_slice %arg4[%c5_i32_341, %c0_i32_342] : memref<64x128xf32, #tpu.memory_space<vmem>> -> memref<1x128xf32, #tpu.memory_space<vmem>>
    %471 = tpu.memref_slice %arg5[%c0_i32_338] : memref<1x!tpu.dma_semaphore, #tpu.memory_space<semaphore_mem>> -> memref<1x!tpu.dma_semaphore, #tpu.memory_space<semaphore_mem>>
    %472 = tpu.memref_squeeze %471 : memref<1x!tpu.dma_semaphore, #tpu.memory_space<semaphore_mem>> -> memref<!tpu.dma_semaphore, #tpu.memory_space<semaphore_mem>>
    tpu.wait_dma2 semaphore(%472 : memref<!tpu.dma_semaphore, #tpu.memory_space<semaphore_mem>>) src(%469 : memref<1x128xf32, #tpu.memory_space<any>>) dst(%470 : memref<1x128xf32, #tpu.memory_space<vmem>>)
    %c0_i32_343 = arith.constant 0 : i32
    %c0_i32_344 = arith.constant 0 : i32
    %c0_i32_345 = arith.constant 0 : i32
    %473 = tpu.memref_slice %arg2[%c0_i32_344, %c0_i32_345] : memref<64x128xf32, #tpu.memory_space<any>> -> memref<1x128xf32, #tpu.memory_space<any>>
    %c6_i32_346 = arith.constant 6 : i32
    %c0_i32_347 = arith.constant 0 : i32
    %474 = tpu.memref_slice %arg4[%c6_i32_346, %c0_i32_347] : memref<64x128xf32, #tpu.memory_space<vmem>> -> memref<1x128xf32, #tpu.memory_space<vmem>>
    %475 = tpu.memref_slice %arg5[%c0_i32_343] : memref<1x!tpu.dma_semaphore, #tpu.memory_space<semaphore_mem>> -> memref<1x!tpu.dma_semaphore, #tpu.memory_space<semaphore_mem>>
    %476 = tpu.memref_squeeze %475 : memref<1x!tpu.dma_semaphore, #tpu.memory_space<semaphore_mem>> -> memref<!tpu.dma_semaphore, #tpu.memory_space<semaphore_mem>>
    tpu.wait_dma2 semaphore(%476 : memref<!tpu.dma_semaphore, #tpu.memory_space<semaphore_mem>>) src(%473 : memref<1x128xf32, #tpu.memory_space<any>>) dst(%474 : memref<1x128xf32, #tpu.memory_space<vmem>>)
    %c0_i32_348 = arith.constant 0 : i32
    %c0_i32_349 = arith.constant 0 : i32
    %c0_i32_350 = arith.constant 0 : i32
    %477 = tpu.memref_slice %arg2[%c0_i32_349, %c0_i32_350] : memref<64x128xf32, #tpu.memory_space<any>> -> memref<1x128xf32, #tpu.memory_space<any>>
    %c7_i32_351 = arith.constant 7 : i32
    %c0_i32_352 = arith.constant 0 : i32
    %478 = tpu.memref_slice %arg4[%c7_i32_351, %c0_i32_352] : memref<64x128xf32, #tpu.memory_space<vmem>> -> memref<1x128xf32, #tpu.memory_space<vmem>>
    %479 = tpu.memref_slice %arg5[%c0_i32_348] : memref<1x!tpu.dma_semaphore, #tpu.memory_space<semaphore_mem>> -> memref<1x!tpu.dma_semaphore, #tpu.memory_space<semaphore_mem>>
    %480 = tpu.memref_squeeze %479 : memref<1x!tpu.dma_semaphore, #tpu.memory_space<semaphore_mem>> -> memref<!tpu.dma_semaphore, #tpu.memory_space<semaphore_mem>>
    tpu.wait_dma2 semaphore(%480 : memref<!tpu.dma_semaphore, #tpu.memory_space<semaphore_mem>>) src(%477 : memref<1x128xf32, #tpu.memory_space<any>>) dst(%478 : memref<1x128xf32, #tpu.memory_space<vmem>>)
    %c0_i32_353 = arith.constant 0 : i32
    %c0_i32_354 = arith.constant 0 : i32
    %c0_i32_355 = arith.constant 0 : i32
    %481 = tpu.memref_slice %arg2[%c0_i32_354, %c0_i32_355] : memref<64x128xf32, #tpu.memory_space<any>> -> memref<1x128xf32, #tpu.memory_space<any>>
    %c8_i32_356 = arith.constant 8 : i32
    %c0_i32_357 = arith.constant 0 : i32
    %482 = tpu.memref_slice %arg4[%c8_i32_356, %c0_i32_357] : memref<64x128xf32, #tpu.memory_space<vmem>> -> memref<1x128xf32, #tpu.memory_space<vmem>>
    %483 = tpu.memref_slice %arg5[%c0_i32_353] : memref<1x!tpu.dma_semaphore, #tpu.memory_space<semaphore_mem>> -> memref<1x!tpu.dma_semaphore, #tpu.memory_space<semaphore_mem>>
    %484 = tpu.memref_squeeze %483 : memref<1x!tpu.dma_semaphore, #tpu.memory_space<semaphore_mem>> -> memref<!tpu.dma_semaphore, #tpu.memory_space<semaphore_mem>>
    tpu.wait_dma2 semaphore(%484 : memref<!tpu.dma_semaphore, #tpu.memory_space<semaphore_mem>>) src(%481 : memref<1x128xf32, #tpu.memory_space<any>>) dst(%482 : memref<1x128xf32, #tpu.memory_space<vmem>>)
    %c0_i32_358 = arith.constant 0 : i32
    %c0_i32_359 = arith.constant 0 : i32
    %c0_i32_360 = arith.constant 0 : i32
    %485 = tpu.memref_slice %arg2[%c0_i32_359, %c0_i32_360] : memref<64x128xf32, #tpu.memory_space<any>> -> memref<1x128xf32, #tpu.memory_space<any>>
    %c9_i32_361 = arith.constant 9 : i32
    %c0_i32_362 = arith.constant 0 : i32
    %486 = tpu.memref_slice %arg4[%c9_i32_361, %c0_i32_362] : memref<64x128xf32, #tpu.memory_space<vmem>> -> memref<1x128xf32, #tpu.memory_space<vmem>>
    %487 = tpu.memref_slice %arg5[%c0_i32_358] : memref<1x!tpu.dma_semaphore, #tpu.memory_space<semaphore_mem>> -> memref<1x!tpu.dma_semaphore, #tpu.memory_space<semaphore_mem>>
    %488 = tpu.memref_squeeze %487 : memref<1x!tpu.dma_semaphore, #tpu.memory_space<semaphore_mem>> -> memref<!tpu.dma_semaphore, #tpu.memory_space<semaphore_mem>>
    tpu.wait_dma2 semaphore(%488 : memref<!tpu.dma_semaphore, #tpu.memory_space<semaphore_mem>>) src(%485 : memref<1x128xf32, #tpu.memory_space<any>>) dst(%486 : memref<1x128xf32, #tpu.memory_space<vmem>>)
    %c0_i32_363 = arith.constant 0 : i32
    %c0_i32_364 = arith.constant 0 : i32
    %c0_i32_365 = arith.constant 0 : i32
    %489 = tpu.memref_slice %arg2[%c0_i32_364, %c0_i32_365] : memref<64x128xf32, #tpu.memory_space<any>> -> memref<1x128xf32, #tpu.memory_space<any>>
    %c10_i32_366 = arith.constant 10 : i32
    %c0_i32_367 = arith.constant 0 : i32
    %490 = tpu.memref_slice %arg4[%c10_i32_366, %c0_i32_367] : memref<64x128xf32, #tpu.memory_space<vmem>> -> memref<1x128xf32, #tpu.memory_space<vmem>>
    %491 = tpu.memref_slice %arg5[%c0_i32_363] : memref<1x!tpu.dma_semaphore, #tpu.memory_space<semaphore_mem>> -> memref<1x!tpu.dma_semaphore, #tpu.memory_space<semaphore_mem>>
    %492 = tpu.memref_squeeze %491 : memref<1x!tpu.dma_semaphore, #tpu.memory_space<semaphore_mem>> -> memref<!tpu.dma_semaphore, #tpu.memory_space<semaphore_mem>>
    tpu.wait_dma2 semaphore(%492 : memref<!tpu.dma_semaphore, #tpu.memory_space<semaphore_mem>>) src(%489 : memref<1x128xf32, #tpu.memory_space<any>>) dst(%490 : memref<1x128xf32, #tpu.memory_space<vmem>>)
    %c0_i32_368 = arith.constant 0 : i32
    %c0_i32_369 = arith.constant 0 : i32
    %c0_i32_370 = arith.constant 0 : i32
    %493 = tpu.memref_slice %arg2[%c0_i32_369, %c0_i32_370] : memref<64x128xf32, #tpu.memory_space<any>> -> memref<1x128xf32, #tpu.memory_space<any>>
    %c11_i32_371 = arith.constant 11 : i32
    %c0_i32_372 = arith.constant 0 : i32
    %494 = tpu.memref_slice %arg4[%c11_i32_371, %c0_i32_372] : memref<64x128xf32, #tpu.memory_space<vmem>> -> memref<1x128xf32, #tpu.memory_space<vmem>>
    %495 = tpu.memref_slice %arg5[%c0_i32_368] : memref<1x!tpu.dma_semaphore, #tpu.memory_space<semaphore_mem>> -> memref<1x!tpu.dma_semaphore, #tpu.memory_space<semaphore_mem>>
    %496 = tpu.memref_squeeze %495 : memref<1x!tpu.dma_semaphore, #tpu.memory_space<semaphore_mem>> -> memref<!tpu.dma_semaphore, #tpu.memory_space<semaphore_mem>>
    tpu.wait_dma2 semaphore(%496 : memref<!tpu.dma_semaphore, #tpu.memory_space<semaphore_mem>>) src(%493 : memref<1x128xf32, #tpu.memory_space<any>>) dst(%494 : memref<1x128xf32, #tpu.memory_space<vmem>>)
    %c0_i32_373 = arith.constant 0 : i32
    %c0_i32_374 = arith.constant 0 : i32
    %c0_i32_375 = arith.constant 0 : i32
    %497 = tpu.memref_slice %arg2[%c0_i32_374, %c0_i32_375] : memref<64x128xf32, #tpu.memory_space<any>> -> memref<1x128xf32, #tpu.memory_space<any>>
    %c12_i32_376 = arith.constant 12 : i32
    %c0_i32_377 = arith.constant 0 : i32
    %498 = tpu.memref_slice %arg4[%c12_i32_376, %c0_i32_377] : memref<64x128xf32, #tpu.memory_space<vmem>> -> memref<1x128xf32, #tpu.memory_space<vmem>>
    %499 = tpu.memref_slice %arg5[%c0_i32_373] : memref<1x!tpu.dma_semaphore, #tpu.memory_space<semaphore_mem>> -> memref<1x!tpu.dma_semaphore, #tpu.memory_space<semaphore_mem>>
    %500 = tpu.memref_squeeze %499 : memref<1x!tpu.dma_semaphore, #tpu.memory_space<semaphore_mem>> -> memref<!tpu.dma_semaphore, #tpu.memory_space<semaphore_mem>>
    tpu.wait_dma2 semaphore(%500 : memref<!tpu.dma_semaphore, #tpu.memory_space<semaphore_mem>>) src(%497 : memref<1x128xf32, #tpu.memory_space<any>>) dst(%498 : memref<1x128xf32, #tpu.memory_space<vmem>>)
    %c0_i32_378 = arith.constant 0 : i32
    %c0_i32_379 = arith.constant 0 : i32
    %c0_i32_380 = arith.constant 0 : i32
    %501 = tpu.memref_slice %arg2[%c0_i32_379, %c0_i32_380] : memref<64x128xf32, #tpu.memory_space<any>> -> memref<1x128xf32, #tpu.memory_space<any>>
    %c13_i32_381 = arith.constant 13 : i32
    %c0_i32_382 = arith.constant 0 : i32
    %502 = tpu.memref_slice %arg4[%c13_i32_381, %c0_i32_382] : memref<64x128xf32, #tpu.memory_space<vmem>> -> memref<1x128xf32, #tpu.memory_space<vmem>>
    %503 = tpu.memref_slice %arg5[%c0_i32_378] : memref<1x!tpu.dma_semaphore, #tpu.memory_space<semaphore_mem>> -> memref<1x!tpu.dma_semaphore, #tpu.memory_space<semaphore_mem>>
    %504 = tpu.memref_squeeze %503 : memref<1x!tpu.dma_semaphore, #tpu.memory_space<semaphore_mem>> -> memref<!tpu.dma_semaphore, #tpu.memory_space<semaphore_mem>>
    tpu.wait_dma2 semaphore(%504 : memref<!tpu.dma_semaphore, #tpu.memory_space<semaphore_mem>>) src(%501 : memref<1x128xf32, #tpu.memory_space<any>>) dst(%502 : memref<1x128xf32, #tpu.memory_space<vmem>>)
    %c0_i32_383 = arith.constant 0 : i32
    %c0_i32_384 = arith.constant 0 : i32
    %c0_i32_385 = arith.constant 0 : i32
    %505 = tpu.memref_slice %arg2[%c0_i32_384, %c0_i32_385] : memref<64x128xf32, #tpu.memory_space<any>> -> memref<1x128xf32, #tpu.memory_space<any>>
    %c14_i32_386 = arith.constant 14 : i32
    %c0_i32_387 = arith.constant 0 : i32
    %506 = tpu.memref_slice %arg4[%c14_i32_386, %c0_i32_387] : memref<64x128xf32, #tpu.memory_space<vmem>> -> memref<1x128xf32, #tpu.memory_space<vmem>>
    %507 = tpu.memref_slice %arg5[%c0_i32_383] : memref<1x!tpu.dma_semaphore, #tpu.memory_space<semaphore_mem>> -> memref<1x!tpu.dma_semaphore, #tpu.memory_space<semaphore_mem>>
    %508 = tpu.memref_squeeze %507 : memref<1x!tpu.dma_semaphore, #tpu.memory_space<semaphore_mem>> -> memref<!tpu.dma_semaphore, #tpu.memory_space<semaphore_mem>>
    tpu.wait_dma2 semaphore(%508 : memref<!tpu.dma_semaphore, #tpu.memory_space<semaphore_mem>>) src(%505 : memref<1x128xf32, #tpu.memory_space<any>>) dst(%506 : memref<1x128xf32, #tpu.memory_space<vmem>>)
    %c0_i32_388 = arith.constant 0 : i32
    %c0_i32_389 = arith.constant 0 : i32
    %c0_i32_390 = arith.constant 0 : i32
    %509 = tpu.memref_slice %arg2[%c0_i32_389, %c0_i32_390] : memref<64x128xf32, #tpu.memory_space<any>> -> memref<1x128xf32, #tpu.memory_space<any>>
    %c15_i32_391 = arith.constant 15 : i32
    %c0_i32_392 = arith.constant 0 : i32
    %510 = tpu.memref_slice %arg4[%c15_i32_391, %c0_i32_392] : memref<64x128xf32, #tpu.memory_space<vmem>> -> memref<1x128xf32, #tpu.memory_space<vmem>>
    %511 = tpu.memref_slice %arg5[%c0_i32_388] : memref<1x!tpu.dma_semaphore, #tpu.memory_space<semaphore_mem>> -> memref<1x!tpu.dma_semaphore, #tpu.memory_space<semaphore_mem>>
    %512 = tpu.memref_squeeze %511 : memref<1x!tpu.dma_semaphore, #tpu.memory_space<semaphore_mem>> -> memref<!tpu.dma_semaphore, #tpu.memory_space<semaphore_mem>>
    tpu.wait_dma2 semaphore(%512 : memref<!tpu.dma_semaphore, #tpu.memory_space<semaphore_mem>>) src(%509 : memref<1x128xf32, #tpu.memory_space<any>>) dst(%510 : memref<1x128xf32, #tpu.memory_space<vmem>>)
    %c0_i32_393 = arith.constant 0 : i32
    %c0_i32_394 = arith.constant 0 : i32
    %c0_i32_395 = arith.constant 0 : i32
    %513 = tpu.memref_slice %arg2[%c0_i32_394, %c0_i32_395] : memref<64x128xf32, #tpu.memory_space<any>> -> memref<1x128xf32, #tpu.memory_space<any>>
    %c16_i32_396 = arith.constant 16 : i32
    %c0_i32_397 = arith.constant 0 : i32
    %514 = tpu.memref_slice %arg4[%c16_i32_396, %c0_i32_397] : memref<64x128xf32, #tpu.memory_space<vmem>> -> memref<1x128xf32, #tpu.memory_space<vmem>>
    %515 = tpu.memref_slice %arg5[%c0_i32_393] : memref<1x!tpu.dma_semaphore, #tpu.memory_space<semaphore_mem>> -> memref<1x!tpu.dma_semaphore, #tpu.memory_space<semaphore_mem>>
    %516 = tpu.memref_squeeze %515 : memref<1x!tpu.dma_semaphore, #tpu.memory_space<semaphore_mem>> -> memref<!tpu.dma_semaphore, #tpu.memory_space<semaphore_mem>>
    tpu.wait_dma2 semaphore(%516 : memref<!tpu.dma_semaphore, #tpu.memory_space<semaphore_mem>>) src(%513 : memref<1x128xf32, #tpu.memory_space<any>>) dst(%514 : memref<1x128xf32, #tpu.memory_space<vmem>>)
    %c0_i32_398 = arith.constant 0 : i32
    %c0_i32_399 = arith.constant 0 : i32
    %c0_i32_400 = arith.constant 0 : i32
    %517 = tpu.memref_slice %arg2[%c0_i32_399, %c0_i32_400] : memref<64x128xf32, #tpu.memory_space<any>> -> memref<1x128xf32, #tpu.memory_space<any>>
    %c17_i32_401 = arith.constant 17 : i32
    %c0_i32_402 = arith.constant 0 : i32
    %518 = tpu.memref_slice %arg4[%c17_i32_401, %c0_i32_402] : memref<64x128xf32, #tpu.memory_space<vmem>> -> memref<1x128xf32, #tpu.memory_space<vmem>>
    %519 = tpu.memref_slice %arg5[%c0_i32_398] : memref<1x!tpu.dma_semaphore, #tpu.memory_space<semaphore_mem>> -> memref<1x!tpu.dma_semaphore, #tpu.memory_space<semaphore_mem>>
    %520 = tpu.memref_squeeze %519 : memref<1x!tpu.dma_semaphore, #tpu.memory_space<semaphore_mem>> -> memref<!tpu.dma_semaphore, #tpu.memory_space<semaphore_mem>>
    tpu.wait_dma2 semaphore(%520 : memref<!tpu.dma_semaphore, #tpu.memory_space<semaphore_mem>>) src(%517 : memref<1x128xf32, #tpu.memory_space<any>>) dst(%518 : memref<1x128xf32, #tpu.memory_space<vmem>>)
    %c0_i32_403 = arith.constant 0 : i32
    %c0_i32_404 = arith.constant 0 : i32
    %c0_i32_405 = arith.constant 0 : i32
    %521 = tpu.memref_slice %arg2[%c0_i32_404, %c0_i32_405] : memref<64x128xf32, #tpu.memory_space<any>> -> memref<1x128xf32, #tpu.memory_space<any>>
    %c18_i32_406 = arith.constant 18 : i32
    %c0_i32_407 = arith.constant 0 : i32
    %522 = tpu.memref_slice %arg4[%c18_i32_406, %c0_i32_407] : memref<64x128xf32, #tpu.memory_space<vmem>> -> memref<1x128xf32, #tpu.memory_space<vmem>>
    %523 = tpu.memref_slice %arg5[%c0_i32_403] : memref<1x!tpu.dma_semaphore, #tpu.memory_space<semaphore_mem>> -> memref<1x!tpu.dma_semaphore, #tpu.memory_space<semaphore_mem>>
    %524 = tpu.memref_squeeze %523 : memref<1x!tpu.dma_semaphore, #tpu.memory_space<semaphore_mem>> -> memref<!tpu.dma_semaphore, #tpu.memory_space<semaphore_mem>>
    tpu.wait_dma2 semaphore(%524 : memref<!tpu.dma_semaphore, #tpu.memory_space<semaphore_mem>>) src(%521 : memref<1x128xf32, #tpu.memory_space<any>>) dst(%522 : memref<1x128xf32, #tpu.memory_space<vmem>>)
    %c0_i32_408 = arith.constant 0 : i32
    %c0_i32_409 = arith.constant 0 : i32
    %c0_i32_410 = arith.constant 0 : i32
    %525 = tpu.memref_slice %arg2[%c0_i32_409, %c0_i32_410] : memref<64x128xf32, #tpu.memory_space<any>> -> memref<1x128xf32, #tpu.memory_space<any>>
    %c19_i32_411 = arith.constant 19 : i32
    %c0_i32_412 = arith.constant 0 : i32
    %526 = tpu.memref_slice %arg4[%c19_i32_411, %c0_i32_412] : memref<64x128xf32, #tpu.memory_space<vmem>> -> memref<1x128xf32, #tpu.memory_space<vmem>>
    %527 = tpu.memref_slice %arg5[%c0_i32_408] : memref<1x!tpu.dma_semaphore, #tpu.memory_space<semaphore_mem>> -> memref<1x!tpu.dma_semaphore, #tpu.memory_space<semaphore_mem>>
    %528 = tpu.memref_squeeze %527 : memref<1x!tpu.dma_semaphore, #tpu.memory_space<semaphore_mem>> -> memref<!tpu.dma_semaphore, #tpu.memory_space<semaphore_mem>>
    tpu.wait_dma2 semaphore(%528 : memref<!tpu.dma_semaphore, #tpu.memory_space<semaphore_mem>>) src(%525 : memref<1x128xf32, #tpu.memory_space<any>>) dst(%526 : memref<1x128xf32, #tpu.memory_space<vmem>>)
    %c0_i32_413 = arith.constant 0 : i32
    %c0_i32_414 = arith.constant 0 : i32
    %c0_i32_415 = arith.constant 0 : i32
    %529 = tpu.memref_slice %arg2[%c0_i32_414, %c0_i32_415] : memref<64x128xf32, #tpu.memory_space<any>> -> memref<1x128xf32, #tpu.memory_space<any>>
    %c20_i32_416 = arith.constant 20 : i32
    %c0_i32_417 = arith.constant 0 : i32
    %530 = tpu.memref_slice %arg4[%c20_i32_416, %c0_i32_417] : memref<64x128xf32, #tpu.memory_space<vmem>> -> memref<1x128xf32, #tpu.memory_space<vmem>>
    %531 = tpu.memref_slice %arg5[%c0_i32_413] : memref<1x!tpu.dma_semaphore, #tpu.memory_space<semaphore_mem>> -> memref<1x!tpu.dma_semaphore, #tpu.memory_space<semaphore_mem>>
    %532 = tpu.memref_squeeze %531 : memref<1x!tpu.dma_semaphore, #tpu.memory_space<semaphore_mem>> -> memref<!tpu.dma_semaphore, #tpu.memory_space<semaphore_mem>>
    tpu.wait_dma2 semaphore(%532 : memref<!tpu.dma_semaphore, #tpu.memory_space<semaphore_mem>>) src(%529 : memref<1x128xf32, #tpu.memory_space<any>>) dst(%530 : memref<1x128xf32, #tpu.memory_space<vmem>>)
    %c0_i32_418 = arith.constant 0 : i32
    %c0_i32_419 = arith.constant 0 : i32
    %c0_i32_420 = arith.constant 0 : i32
    %533 = tpu.memref_slice %arg2[%c0_i32_419, %c0_i32_420] : memref<64x128xf32, #tpu.memory_space<any>> -> memref<1x128xf32, #tpu.memory_space<any>>
    %c21_i32_421 = arith.constant 21 : i32
    %c0_i32_422 = arith.constant 0 : i32
    %534 = tpu.memref_slice %arg4[%c21_i32_421, %c0_i32_422] : memref<64x128xf32, #tpu.memory_space<vmem>> -> memref<1x128xf32, #tpu.memory_space<vmem>>
    %535 = tpu.memref_slice %arg5[%c0_i32_418] : memref<1x!tpu.dma_semaphore, #tpu.memory_space<semaphore_mem>> -> memref<1x!tpu.dma_semaphore, #tpu.memory_space<semaphore_mem>>
    %536 = tpu.memref_squeeze %535 : memref<1x!tpu.dma_semaphore, #tpu.memory_space<semaphore_mem>> -> memref<!tpu.dma_semaphore, #tpu.memory_space<semaphore_mem>>
    tpu.wait_dma2 semaphore(%536 : memref<!tpu.dma_semaphore, #tpu.memory_space<semaphore_mem>>) src(%533 : memref<1x128xf32, #tpu.memory_space<any>>) dst(%534 : memref<1x128xf32, #tpu.memory_space<vmem>>)
    %c0_i32_423 = arith.constant 0 : i32
    %c0_i32_424 = arith.constant 0 : i32
    %c0_i32_425 = arith.constant 0 : i32
    %537 = tpu.memref_slice %arg2[%c0_i32_424, %c0_i32_425] : memref<64x128xf32, #tpu.memory_space<any>> -> memref<1x128xf32, #tpu.memory_space<any>>
    %c22_i32_426 = arith.constant 22 : i32
    %c0_i32_427 = arith.constant 0 : i32
    %538 = tpu.memref_slice %arg4[%c22_i32_426, %c0_i32_427] : memref<64x128xf32, #tpu.memory_space<vmem>> -> memref<1x128xf32, #tpu.memory_space<vmem>>
    %539 = tpu.memref_slice %arg5[%c0_i32_423] : memref<1x!tpu.dma_semaphore, #tpu.memory_space<semaphore_mem>> -> memref<1x!tpu.dma_semaphore, #tpu.memory_space<semaphore_mem>>
    %540 = tpu.memref_squeeze %539 : memref<1x!tpu.dma_semaphore, #tpu.memory_space<semaphore_mem>> -> memref<!tpu.dma_semaphore, #tpu.memory_space<semaphore_mem>>
    tpu.wait_dma2 semaphore(%540 : memref<!tpu.dma_semaphore, #tpu.memory_space<semaphore_mem>>) src(%537 : memref<1x128xf32, #tpu.memory_space<any>>) dst(%538 : memref<1x128xf32, #tpu.memory_space<vmem>>)
    %c0_i32_428 = arith.constant 0 : i32
    %c0_i32_429 = arith.constant 0 : i32
    %c0_i32_430 = arith.constant 0 : i32
    %541 = tpu.memref_slice %arg2[%c0_i32_429, %c0_i32_430] : memref<64x128xf32, #tpu.memory_space<any>> -> memref<1x128xf32, #tpu.memory_space<any>>
    %c23_i32_431 = arith.constant 23 : i32
    %c0_i32_432 = arith.constant 0 : i32
    %542 = tpu.memref_slice %arg4[%c23_i32_431, %c0_i32_432] : memref<64x128xf32, #tpu.memory_space<vmem>> -> memref<1x128xf32, #tpu.memory_space<vmem>>
    %543 = tpu.memref_slice %arg5[%c0_i32_428] : memref<1x!tpu.dma_semaphore, #tpu.memory_space<semaphore_mem>> -> memref<1x!tpu.dma_semaphore, #tpu.memory_space<semaphore_mem>>
    %544 = tpu.memref_squeeze %543 : memref<1x!tpu.dma_semaphore, #tpu.memory_space<semaphore_mem>> -> memref<!tpu.dma_semaphore, #tpu.memory_space<semaphore_mem>>
    tpu.wait_dma2 semaphore(%544 : memref<!tpu.dma_semaphore, #tpu.memory_space<semaphore_mem>>) src(%541 : memref<1x128xf32, #tpu.memory_space<any>>) dst(%542 : memref<1x128xf32, #tpu.memory_space<vmem>>)
    %c0_i32_433 = arith.constant 0 : i32
    %c0_i32_434 = arith.constant 0 : i32
    %c0_i32_435 = arith.constant 0 : i32
    %545 = tpu.memref_slice %arg2[%c0_i32_434, %c0_i32_435] : memref<64x128xf32, #tpu.memory_space<any>> -> memref<1x128xf32, #tpu.memory_space<any>>
    %c24_i32_436 = arith.constant 24 : i32
    %c0_i32_437 = arith.constant 0 : i32
    %546 = tpu.memref_slice %arg4[%c24_i32_436, %c0_i32_437] : memref<64x128xf32, #tpu.memory_space<vmem>> -> memref<1x128xf32, #tpu.memory_space<vmem>>
    %547 = tpu.memref_slice %arg5[%c0_i32_433] : memref<1x!tpu.dma_semaphore, #tpu.memory_space<semaphore_mem>> -> memref<1x!tpu.dma_semaphore, #tpu.memory_space<semaphore_mem>>
    %548 = tpu.memref_squeeze %547 : memref<1x!tpu.dma_semaphore, #tpu.memory_space<semaphore_mem>> -> memref<!tpu.dma_semaphore, #tpu.memory_space<semaphore_mem>>
    tpu.wait_dma2 semaphore(%548 : memref<!tpu.dma_semaphore, #tpu.memory_space<semaphore_mem>>) src(%545 : memref<1x128xf32, #tpu.memory_space<any>>) dst(%546 : memref<1x128xf32, #tpu.memory_space<vmem>>)
    %c0_i32_438 = arith.constant 0 : i32
    %c0_i32_439 = arith.constant 0 : i32
    %c0_i32_440 = arith.constant 0 : i32
    %549 = tpu.memref_slice %arg2[%c0_i32_439, %c0_i32_440] : memref<64x128xf32, #tpu.memory_space<any>> -> memref<1x128xf32, #tpu.memory_space<any>>
    %c25_i32_441 = arith.constant 25 : i32
    %c0_i32_442 = arith.constant 0 : i32
    %550 = tpu.memref_slice %arg4[%c25_i32_441, %c0_i32_442] : memref<64x128xf32, #tpu.memory_space<vmem>> -> memref<1x128xf32, #tpu.memory_space<vmem>>
    %551 = tpu.memref_slice %arg5[%c0_i32_438] : memref<1x!tpu.dma_semaphore, #tpu.memory_space<semaphore_mem>> -> memref<1x!tpu.dma_semaphore, #tpu.memory_space<semaphore_mem>>
    %552 = tpu.memref_squeeze %551 : memref<1x!tpu.dma_semaphore, #tpu.memory_space<semaphore_mem>> -> memref<!tpu.dma_semaphore, #tpu.memory_space<semaphore_mem>>
    tpu.wait_dma2 semaphore(%552 : memref<!tpu.dma_semaphore, #tpu.memory_space<semaphore_mem>>) src(%549 : memref<1x128xf32, #tpu.memory_space<any>>) dst(%550 : memref<1x128xf32, #tpu.memory_space<vmem>>)
    %c0_i32_443 = arith.constant 0 : i32
    %c0_i32_444 = arith.constant 0 : i32
    %c0_i32_445 = arith.constant 0 : i32
    %553 = tpu.memref_slice %arg2[%c0_i32_444, %c0_i32_445] : memref<64x128xf32, #tpu.memory_space<any>> -> memref<1x128xf32, #tpu.memory_space<any>>
    %c26_i32_446 = arith.constant 26 : i32
    %c0_i32_447 = arith.constant 0 : i32
    %554 = tpu.memref_slice %arg4[%c26_i32_446, %c0_i32_447] : memref<64x128xf32, #tpu.memory_space<vmem>> -> memref<1x128xf32, #tpu.memory_space<vmem>>
    %555 = tpu.memref_slice %arg5[%c0_i32_443] : memref<1x!tpu.dma_semaphore, #tpu.memory_space<semaphore_mem>> -> memref<1x!tpu.dma_semaphore, #tpu.memory_space<semaphore_mem>>
    %556 = tpu.memref_squeeze %555 : memref<1x!tpu.dma_semaphore, #tpu.memory_space<semaphore_mem>> -> memref<!tpu.dma_semaphore, #tpu.memory_space<semaphore_mem>>
    tpu.wait_dma2 semaphore(%556 : memref<!tpu.dma_semaphore, #tpu.memory_space<semaphore_mem>>) src(%553 : memref<1x128xf32, #tpu.memory_space<any>>) dst(%554 : memref<1x128xf32, #tpu.memory_space<vmem>>)
    %c0_i32_448 = arith.constant 0 : i32
    %c0_i32_449 = arith.constant 0 : i32
    %c0_i32_450 = arith.constant 0 : i32
    %557 = tpu.memref_slice %arg2[%c0_i32_449, %c0_i32_450] : memref<64x128xf32, #tpu.memory_space<any>> -> memref<1x128xf32, #tpu.memory_space<any>>
    %c27_i32_451 = arith.constant 27 : i32
    %c0_i32_452 = arith.constant 0 : i32
    %558 = tpu.memref_slice %arg4[%c27_i32_451, %c0_i32_452] : memref<64x128xf32, #tpu.memory_space<vmem>> -> memref<1x128xf32, #tpu.memory_space<vmem>>
    %559 = tpu.memref_slice %arg5[%c0_i32_448] : memref<1x!tpu.dma_semaphore, #tpu.memory_space<semaphore_mem>> -> memref<1x!tpu.dma_semaphore, #tpu.memory_space<semaphore_mem>>
    %560 = tpu.memref_squeeze %559 : memref<1x!tpu.dma_semaphore, #tpu.memory_space<semaphore_mem>> -> memref<!tpu.dma_semaphore, #tpu.memory_space<semaphore_mem>>
    tpu.wait_dma2 semaphore(%560 : memref<!tpu.dma_semaphore, #tpu.memory_space<semaphore_mem>>) src(%557 : memref<1x128xf32, #tpu.memory_space<any>>) dst(%558 : memref<1x128xf32, #tpu.memory_space<vmem>>)
    %c0_i32_453 = arith.constant 0 : i32
    %c0_i32_454 = arith.constant 0 : i32
    %c0_i32_455 = arith.constant 0 : i32
    %561 = tpu.memref_slice %arg2[%c0_i32_454, %c0_i32_455] : memref<64x128xf32, #tpu.memory_space<any>> -> memref<1x128xf32, #tpu.memory_space<any>>
    %c28_i32_456 = arith.constant 28 : i32
    %c0_i32_457 = arith.constant 0 : i32
    %562 = tpu.memref_slice %arg4[%c28_i32_456, %c0_i32_457] : memref<64x128xf32, #tpu.memory_space<vmem>> -> memref<1x128xf32, #tpu.memory_space<vmem>>
    %563 = tpu.memref_slice %arg5[%c0_i32_453] : memref<1x!tpu.dma_semaphore, #tpu.memory_space<semaphore_mem>> -> memref<1x!tpu.dma_semaphore, #tpu.memory_space<semaphore_mem>>
    %564 = tpu.memref_squeeze %563 : memref<1x!tpu.dma_semaphore, #tpu.memory_space<semaphore_mem>> -> memref<!tpu.dma_semaphore, #tpu.memory_space<semaphore_mem>>
    tpu.wait_dma2 semaphore(%564 : memref<!tpu.dma_semaphore, #tpu.memory_space<semaphore_mem>>) src(%561 : memref<1x128xf32, #tpu.memory_space<any>>) dst(%562 : memref<1x128xf32, #tpu.memory_space<vmem>>)
    %c0_i32_458 = arith.constant 0 : i32
    %c0_i32_459 = arith.constant 0 : i32
    %c0_i32_460 = arith.constant 0 : i32
    %565 = tpu.memref_slice %arg2[%c0_i32_459, %c0_i32_460] : memref<64x128xf32, #tpu.memory_space<any>> -> memref<1x128xf32, #tpu.memory_space<any>>
    %c29_i32_461 = arith.constant 29 : i32
    %c0_i32_462 = arith.constant 0 : i32
    %566 = tpu.memref_slice %arg4[%c29_i32_461, %c0_i32_462] : memref<64x128xf32, #tpu.memory_space<vmem>> -> memref<1x128xf32, #tpu.memory_space<vmem>>
    %567 = tpu.memref_slice %arg5[%c0_i32_458] : memref<1x!tpu.dma_semaphore, #tpu.memory_space<semaphore_mem>> -> memref<1x!tpu.dma_semaphore, #tpu.memory_space<semaphore_mem>>
    %568 = tpu.memref_squeeze %567 : memref<1x!tpu.dma_semaphore, #tpu.memory_space<semaphore_mem>> -> memref<!tpu.dma_semaphore, #tpu.memory_space<semaphore_mem>>
    tpu.wait_dma2 semaphore(%568 : memref<!tpu.dma_semaphore, #tpu.memory_space<semaphore_mem>>) src(%565 : memref<1x128xf32, #tpu.memory_space<any>>) dst(%566 : memref<1x128xf32, #tpu.memory_space<vmem>>)
    %c0_i32_463 = arith.constant 0 : i32
    %c0_i32_464 = arith.constant 0 : i32
    %c0_i32_465 = arith.constant 0 : i32
    %569 = tpu.memref_slice %arg2[%c0_i32_464, %c0_i32_465] : memref<64x128xf32, #tpu.memory_space<any>> -> memref<1x128xf32, #tpu.memory_space<any>>
    %c30_i32_466 = arith.constant 30 : i32
    %c0_i32_467 = arith.constant 0 : i32
    %570 = tpu.memref_slice %arg4[%c30_i32_466, %c0_i32_467] : memref<64x128xf32, #tpu.memory_space<vmem>> -> memref<1x128xf32, #tpu.memory_space<vmem>>
    %571 = tpu.memref_slice %arg5[%c0_i32_463] : memref<1x!tpu.dma_semaphore, #tpu.memory_space<semaphore_mem>> -> memref<1x!tpu.dma_semaphore, #tpu.memory_space<semaphore_mem>>
    %572 = tpu.memref_squeeze %571 : memref<1x!tpu.dma_semaphore, #tpu.memory_space<semaphore_mem>> -> memref<!tpu.dma_semaphore, #tpu.memory_space<semaphore_mem>>
    tpu.wait_dma2 semaphore(%572 : memref<!tpu.dma_semaphore, #tpu.memory_space<semaphore_mem>>) src(%569 : memref<1x128xf32, #tpu.memory_space<any>>) dst(%570 : memref<1x128xf32, #tpu.memory_space<vmem>>)
    %c0_i32_468 = arith.constant 0 : i32
    %c0_i32_469 = arith.constant 0 : i32
    %c0_i32_470 = arith.constant 0 : i32
    %573 = tpu.memref_slice %arg2[%c0_i32_469, %c0_i32_470] : memref<64x128xf32, #tpu.memory_space<any>> -> memref<1x128xf32, #tpu.memory_space<any>>
    %c31_i32_471 = arith.constant 31 : i32
    %c0_i32_472 = arith.constant 0 : i32
    %574 = tpu.memref_slice %arg4[%c31_i32_471, %c0_i32_472] : memref<64x128xf32, #tpu.memory_space<vmem>> -> memref<1x128xf32, #tpu.memory_space<vmem>>
    %575 = tpu.memref_slice %arg5[%c0_i32_468] : memref<1x!tpu.dma_semaphore, #tpu.memory_space<semaphore_mem>> -> memref<1x!tpu.dma_semaphore, #tpu.memory_space<semaphore_mem>>
    %576 = tpu.memref_squeeze %575 : memref<1x!tpu.dma_semaphore, #tpu.memory_space<semaphore_mem>> -> memref<!tpu.dma_semaphore, #tpu.memory_space<semaphore_mem>>
    tpu.wait_dma2 semaphore(%576 : memref<!tpu.dma_semaphore, #tpu.memory_space<semaphore_mem>>) src(%573 : memref<1x128xf32, #tpu.memory_space<any>>) dst(%574 : memref<1x128xf32, #tpu.memory_space<vmem>>)
    %c0_i32_473 = arith.constant 0 : i32
    %c0_i32_474 = arith.constant 0 : i32
    %c0_i32_475 = arith.constant 0 : i32
    %577 = tpu.memref_slice %arg2[%c0_i32_474, %c0_i32_475] : memref<64x128xf32, #tpu.memory_space<any>> -> memref<1x128xf32, #tpu.memory_space<any>>
    %c32_i32_476 = arith.constant 32 : i32
    %c0_i32_477 = arith.constant 0 : i32
    %578 = tpu.memref_slice %arg4[%c32_i32_476, %c0_i32_477] : memref<64x128xf32, #tpu.memory_space<vmem>> -> memref<1x128xf32, #tpu.memory_space<vmem>>
    %579 = tpu.memref_slice %arg5[%c0_i32_473] : memref<1x!tpu.dma_semaphore, #tpu.memory_space<semaphore_mem>> -> memref<1x!tpu.dma_semaphore, #tpu.memory_space<semaphore_mem>>
    %580 = tpu.memref_squeeze %579 : memref<1x!tpu.dma_semaphore, #tpu.memory_space<semaphore_mem>> -> memref<!tpu.dma_semaphore, #tpu.memory_space<semaphore_mem>>
    tpu.wait_dma2 semaphore(%580 : memref<!tpu.dma_semaphore, #tpu.memory_space<semaphore_mem>>) src(%577 : memref<1x128xf32, #tpu.memory_space<any>>) dst(%578 : memref<1x128xf32, #tpu.memory_space<vmem>>)
    %c0_i32_478 = arith.constant 0 : i32
    %c0_i32_479 = arith.constant 0 : i32
    %c0_i32_480 = arith.constant 0 : i32
    %581 = tpu.memref_slice %arg2[%c0_i32_479, %c0_i32_480] : memref<64x128xf32, #tpu.memory_space<any>> -> memref<1x128xf32, #tpu.memory_space<any>>
    %c33_i32_481 = arith.constant 33 : i32
    %c0_i32_482 = arith.constant 0 : i32
    %582 = tpu.memref_slice %arg4[%c33_i32_481, %c0_i32_482] : memref<64x128xf32, #tpu.memory_space<vmem>> -> memref<1x128xf32, #tpu.memory_space<vmem>>
    %583 = tpu.memref_slice %arg5[%c0_i32_478] : memref<1x!tpu.dma_semaphore, #tpu.memory_space<semaphore_mem>> -> memref<1x!tpu.dma_semaphore, #tpu.memory_space<semaphore_mem>>
    %584 = tpu.memref_squeeze %583 : memref<1x!tpu.dma_semaphore, #tpu.memory_space<semaphore_mem>> -> memref<!tpu.dma_semaphore, #tpu.memory_space<semaphore_mem>>
    tpu.wait_dma2 semaphore(%584 : memref<!tpu.dma_semaphore, #tpu.memory_space<semaphore_mem>>) src(%581 : memref<1x128xf32, #tpu.memory_space<any>>) dst(%582 : memref<1x128xf32, #tpu.memory_space<vmem>>)
    %c0_i32_483 = arith.constant 0 : i32
    %c0_i32_484 = arith.constant 0 : i32
    %c0_i32_485 = arith.constant 0 : i32
    %585 = tpu.memref_slice %arg2[%c0_i32_484, %c0_i32_485] : memref<64x128xf32, #tpu.memory_space<any>> -> memref<1x128xf32, #tpu.memory_space<any>>
    %c34_i32_486 = arith.constant 34 : i32
    %c0_i32_487 = arith.constant 0 : i32
    %586 = tpu.memref_slice %arg4[%c34_i32_486, %c0_i32_487] : memref<64x128xf32, #tpu.memory_space<vmem>> -> memref<1x128xf32, #tpu.memory_space<vmem>>
    %587 = tpu.memref_slice %arg5[%c0_i32_483] : memref<1x!tpu.dma_semaphore, #tpu.memory_space<semaphore_mem>> -> memref<1x!tpu.dma_semaphore, #tpu.memory_space<semaphore_mem>>
    %588 = tpu.memref_squeeze %587 : memref<1x!tpu.dma_semaphore, #tpu.memory_space<semaphore_mem>> -> memref<!tpu.dma_semaphore, #tpu.memory_space<semaphore_mem>>
    tpu.wait_dma2 semaphore(%588 : memref<!tpu.dma_semaphore, #tpu.memory_space<semaphore_mem>>) src(%585 : memref<1x128xf32, #tpu.memory_space<any>>) dst(%586 : memref<1x128xf32, #tpu.memory_space<vmem>>)
    %c0_i32_488 = arith.constant 0 : i32
    %c0_i32_489 = arith.constant 0 : i32
    %c0_i32_490 = arith.constant 0 : i32
    %589 = tpu.memref_slice %arg2[%c0_i32_489, %c0_i32_490] : memref<64x128xf32, #tpu.memory_space<any>> -> memref<1x128xf32, #tpu.memory_space<any>>
    %c35_i32_491 = arith.constant 35 : i32
    %c0_i32_492 = arith.constant 0 : i32
    %590 = tpu.memref_slice %arg4[%c35_i32_491, %c0_i32_492] : memref<64x128xf32, #tpu.memory_space<vmem>> -> memref<1x128xf32, #tpu.memory_space<vmem>>
    %591 = tpu.memref_slice %arg5[%c0_i32_488] : memref<1x!tpu.dma_semaphore, #tpu.memory_space<semaphore_mem>> -> memref<1x!tpu.dma_semaphore, #tpu.memory_space<semaphore_mem>>
    %592 = tpu.memref_squeeze %591 : memref<1x!tpu.dma_semaphore, #tpu.memory_space<semaphore_mem>> -> memref<!tpu.dma_semaphore, #tpu.memory_space<semaphore_mem>>
    tpu.wait_dma2 semaphore(%592 : memref<!tpu.dma_semaphore, #tpu.memory_space<semaphore_mem>>) src(%589 : memref<1x128xf32, #tpu.memory_space<any>>) dst(%590 : memref<1x128xf32, #tpu.memory_space<vmem>>)
    %c0_i32_493 = arith.constant 0 : i32
    %c0_i32_494 = arith.constant 0 : i32
    %c0_i32_495 = arith.constant 0 : i32
    %593 = tpu.memref_slice %arg2[%c0_i32_494, %c0_i32_495] : memref<64x128xf32, #tpu.memory_space<any>> -> memref<1x128xf32, #tpu.memory_space<any>>
    %c36_i32_496 = arith.constant 36 : i32
    %c0_i32_497 = arith.constant 0 : i32
    %594 = tpu.memref_slice %arg4[%c36_i32_496, %c0_i32_497] : memref<64x128xf32, #tpu.memory_space<vmem>> -> memref<1x128xf32, #tpu.memory_space<vmem>>
    %595 = tpu.memref_slice %arg5[%c0_i32_493] : memref<1x!tpu.dma_semaphore, #tpu.memory_space<semaphore_mem>> -> memref<1x!tpu.dma_semaphore, #tpu.memory_space<semaphore_mem>>
    %596 = tpu.memref_squeeze %595 : memref<1x!tpu.dma_semaphore, #tpu.memory_space<semaphore_mem>> -> memref<!tpu.dma_semaphore, #tpu.memory_space<semaphore_mem>>
    tpu.wait_dma2 semaphore(%596 : memref<!tpu.dma_semaphore, #tpu.memory_space<semaphore_mem>>) src(%593 : memref<1x128xf32, #tpu.memory_space<any>>) dst(%594 : memref<1x128xf32, #tpu.memory_space<vmem>>)
    %c0_i32_498 = arith.constant 0 : i32
    %c0_i32_499 = arith.constant 0 : i32
    %c0_i32_500 = arith.constant 0 : i32
    %597 = tpu.memref_slice %arg2[%c0_i32_499, %c0_i32_500] : memref<64x128xf32, #tpu.memory_space<any>> -> memref<1x128xf32, #tpu.memory_space<any>>
    %c37_i32_501 = arith.constant 37 : i32
    %c0_i32_502 = arith.constant 0 : i32
    %598 = tpu.memref_slice %arg4[%c37_i32_501, %c0_i32_502] : memref<64x128xf32, #tpu.memory_space<vmem>> -> memref<1x128xf32, #tpu.memory_space<vmem>>
    %599 = tpu.memref_slice %arg5[%c0_i32_498] : memref<1x!tpu.dma_semaphore, #tpu.memory_space<semaphore_mem>> -> memref<1x!tpu.dma_semaphore, #tpu.memory_space<semaphore_mem>>
    %600 = tpu.memref_squeeze %599 : memref<1x!tpu.dma_semaphore, #tpu.memory_space<semaphore_mem>> -> memref<!tpu.dma_semaphore, #tpu.memory_space<semaphore_mem>>
    tpu.wait_dma2 semaphore(%600 : memref<!tpu.dma_semaphore, #tpu.memory_space<semaphore_mem>>) src(%597 : memref<1x128xf32, #tpu.memory_space<any>>) dst(%598 : memref<1x128xf32, #tpu.memory_space<vmem>>)
    %c0_i32_503 = arith.constant 0 : i32
    %c0_i32_504 = arith.constant 0 : i32
    %c0_i32_505 = arith.constant 0 : i32
    %601 = tpu.memref_slice %arg2[%c0_i32_504, %c0_i32_505] : memref<64x128xf32, #tpu.memory_space<any>> -> memref<1x128xf32, #tpu.memory_space<any>>
    %c38_i32_506 = arith.constant 38 : i32
    %c0_i32_507 = arith.constant 0 : i32
    %602 = tpu.memref_slice %arg4[%c38_i32_506, %c0_i32_507] : memref<64x128xf32, #tpu.memory_space<vmem>> -> memref<1x128xf32, #tpu.memory_space<vmem>>
    %603 = tpu.memref_slice %arg5[%c0_i32_503] : memref<1x!tpu.dma_semaphore, #tpu.memory_space<semaphore_mem>> -> memref<1x!tpu.dma_semaphore, #tpu.memory_space<semaphore_mem>>
    %604 = tpu.memref_squeeze %603 : memref<1x!tpu.dma_semaphore, #tpu.memory_space<semaphore_mem>> -> memref<!tpu.dma_semaphore, #tpu.memory_space<semaphore_mem>>
    tpu.wait_dma2 semaphore(%604 : memref<!tpu.dma_semaphore, #tpu.memory_space<semaphore_mem>>) src(%601 : memref<1x128xf32, #tpu.memory_space<any>>) dst(%602 : memref<1x128xf32, #tpu.memory_space<vmem>>)
    %c0_i32_508 = arith.constant 0 : i32
    %c0_i32_509 = arith.constant 0 : i32
    %c0_i32_510 = arith.constant 0 : i32
    %605 = tpu.memref_slice %arg2[%c0_i32_509, %c0_i32_510] : memref<64x128xf32, #tpu.memory_space<any>> -> memref<1x128xf32, #tpu.memory_space<any>>
    %c39_i32_511 = arith.constant 39 : i32
    %c0_i32_512 = arith.constant 0 : i32
    %606 = tpu.memref_slice %arg4[%c39_i32_511, %c0_i32_512] : memref<64x128xf32, #tpu.memory_space<vmem>> -> memref<1x128xf32, #tpu.memory_space<vmem>>
    %607 = tpu.memref_slice %arg5[%c0_i32_508] : memref<1x!tpu.dma_semaphore, #tpu.memory_space<semaphore_mem>> -> memref<1x!tpu.dma_semaphore, #tpu.memory_space<semaphore_mem>>
    %608 = tpu.memref_squeeze %607 : memref<1x!tpu.dma_semaphore, #tpu.memory_space<semaphore_mem>> -> memref<!tpu.dma_semaphore, #tpu.memory_space<semaphore_mem>>
    tpu.wait_dma2 semaphore(%608 : memref<!tpu.dma_semaphore, #tpu.memory_space<semaphore_mem>>) src(%605 : memref<1x128xf32, #tpu.memory_space<any>>) dst(%606 : memref<1x128xf32, #tpu.memory_space<vmem>>)
    %c0_i32_513 = arith.constant 0 : i32
    %c0_i32_514 = arith.constant 0 : i32
    %c0_i32_515 = arith.constant 0 : i32
    %609 = tpu.memref_slice %arg2[%c0_i32_514, %c0_i32_515] : memref<64x128xf32, #tpu.memory_space<any>> -> memref<1x128xf32, #tpu.memory_space<any>>
    %c40_i32_516 = arith.constant 40 : i32
    %c0_i32_517 = arith.constant 0 : i32
    %610 = tpu.memref_slice %arg4[%c40_i32_516, %c0_i32_517] : memref<64x128xf32, #tpu.memory_space<vmem>> -> memref<1x128xf32, #tpu.memory_space<vmem>>
    %611 = tpu.memref_slice %arg5[%c0_i32_513] : memref<1x!tpu.dma_semaphore, #tpu.memory_space<semaphore_mem>> -> memref<1x!tpu.dma_semaphore, #tpu.memory_space<semaphore_mem>>
    %612 = tpu.memref_squeeze %611 : memref<1x!tpu.dma_semaphore, #tpu.memory_space<semaphore_mem>> -> memref<!tpu.dma_semaphore, #tpu.memory_space<semaphore_mem>>
    tpu.wait_dma2 semaphore(%612 : memref<!tpu.dma_semaphore, #tpu.memory_space<semaphore_mem>>) src(%609 : memref<1x128xf32, #tpu.memory_space<any>>) dst(%610 : memref<1x128xf32, #tpu.memory_space<vmem>>)
    %c0_i32_518 = arith.constant 0 : i32
    %c0_i32_519 = arith.constant 0 : i32
    %c0_i32_520 = arith.constant 0 : i32
    %613 = tpu.memref_slice %arg2[%c0_i32_519, %c0_i32_520] : memref<64x128xf32, #tpu.memory_space<any>> -> memref<1x128xf32, #tpu.memory_space<any>>
    %c41_i32_521 = arith.constant 41 : i32
    %c0_i32_522 = arith.constant 0 : i32
    %614 = tpu.memref_slice %arg4[%c41_i32_521, %c0_i32_522] : memref<64x128xf32, #tpu.memory_space<vmem>> -> memref<1x128xf32, #tpu.memory_space<vmem>>
    %615 = tpu.memref_slice %arg5[%c0_i32_518] : memref<1x!tpu.dma_semaphore, #tpu.memory_space<semaphore_mem>> -> memref<1x!tpu.dma_semaphore, #tpu.memory_space<semaphore_mem>>
    %616 = tpu.memref_squeeze %615 : memref<1x!tpu.dma_semaphore, #tpu.memory_space<semaphore_mem>> -> memref<!tpu.dma_semaphore, #tpu.memory_space<semaphore_mem>>
    tpu.wait_dma2 semaphore(%616 : memref<!tpu.dma_semaphore, #tpu.memory_space<semaphore_mem>>) src(%613 : memref<1x128xf32, #tpu.memory_space<any>>) dst(%614 : memref<1x128xf32, #tpu.memory_space<vmem>>)
    %c0_i32_523 = arith.constant 0 : i32
    %c0_i32_524 = arith.constant 0 : i32
    %c0_i32_525 = arith.constant 0 : i32
    %617 = tpu.memref_slice %arg2[%c0_i32_524, %c0_i32_525] : memref<64x128xf32, #tpu.memory_space<any>> -> memref<1x128xf32, #tpu.memory_space<any>>
    %c42_i32_526 = arith.constant 42 : i32
    %c0_i32_527 = arith.constant 0 : i32
    %618 = tpu.memref_slice %arg4[%c42_i32_526, %c0_i32_527] : memref<64x128xf32, #tpu.memory_space<vmem>> -> memref<1x128xf32, #tpu.memory_space<vmem>>
    %619 = tpu.memref_slice %arg5[%c0_i32_523] : memref<1x!tpu.dma_semaphore, #tpu.memory_space<semaphore_mem>> -> memref<1x!tpu.dma_semaphore, #tpu.memory_space<semaphore_mem>>
    %620 = tpu.memref_squeeze %619 : memref<1x!tpu.dma_semaphore, #tpu.memory_space<semaphore_mem>> -> memref<!tpu.dma_semaphore, #tpu.memory_space<semaphore_mem>>
    tpu.wait_dma2 semaphore(%620 : memref<!tpu.dma_semaphore, #tpu.memory_space<semaphore_mem>>) src(%617 : memref<1x128xf32, #tpu.memory_space<any>>) dst(%618 : memref<1x128xf32, #tpu.memory_space<vmem>>)
    %c0_i32_528 = arith.constant 0 : i32
    %c0_i32_529 = arith.constant 0 : i32
    %c0_i32_530 = arith.constant 0 : i32
    %621 = tpu.memref_slice %arg2[%c0_i32_529, %c0_i32_530] : memref<64x128xf32, #tpu.memory_space<any>> -> memref<1x128xf32, #tpu.memory_space<any>>
    %c43_i32_531 = arith.constant 43 : i32
    %c0_i32_532 = arith.constant 0 : i32
    %622 = tpu.memref_slice %arg4[%c43_i32_531, %c0_i32_532] : memref<64x128xf32, #tpu.memory_space<vmem>> -> memref<1x128xf32, #tpu.memory_space<vmem>>
    %623 = tpu.memref_slice %arg5[%c0_i32_528] : memref<1x!tpu.dma_semaphore, #tpu.memory_space<semaphore_mem>> -> memref<1x!tpu.dma_semaphore, #tpu.memory_space<semaphore_mem>>
    %624 = tpu.memref_squeeze %623 : memref<1x!tpu.dma_semaphore, #tpu.memory_space<semaphore_mem>> -> memref<!tpu.dma_semaphore, #tpu.memory_space<semaphore_mem>>
    tpu.wait_dma2 semaphore(%624 : memref<!tpu.dma_semaphore, #tpu.memory_space<semaphore_mem>>) src(%621 : memref<1x128xf32, #tpu.memory_space<any>>) dst(%622 : memref<1x128xf32, #tpu.memory_space<vmem>>)
    %c0_i32_533 = arith.constant 0 : i32
    %c0_i32_534 = arith.constant 0 : i32
    %c0_i32_535 = arith.constant 0 : i32
    %625 = tpu.memref_slice %arg2[%c0_i32_534, %c0_i32_535] : memref<64x128xf32, #tpu.memory_space<any>> -> memref<1x128xf32, #tpu.memory_space<any>>
    %c44_i32_536 = arith.constant 44 : i32
    %c0_i32_537 = arith.constant 0 : i32
    %626 = tpu.memref_slice %arg4[%c44_i32_536, %c0_i32_537] : memref<64x128xf32, #tpu.memory_space<vmem>> -> memref<1x128xf32, #tpu.memory_space<vmem>>
    %627 = tpu.memref_slice %arg5[%c0_i32_533] : memref<1x!tpu.dma_semaphore, #tpu.memory_space<semaphore_mem>> -> memref<1x!tpu.dma_semaphore, #tpu.memory_space<semaphore_mem>>
    %628 = tpu.memref_squeeze %627 : memref<1x!tpu.dma_semaphore, #tpu.memory_space<semaphore_mem>> -> memref<!tpu.dma_semaphore, #tpu.memory_space<semaphore_mem>>
    tpu.wait_dma2 semaphore(%628 : memref<!tpu.dma_semaphore, #tpu.memory_space<semaphore_mem>>) src(%625 : memref<1x128xf32, #tpu.memory_space<any>>) dst(%626 : memref<1x128xf32, #tpu.memory_space<vmem>>)
    %c0_i32_538 = arith.constant 0 : i32
    %c0_i32_539 = arith.constant 0 : i32
    %c0_i32_540 = arith.constant 0 : i32
    %629 = tpu.memref_slice %arg2[%c0_i32_539, %c0_i32_540] : memref<64x128xf32, #tpu.memory_space<any>> -> memref<1x128xf32, #tpu.memory_space<any>>
    %c45_i32_541 = arith.constant 45 : i32
    %c0_i32_542 = arith.constant 0 : i32
    %630 = tpu.memref_slice %arg4[%c45_i32_541, %c0_i32_542] : memref<64x128xf32, #tpu.memory_space<vmem>> -> memref<1x128xf32, #tpu.memory_space<vmem>>
    %631 = tpu.memref_slice %arg5[%c0_i32_538] : memref<1x!tpu.dma_semaphore, #tpu.memory_space<semaphore_mem>> -> memref<1x!tpu.dma_semaphore, #tpu.memory_space<semaphore_mem>>
    %632 = tpu.memref_squeeze %631 : memref<1x!tpu.dma_semaphore, #tpu.memory_space<semaphore_mem>> -> memref<!tpu.dma_semaphore, #tpu.memory_space<semaphore_mem>>
    tpu.wait_dma2 semaphore(%632 : memref<!tpu.dma_semaphore, #tpu.memory_space<semaphore_mem>>) src(%629 : memref<1x128xf32, #tpu.memory_space<any>>) dst(%630 : memref<1x128xf32, #tpu.memory_space<vmem>>)
    %c0_i32_543 = arith.constant 0 : i32
    %c0_i32_544 = arith.constant 0 : i32
    %c0_i32_545 = arith.constant 0 : i32
    %633 = tpu.memref_slice %arg2[%c0_i32_544, %c0_i32_545] : memref<64x128xf32, #tpu.memory_space<any>> -> memref<1x128xf32, #tpu.memory_space<any>>
    %c46_i32_546 = arith.constant 46 : i32
    %c0_i32_547 = arith.constant 0 : i32
    %634 = tpu.memref_slice %arg4[%c46_i32_546, %c0_i32_547] : memref<64x128xf32, #tpu.memory_space<vmem>> -> memref<1x128xf32, #tpu.memory_space<vmem>>
    %635 = tpu.memref_slice %arg5[%c0_i32_543] : memref<1x!tpu.dma_semaphore, #tpu.memory_space<semaphore_mem>> -> memref<1x!tpu.dma_semaphore, #tpu.memory_space<semaphore_mem>>
    %636 = tpu.memref_squeeze %635 : memref<1x!tpu.dma_semaphore, #tpu.memory_space<semaphore_mem>> -> memref<!tpu.dma_semaphore, #tpu.memory_space<semaphore_mem>>
    tpu.wait_dma2 semaphore(%636 : memref<!tpu.dma_semaphore, #tpu.memory_space<semaphore_mem>>) src(%633 : memref<1x128xf32, #tpu.memory_space<any>>) dst(%634 : memref<1x128xf32, #tpu.memory_space<vmem>>)
    %c0_i32_548 = arith.constant 0 : i32
    %c0_i32_549 = arith.constant 0 : i32
    %c0_i32_550 = arith.constant 0 : i32
    %637 = tpu.memref_slice %arg2[%c0_i32_549, %c0_i32_550] : memref<64x128xf32, #tpu.memory_space<any>> -> memref<1x128xf32, #tpu.memory_space<any>>
    %c47_i32_551 = arith.constant 47 : i32
    %c0_i32_552 = arith.constant 0 : i32
    %638 = tpu.memref_slice %arg4[%c47_i32_551, %c0_i32_552] : memref<64x128xf32, #tpu.memory_space<vmem>> -> memref<1x128xf32, #tpu.memory_space<vmem>>
    %639 = tpu.memref_slice %arg5[%c0_i32_548] : memref<1x!tpu.dma_semaphore, #tpu.memory_space<semaphore_mem>> -> memref<1x!tpu.dma_semaphore, #tpu.memory_space<semaphore_mem>>
    %640 = tpu.memref_squeeze %639 : memref<1x!tpu.dma_semaphore, #tpu.memory_space<semaphore_mem>> -> memref<!tpu.dma_semaphore, #tpu.memory_space<semaphore_mem>>
    tpu.wait_dma2 semaphore(%640 : memref<!tpu.dma_semaphore, #tpu.memory_space<semaphore_mem>>) src(%637 : memref<1x128xf32, #tpu.memory_space<any>>) dst(%638 : memref<1x128xf32, #tpu.memory_space<vmem>>)
    %c0_i32_553 = arith.constant 0 : i32
    %c0_i32_554 = arith.constant 0 : i32
    %c0_i32_555 = arith.constant 0 : i32
    %641 = tpu.memref_slice %arg2[%c0_i32_554, %c0_i32_555] : memref<64x128xf32, #tpu.memory_space<any>> -> memref<1x128xf32, #tpu.memory_space<any>>
    %c48_i32_556 = arith.constant 48 : i32
    %c0_i32_557 = arith.constant 0 : i32
    %642 = tpu.memref_slice %arg4[%c48_i32_556, %c0_i32_557] : memref<64x128xf32, #tpu.memory_space<vmem>> -> memref<1x128xf32, #tpu.memory_space<vmem>>
    %643 = tpu.memref_slice %arg5[%c0_i32_553] : memref<1x!tpu.dma_semaphore, #tpu.memory_space<semaphore_mem>> -> memref<1x!tpu.dma_semaphore, #tpu.memory_space<semaphore_mem>>
    %644 = tpu.memref_squeeze %643 : memref<1x!tpu.dma_semaphore, #tpu.memory_space<semaphore_mem>> -> memref<!tpu.dma_semaphore, #tpu.memory_space<semaphore_mem>>
    tpu.wait_dma2 semaphore(%644 : memref<!tpu.dma_semaphore, #tpu.memory_space<semaphore_mem>>) src(%641 : memref<1x128xf32, #tpu.memory_space<any>>) dst(%642 : memref<1x128xf32, #tpu.memory_space<vmem>>)
    %c0_i32_558 = arith.constant 0 : i32
    %c0_i32_559 = arith.constant 0 : i32
    %c0_i32_560 = arith.constant 0 : i32
    %645 = tpu.memref_slice %arg2[%c0_i32_559, %c0_i32_560] : memref<64x128xf32, #tpu.memory_space<any>> -> memref<1x128xf32, #tpu.memory_space<any>>
    %c49_i32_561 = arith.constant 49 : i32
    %c0_i32_562 = arith.constant 0 : i32
    %646 = tpu.memref_slice %arg4[%c49_i32_561, %c0_i32_562] : memref<64x128xf32, #tpu.memory_space<vmem>> -> memref<1x128xf32, #tpu.memory_space<vmem>>
    %647 = tpu.memref_slice %arg5[%c0_i32_558] : memref<1x!tpu.dma_semaphore, #tpu.memory_space<semaphore_mem>> -> memref<1x!tpu.dma_semaphore, #tpu.memory_space<semaphore_mem>>
    %648 = tpu.memref_squeeze %647 : memref<1x!tpu.dma_semaphore, #tpu.memory_space<semaphore_mem>> -> memref<!tpu.dma_semaphore, #tpu.memory_space<semaphore_mem>>
    tpu.wait_dma2 semaphore(%648 : memref<!tpu.dma_semaphore, #tpu.memory_space<semaphore_mem>>) src(%645 : memref<1x128xf32, #tpu.memory_space<any>>) dst(%646 : memref<1x128xf32, #tpu.memory_space<vmem>>)
    %c0_i32_563 = arith.constant 0 : i32
    %c0_i32_564 = arith.constant 0 : i32
    %c0_i32_565 = arith.constant 0 : i32
    %649 = tpu.memref_slice %arg2[%c0_i32_564, %c0_i32_565] : memref<64x128xf32, #tpu.memory_space<any>> -> memref<1x128xf32, #tpu.memory_space<any>>
    %c50_i32_566 = arith.constant 50 : i32
    %c0_i32_567 = arith.constant 0 : i32
    %650 = tpu.memref_slice %arg4[%c50_i32_566, %c0_i32_567] : memref<64x128xf32, #tpu.memory_space<vmem>> -> memref<1x128xf32, #tpu.memory_space<vmem>>
    %651 = tpu.memref_slice %arg5[%c0_i32_563] : memref<1x!tpu.dma_semaphore, #tpu.memory_space<semaphore_mem>> -> memref<1x!tpu.dma_semaphore, #tpu.memory_space<semaphore_mem>>
    %652 = tpu.memref_squeeze %651 : memref<1x!tpu.dma_semaphore, #tpu.memory_space<semaphore_mem>> -> memref<!tpu.dma_semaphore, #tpu.memory_space<semaphore_mem>>
    tpu.wait_dma2 semaphore(%652 : memref<!tpu.dma_semaphore, #tpu.memory_space<semaphore_mem>>) src(%649 : memref<1x128xf32, #tpu.memory_space<any>>) dst(%650 : memref<1x128xf32, #tpu.memory_space<vmem>>)
    %c0_i32_568 = arith.constant 0 : i32
    %c0_i32_569 = arith.constant 0 : i32
    %c0_i32_570 = arith.constant 0 : i32
    %653 = tpu.memref_slice %arg2[%c0_i32_569, %c0_i32_570] : memref<64x128xf32, #tpu.memory_space<any>> -> memref<1x128xf32, #tpu.memory_space<any>>
    %c51_i32_571 = arith.constant 51 : i32
    %c0_i32_572 = arith.constant 0 : i32
    %654 = tpu.memref_slice %arg4[%c51_i32_571, %c0_i32_572] : memref<64x128xf32, #tpu.memory_space<vmem>> -> memref<1x128xf32, #tpu.memory_space<vmem>>
    %655 = tpu.memref_slice %arg5[%c0_i32_568] : memref<1x!tpu.dma_semaphore, #tpu.memory_space<semaphore_mem>> -> memref<1x!tpu.dma_semaphore, #tpu.memory_space<semaphore_mem>>
    %656 = tpu.memref_squeeze %655 : memref<1x!tpu.dma_semaphore, #tpu.memory_space<semaphore_mem>> -> memref<!tpu.dma_semaphore, #tpu.memory_space<semaphore_mem>>
    tpu.wait_dma2 semaphore(%656 : memref<!tpu.dma_semaphore, #tpu.memory_space<semaphore_mem>>) src(%653 : memref<1x128xf32, #tpu.memory_space<any>>) dst(%654 : memref<1x128xf32, #tpu.memory_space<vmem>>)
    %c0_i32_573 = arith.constant 0 : i32
    %c0_i32_574 = arith.constant 0 : i32
    %c0_i32_575 = arith.constant 0 : i32
    %657 = tpu.memref_slice %arg2[%c0_i32_574, %c0_i32_575] : memref<64x128xf32, #tpu.memory_space<any>> -> memref<1x128xf32, #tpu.memory_space<any>>
    %c52_i32_576 = arith.constant 52 : i32
    %c0_i32_577 = arith.constant 0 : i32
    %658 = tpu.memref_slice %arg4[%c52_i32_576, %c0_i32_577] : memref<64x128xf32, #tpu.memory_space<vmem>> -> memref<1x128xf32, #tpu.memory_space<vmem>>
    %659 = tpu.memref_slice %arg5[%c0_i32_573] : memref<1x!tpu.dma_semaphore, #tpu.memory_space<semaphore_mem>> -> memref<1x!tpu.dma_semaphore, #tpu.memory_space<semaphore_mem>>
    %660 = tpu.memref_squeeze %659 : memref<1x!tpu.dma_semaphore, #tpu.memory_space<semaphore_mem>> -> memref<!tpu.dma_semaphore, #tpu.memory_space<semaphore_mem>>
    tpu.wait_dma2 semaphore(%660 : memref<!tpu.dma_semaphore, #tpu.memory_space<semaphore_mem>>) src(%657 : memref<1x128xf32, #tpu.memory_space<any>>) dst(%658 : memref<1x128xf32, #tpu.memory_space<vmem>>)
    %c0_i32_578 = arith.constant 0 : i32
    %c0_i32_579 = arith.constant 0 : i32
    %c0_i32_580 = arith.constant 0 : i32
    %661 = tpu.memref_slice %arg2[%c0_i32_579, %c0_i32_580] : memref<64x128xf32, #tpu.memory_space<any>> -> memref<1x128xf32, #tpu.memory_space<any>>
    %c53_i32_581 = arith.constant 53 : i32
    %c0_i32_582 = arith.constant 0 : i32
    %662 = tpu.memref_slice %arg4[%c53_i32_581, %c0_i32_582] : memref<64x128xf32, #tpu.memory_space<vmem>> -> memref<1x128xf32, #tpu.memory_space<vmem>>
    %663 = tpu.memref_slice %arg5[%c0_i32_578] : memref<1x!tpu.dma_semaphore, #tpu.memory_space<semaphore_mem>> -> memref<1x!tpu.dma_semaphore, #tpu.memory_space<semaphore_mem>>
    %664 = tpu.memref_squeeze %663 : memref<1x!tpu.dma_semaphore, #tpu.memory_space<semaphore_mem>> -> memref<!tpu.dma_semaphore, #tpu.memory_space<semaphore_mem>>
    tpu.wait_dma2 semaphore(%664 : memref<!tpu.dma_semaphore, #tpu.memory_space<semaphore_mem>>) src(%661 : memref<1x128xf32, #tpu.memory_space<any>>) dst(%662 : memref<1x128xf32, #tpu.memory_space<vmem>>)
    %c0_i32_583 = arith.constant 0 : i32
    %c0_i32_584 = arith.constant 0 : i32
    %c0_i32_585 = arith.constant 0 : i32
    %665 = tpu.memref_slice %arg2[%c0_i32_584, %c0_i32_585] : memref<64x128xf32, #tpu.memory_space<any>> -> memref<1x128xf32, #tpu.memory_space<any>>
    %c54_i32_586 = arith.constant 54 : i32
    %c0_i32_587 = arith.constant 0 : i32
    %666 = tpu.memref_slice %arg4[%c54_i32_586, %c0_i32_587] : memref<64x128xf32, #tpu.memory_space<vmem>> -> memref<1x128xf32, #tpu.memory_space<vmem>>
    %667 = tpu.memref_slice %arg5[%c0_i32_583] : memref<1x!tpu.dma_semaphore, #tpu.memory_space<semaphore_mem>> -> memref<1x!tpu.dma_semaphore, #tpu.memory_space<semaphore_mem>>
    %668 = tpu.memref_squeeze %667 : memref<1x!tpu.dma_semaphore, #tpu.memory_space<semaphore_mem>> -> memref<!tpu.dma_semaphore, #tpu.memory_space<semaphore_mem>>
    tpu.wait_dma2 semaphore(%668 : memref<!tpu.dma_semaphore, #tpu.memory_space<semaphore_mem>>) src(%665 : memref<1x128xf32, #tpu.memory_space<any>>) dst(%666 : memref<1x128xf32, #tpu.memory_space<vmem>>)
    %c0_i32_588 = arith.constant 0 : i32
    %c0_i32_589 = arith.constant 0 : i32
    %c0_i32_590 = arith.constant 0 : i32
    %669 = tpu.memref_slice %arg2[%c0_i32_589, %c0_i32_590] : memref<64x128xf32, #tpu.memory_space<any>> -> memref<1x128xf32, #tpu.memory_space<any>>
    %c55_i32_591 = arith.constant 55 : i32
    %c0_i32_592 = arith.constant 0 : i32
    %670 = tpu.memref_slice %arg4[%c55_i32_591, %c0_i32_592] : memref<64x128xf32, #tpu.memory_space<vmem>> -> memref<1x128xf32, #tpu.memory_space<vmem>>
    %671 = tpu.memref_slice %arg5[%c0_i32_588] : memref<1x!tpu.dma_semaphore, #tpu.memory_space<semaphore_mem>> -> memref<1x!tpu.dma_semaphore, #tpu.memory_space<semaphore_mem>>
    %672 = tpu.memref_squeeze %671 : memref<1x!tpu.dma_semaphore, #tpu.memory_space<semaphore_mem>> -> memref<!tpu.dma_semaphore, #tpu.memory_space<semaphore_mem>>
    tpu.wait_dma2 semaphore(%672 : memref<!tpu.dma_semaphore, #tpu.memory_space<semaphore_mem>>) src(%669 : memref<1x128xf32, #tpu.memory_space<any>>) dst(%670 : memref<1x128xf32, #tpu.memory_space<vmem>>)
    %c0_i32_593 = arith.constant 0 : i32
    %c0_i32_594 = arith.constant 0 : i32
    %c0_i32_595 = arith.constant 0 : i32
    %673 = tpu.memref_slice %arg2[%c0_i32_594, %c0_i32_595] : memref<64x128xf32, #tpu.memory_space<any>> -> memref<1x128xf32, #tpu.memory_space<any>>
    %c56_i32_596 = arith.constant 56 : i32
    %c0_i32_597 = arith.constant 0 : i32
    %674 = tpu.memref_slice %arg4[%c56_i32_596, %c0_i32_597] : memref<64x128xf32, #tpu.memory_space<vmem>> -> memref<1x128xf32, #tpu.memory_space<vmem>>
    %675 = tpu.memref_slice %arg5[%c0_i32_593] : memref<1x!tpu.dma_semaphore, #tpu.memory_space<semaphore_mem>> -> memref<1x!tpu.dma_semaphore, #tpu.memory_space<semaphore_mem>>
    %676 = tpu.memref_squeeze %675 : memref<1x!tpu.dma_semaphore, #tpu.memory_space<semaphore_mem>> -> memref<!tpu.dma_semaphore, #tpu.memory_space<semaphore_mem>>
    tpu.wait_dma2 semaphore(%676 : memref<!tpu.dma_semaphore, #tpu.memory_space<semaphore_mem>>) src(%673 : memref<1x128xf32, #tpu.memory_space<any>>) dst(%674 : memref<1x128xf32, #tpu.memory_space<vmem>>)
    %c0_i32_598 = arith.constant 0 : i32
    %c0_i32_599 = arith.constant 0 : i32
    %c0_i32_600 = arith.constant 0 : i32
    %677 = tpu.memref_slice %arg2[%c0_i32_599, %c0_i32_600] : memref<64x128xf32, #tpu.memory_space<any>> -> memref<1x128xf32, #tpu.memory_space<any>>
    %c57_i32_601 = arith.constant 57 : i32
    %c0_i32_602 = arith.constant 0 : i32
    %678 = tpu.memref_slice %arg4[%c57_i32_601, %c0_i32_602] : memref<64x128xf32, #tpu.memory_space<vmem>> -> memref<1x128xf32, #tpu.memory_space<vmem>>
    %679 = tpu.memref_slice %arg5[%c0_i32_598] : memref<1x!tpu.dma_semaphore, #tpu.memory_space<semaphore_mem>> -> memref<1x!tpu.dma_semaphore, #tpu.memory_space<semaphore_mem>>
    %680 = tpu.memref_squeeze %679 : memref<1x!tpu.dma_semaphore, #tpu.memory_space<semaphore_mem>> -> memref<!tpu.dma_semaphore, #tpu.memory_space<semaphore_mem>>
    tpu.wait_dma2 semaphore(%680 : memref<!tpu.dma_semaphore, #tpu.memory_space<semaphore_mem>>) src(%677 : memref<1x128xf32, #tpu.memory_space<any>>) dst(%678 : memref<1x128xf32, #tpu.memory_space<vmem>>)
    %c0_i32_603 = arith.constant 0 : i32
    %c0_i32_604 = arith.constant 0 : i32
    %c0_i32_605 = arith.constant 0 : i32
    %681 = tpu.memref_slice %arg2[%c0_i32_604, %c0_i32_605] : memref<64x128xf32, #tpu.memory_space<any>> -> memref<1x128xf32, #tpu.memory_space<any>>
    %c58_i32_606 = arith.constant 58 : i32
    %c0_i32_607 = arith.constant 0 : i32
    %682 = tpu.memref_slice %arg4[%c58_i32_606, %c0_i32_607] : memref<64x128xf32, #tpu.memory_space<vmem>> -> memref<1x128xf32, #tpu.memory_space<vmem>>
    %683 = tpu.memref_slice %arg5[%c0_i32_603] : memref<1x!tpu.dma_semaphore, #tpu.memory_space<semaphore_mem>> -> memref<1x!tpu.dma_semaphore, #tpu.memory_space<semaphore_mem>>
    %684 = tpu.memref_squeeze %683 : memref<1x!tpu.dma_semaphore, #tpu.memory_space<semaphore_mem>> -> memref<!tpu.dma_semaphore, #tpu.memory_space<semaphore_mem>>
    tpu.wait_dma2 semaphore(%684 : memref<!tpu.dma_semaphore, #tpu.memory_space<semaphore_mem>>) src(%681 : memref<1x128xf32, #tpu.memory_space<any>>) dst(%682 : memref<1x128xf32, #tpu.memory_space<vmem>>)
    %c0_i32_608 = arith.constant 0 : i32
    %c0_i32_609 = arith.constant 0 : i32
    %c0_i32_610 = arith.constant 0 : i32
    %685 = tpu.memref_slice %arg2[%c0_i32_609, %c0_i32_610] : memref<64x128xf32, #tpu.memory_space<any>> -> memref<1x128xf32, #tpu.memory_space<any>>
    %c59_i32_611 = arith.constant 59 : i32
    %c0_i32_612 = arith.constant 0 : i32
    %686 = tpu.memref_slice %arg4[%c59_i32_611, %c0_i32_612] : memref<64x128xf32, #tpu.memory_space<vmem>> -> memref<1x128xf32, #tpu.memory_space<vmem>>
    %687 = tpu.memref_slice %arg5[%c0_i32_608] : memref<1x!tpu.dma_semaphore, #tpu.memory_space<semaphore_mem>> -> memref<1x!tpu.dma_semaphore, #tpu.memory_space<semaphore_mem>>
    %688 = tpu.memref_squeeze %687 : memref<1x!tpu.dma_semaphore, #tpu.memory_space<semaphore_mem>> -> memref<!tpu.dma_semaphore, #tpu.memory_space<semaphore_mem>>
    tpu.wait_dma2 semaphore(%688 : memref<!tpu.dma_semaphore, #tpu.memory_space<semaphore_mem>>) src(%685 : memref<1x128xf32, #tpu.memory_space<any>>) dst(%686 : memref<1x128xf32, #tpu.memory_space<vmem>>)
    %c0_i32_613 = arith.constant 0 : i32
    %c0_i32_614 = arith.constant 0 : i32
    %c0_i32_615 = arith.constant 0 : i32
    %689 = tpu.memref_slice %arg2[%c0_i32_614, %c0_i32_615] : memref<64x128xf32, #tpu.memory_space<any>> -> memref<1x128xf32, #tpu.memory_space<any>>
    %c60_i32_616 = arith.constant 60 : i32
    %c0_i32_617 = arith.constant 0 : i32
    %690 = tpu.memref_slice %arg4[%c60_i32_616, %c0_i32_617] : memref<64x128xf32, #tpu.memory_space<vmem>> -> memref<1x128xf32, #tpu.memory_space<vmem>>
    %691 = tpu.memref_slice %arg5[%c0_i32_613] : memref<1x!tpu.dma_semaphore, #tpu.memory_space<semaphore_mem>> -> memref<1x!tpu.dma_semaphore, #tpu.memory_space<semaphore_mem>>
    %692 = tpu.memref_squeeze %691 : memref<1x!tpu.dma_semaphore, #tpu.memory_space<semaphore_mem>> -> memref<!tpu.dma_semaphore, #tpu.memory_space<semaphore_mem>>
    tpu.wait_dma2 semaphore(%692 : memref<!tpu.dma_semaphore, #tpu.memory_space<semaphore_mem>>) src(%689 : memref<1x128xf32, #tpu.memory_space<any>>) dst(%690 : memref<1x128xf32, #tpu.memory_space<vmem>>)
    %c0_i32_618 = arith.constant 0 : i32
    %c0_i32_619 = arith.constant 0 : i32
    %c0_i32_620 = arith.constant 0 : i32
    %693 = tpu.memref_slice %arg2[%c0_i32_619, %c0_i32_620] : memref<64x128xf32, #tpu.memory_space<any>> -> memref<1x128xf32, #tpu.memory_space<any>>
    %c61_i32_621 = arith.constant 61 : i32
    %c0_i32_622 = arith.constant 0 : i32
    %694 = tpu.memref_slice %arg4[%c61_i32_621, %c0_i32_622] : memref<64x128xf32, #tpu.memory_space<vmem>> -> memref<1x128xf32, #tpu.memory_space<vmem>>
    %695 = tpu.memref_slice %arg5[%c0_i32_618] : memref<1x!tpu.dma_semaphore, #tpu.memory_space<semaphore_mem>> -> memref<1x!tpu.dma_semaphore, #tpu.memory_space<semaphore_mem>>
    %696 = tpu.memref_squeeze %695 : memref<1x!tpu.dma_semaphore, #tpu.memory_space<semaphore_mem>> -> memref<!tpu.dma_semaphore, #tpu.memory_space<semaphore_mem>>
    tpu.wait_dma2 semaphore(%696 : memref<!tpu.dma_semaphore, #tpu.memory_space<semaphore_mem>>) src(%693 : memref<1x128xf32, #tpu.memory_space<any>>) dst(%694 : memref<1x128xf32, #tpu.memory_space<vmem>>)
    %c0_i32_623 = arith.constant 0 : i32
    %c0_i32_624 = arith.constant 0 : i32
    %c0_i32_625 = arith.constant 0 : i32
    %697 = tpu.memref_slice %arg2[%c0_i32_624, %c0_i32_625] : memref<64x128xf32, #tpu.memory_space<any>> -> memref<1x128xf32, #tpu.memory_space<any>>
    %c62_i32_626 = arith.constant 62 : i32
    %c0_i32_627 = arith.constant 0 : i32
    %698 = tpu.memref_slice %arg4[%c62_i32_626, %c0_i32_627] : memref<64x128xf32, #tpu.memory_space<vmem>> -> memref<1x128xf32, #tpu.memory_space<vmem>>
    %699 = tpu.memref_slice %arg5[%c0_i32_623] : memref<1x!tpu.dma_semaphore, #tpu.memory_space<semaphore_mem>> -> memref<1x!tpu.dma_semaphore, #tpu.memory_space<semaphore_mem>>
    %700 = tpu.memref_squeeze %699 : memref<1x!tpu.dma_semaphore, #tpu.memory_space<semaphore_mem>> -> memref<!tpu.dma_semaphore, #tpu.memory_space<semaphore_mem>>
    tpu.wait_dma2 semaphore(%700 : memref<!tpu.dma_semaphore, #tpu.memory_space<semaphore_mem>>) src(%697 : memref<1x128xf32, #tpu.memory_space<any>>) dst(%698 : memref<1x128xf32, #tpu.memory_space<vmem>>)
    %c0_i32_628 = arith.constant 0 : i32
    %c0_i32_629 = arith.constant 0 : i32
    %c0_i32_630 = arith.constant 0 : i32
    %701 = tpu.memref_slice %arg2[%c0_i32_629, %c0_i32_630] : memref<64x128xf32, #tpu.memory_space<any>> -> memref<1x128xf32, #tpu.memory_space<any>>
    %c63_i32_631 = arith.constant 63 : i32
    %c0_i32_632 = arith.constant 0 : i32
    %702 = tpu.memref_slice %arg4[%c63_i32_631, %c0_i32_632] : memref<64x128xf32, #tpu.memory_space<vmem>> -> memref<1x128xf32, #tpu.memory_space<vmem>>
    %703 = tpu.memref_slice %arg5[%c0_i32_628] : memref<1x!tpu.dma_semaphore, #tpu.memory_space<semaphore_mem>> -> memref<1x!tpu.dma_semaphore, #tpu.memory_space<semaphore_mem>>
    %704 = tpu.memref_squeeze %703 : memref<1x!tpu.dma_semaphore, #tpu.memory_space<semaphore_mem>> -> memref<!tpu.dma_semaphore, #tpu.memory_space<semaphore_mem>>
    tpu.wait_dma2 semaphore(%704 : memref<!tpu.dma_semaphore, #tpu.memory_space<semaphore_mem>>) src(%701 : memref<1x128xf32, #tpu.memory_space<any>>) dst(%702 : memref<1x128xf32, #tpu.memory_space<vmem>>)
    %c0_633 = arith.constant 0 : index
    %c0_634 = arith.constant 0 : index
    %705 = vector.load %arg4[%c0_633, %c0_634] : memref<64x128xf32, #tpu.memory_space<vmem>>, vector<8x128xf32>
    %c8 = arith.constant 8 : index
    %c0_635 = arith.constant 0 : index
    %706 = vector.load %arg4[%c8, %c0_635] : memref<64x128xf32, #tpu.memory_space<vmem>>, vector<8x128xf32>
    %707 = arith.addf %705, %706 : vector<8x128xf32>
    %c16 = arith.constant 16 : index
    %c0_636 = arith.constant 0 : index
    %708 = vector.load %arg4[%c16, %c0_636] : memref<64x128xf32, #tpu.memory_space<vmem>>, vector<8x128xf32>
    %709 = arith.addf %707, %708 : vector<8x128xf32>
    %c24 = arith.constant 24 : index
    %c0_637 = arith.constant 0 : index
    %710 = vector.load %arg4[%c24, %c0_637] : memref<64x128xf32, #tpu.memory_space<vmem>>, vector<8x128xf32>
    %711 = arith.addf %709, %710 : vector<8x128xf32>
    %c32 = arith.constant 32 : index
    %c0_638 = arith.constant 0 : index
    %712 = vector.load %arg4[%c32, %c0_638] : memref<64x128xf32, #tpu.memory_space<vmem>>, vector<8x128xf32>
    %713 = arith.addf %711, %712 : vector<8x128xf32>
    %c40 = arith.constant 40 : index
    %c0_639 = arith.constant 0 : index
    %714 = vector.load %arg4[%c40, %c0_639] : memref<64x128xf32, #tpu.memory_space<vmem>>, vector<8x128xf32>
    %715 = arith.addf %713, %714 : vector<8x128xf32>
    %c48 = arith.constant 48 : index
    %c0_640 = arith.constant 0 : index
    %716 = vector.load %arg4[%c48, %c0_640] : memref<64x128xf32, #tpu.memory_space<vmem>>, vector<8x128xf32>
    %717 = arith.addf %715, %716 : vector<8x128xf32>
    %c56 = arith.constant 56 : index
    %c0_641 = arith.constant 0 : index
    %718 = vector.load %arg4[%c56, %c0_641] : memref<64x128xf32, #tpu.memory_space<vmem>>, vector<8x128xf32>
    %719 = arith.addf %717, %718 : vector<8x128xf32>
    %cst = arith.constant 1.250000e-01 : f32
    %720 = vector.broadcast %cst : f32 to vector<8x128xf32>
    %721 = arith.mulf %719, %720 : vector<8x128xf32>
    %c0_642 = arith.constant 0 : index
    %c0_643 = arith.constant 0 : index
    %722 = vector.load %arg3[%c0_642, %c0_643] : memref<8x128xf32, #tpu.memory_space<vmem>>, vector<8x128xf32>
    tpu.vector_store %arg3[%c0_642, %c0_643], %721 {strides = array<i32>} : memref<8x128xf32, #tpu.memory_space<vmem>>, vector<8x128xf32>,
    return
  }
  func.func @transform_1(%arg0: i32, %arg1: memref<8x8xi32, #tpu.memory_space<smem>>) -> (i32, i32) {
    %c0_i32 = arith.constant 0 : i32
    %c0_i32_0 = arith.constant 0 : i32
    return %arg0, %c0_i32 : i32, i32
  }
}

</mosaic_0001>

<bundles_post_ra>
// kernel: cbow_forward.3
= control target key start
LH: loop header
LB: loop body
LE: loop exit
PB: predicated region body
PF: predicated region fallthrough
CT: control target
= control target key end

     0   :  { %v181_v0 = vmov 0.0   ;;  %vm182_vm0 = vmmov 0   ;;  %s236_s1 = inlined_call_operand.vmem [shape: bf16[128,128], index: 1, kind: input, shape index: {}]   ;;  %s237_s0 = inlined_call_operand.vmem [shape: f32[8,128], index: 0, kind: input, shape index: {}]   ;;  %s238_s2 = inlined_call_operand.vmem [shape: f32[1,128], index: 2, kind: input, shape index: {}]   ;;  %s239_s3 = inlined_call_operand.vmem [shape: f32[8,128], index: 3, kind: output, shape index: {}]  }
   0x1   :  { %151 = vmatprep.subr.bf16.mxu0 %v181_v0  ;;  %v173_v1 = vld [vmem:[%s236_s1 + $0x38] sm:$0xff]   ;;  %167 = vmatprep.mubr.msk.bf16.mxu0 %vm182_vm0, %v181_v0  ;;  %v174_v2 = vld [vmem:[%s236_s1 + $0x30] sm:$0xff]   ;;  %v175_v3 = vld [vmem:[%s236_s1 + $0x28] sm:$0xff]  }
   0x2   :  { %152 = vmatpush3.bf16.xpose.msra.mxu0 %v173_v1  ;;  %v176_v4 = vld [vmem:[%s236_s1 + $0x20] sm:$0xff]   ;;  %v177_v5 = vld [vmem:[%s236_s1 + $0x18] sm:$0xff]   ;;  %v178_v6 = vld [vmem:[%s236_s1 + $0x10] sm:$0xff]  }
   0x3   :  { %153 = vmatprep.subr.bf16.mxu0 %v181_v0  ;;  %v179_v7 = vld [vmem:[%s236_s1 + $0x8] sm:$0xff]   ;;  %v180_v8 = vld [vmem:[%s236_s1] sm:$0xff]  }
   0x4   :  { %v15_v9 = vld [vmem:[%s237_s0] sm:$0xff] }
   0x5   :  { %v16_v10 = vpack.c.bf16 %v15_v9, %v15_v9  ;;  %v133_v11 = vld [vmem:[%s238_s2] ss:$0 sm:$0xff] }
   0xa   :  { %154 = vmatpush3.bf16.xpose.msra.mxu0 %v174_v2 }
   0xb   :  { %155 = vmatprep.subr.bf16.mxu0 %v181_v0 }
  0x12   :  { %156 = vmatpush3.bf16.xpose.msra.mxu0 %v175_v3 }
  0x13   :  { %157 = vmatprep.subr.bf16.mxu0 %v181_v0 }
  0x1a   :  { %158 = vmatpush3.bf16.xpose.msra.mxu0 %v176_v4 }
  0x1b   :  { %159 = vmatprep.subr.bf16.mxu0 %v181_v0 }
  0x22   :  { %160 = vmatpush3.bf16.xpose.msra.mxu0 %v177_v5 }
  0x23   :  { %161 = vmatprep.subr.bf16.mxu0 %v181_v0 }
  0x2a   :  { %162 = vmatpush3.bf16.xpose.msra.mxu0 %v178_v6 }
  0x2b   :  { %163 = vmatprep.subr.bf16.mxu0 %v181_v0 }
  0x32   :  { %164 = vmatpush3.bf16.xpose.msra.mxu0 %v179_v7 }
  0x33   :  { %165 = vmatprep.subr.bf16.mxu0 %v181_v0 }
  0x3a   :  { %166 = vmatpush3.bf16.xpose.msra.mxu0 %v180_v8 }
  0x41   :  { %168 = vmatmul.mubr.bf16.vlgmr.msra.gmra.mxu0 %v16_v10 }
 0x101   :  { %v122_v12 = vpop.f32.mrf.mxu0 }
 0x102   :  { %v123_v13 = vadd.f32 %v133_v11, %v122_v12 }
 0x103   :  { %v169_v14 = vpop.f32.mrf.mxu0 }
 0x104   :  { %128 = vst [vmem:[%s239_s3] sm:$0xff] %v123_v13 }
 0x105   :  { %v125_v15 = vpop.f32.mrf.mxu0 }
 0x107   :  { %v170_v16 = vpop.f32.mrf.mxu0 }

// kernel: cbow_forward.2
= control target key start
LH: loop header
LB: loop body
LE: loop exit
PB: predicated region body
PF: predicated region fallthrough
CT: control target
= control target key end

     0   :  { %s3942_s0 = inlined_call_operand.vmem [shape: s32[8,8], index: 0, kind: input, shape index: {}]   ;;  %s3943_s1 = inlined_call_operand.hbm [shape: f32[64,128], index: 1, kind: input, shape index: {}]   ;;  %s3944_s2 = inlined_call_operand.vmem [shape: f32[8,128], index: 2, kind: output, shape index: {}]  }
   0x1   :  { %s7_s11 = sshll.u32 %s3942_s0, 4  ;;  %s8_s11 = int_to_ptr.vmem [resolvable:$true] %s7_s11 }
   0x2   :  { %s1521_s12 = scalar_lea.vmem %s8_s11, 128  ;;  %p1526_p1 = scmp.lt.s32.totalorder %s8_s11, %s8_s11 }
   0x3   :  { %p1522_p0 = scmp.ne.s32.totalorder %s8_s11, %s1521_s12  ;;  %p1527_p2 = scmp.lt.s32.totalorder %s1521_s12, %s1521_s12 }
   0x5   :  { %p1528_p3 = por %p1527_p2, %p1526_p1 }
   0x7   :  { %p1529_p4 = pnand %p1528_p3, %p1522_p0 }
   0x9   :  { %1532 = shalt.err (!%p1529_p4)  }
   0xa   :  { %s2945_s13 = smov [#allocation5]  }
   0xb   :  { %10 = dma.vmem_to_smem %s8_s11, 128, %s2945_s13, [#allocation4] }
   0xc   :  { %2941 = dma.done.wait [#allocation4], 128 }
   0xd   :  { %2942 = vsyncadd [#allocation4], 4294967168 }
   0xe   :  { %12 = sfence }
   0xf   :  { %s15_s14 = sld [smem:[#allocation5]]  ;;  %s2946_s15 = smov [#allocation2]  }
  0x10   :  { %s25_s16 = sshll.u32 %s2946_s15, 4  ;;  %s3028_s17 = sld [smem:[#allocation5 + $0x80]]  ;;  %s3030_s16 = int_to_ptr.vmem [resolvable:$true] %s25_s16 }
  0x11   :  { %s2947_s0 = smov [#allocation2 + $0x1]   ;;  %s3032_s19 = sld [smem:[#allocation5 + $0x100]] }
  0x12   :  { %s42_s18 = sshll.u32 %s2947_s0, 4  ;;  %s2948_s20 = smov [#allocation2 + $0x2]   ;;  %s3034_s18 = int_to_ptr.vmem [resolvable:$true] %s42_s18 }
  0x13   :  { %s59_s21 = sshll.u32 %s2948_s20, 4  ;;  %s3036_s22 = sld [smem:[#allocation5 + $0x180]]  ;;  %s3038_s21 = int_to_ptr.vmem [resolvable:$true] %s59_s21 }
  0x14   :  { %s3047_s3 = scalar_lea.hbm %s3943_s1, 1024 }
  0x15   :  { %s1328_s23 = sshll.u32 %s15_s14, 4 }
  0x16   :  { %s17_s26 = scalar_lea.hbm %s3943_s1, %s1328_s23  ;;  %s1330_s27 = sshll.u32 %s3028_s17, 4 }
  0x17   :  { %s1533_s28 = scalar_lea.hbm %s17_s26, 16  ;;  %p1536_p6 = scmp.lt.s32.totalorder %s17_s26, %s3943_s1 }
  0x18   :  { %p1534_p5 = scmp.ne.s32.totalorder %s17_s26, %s1533_s28  ;;  %p1537_p7 = scmp.lt.s32.totalorder %s3047_s3, %s1533_s28 }
  0x1a   :  { %p1538_p8 = por %p1537_p7, %p1536_p6 }
  0x1c   :  { %p1539_p9 = pnand %p1538_p8, %p1534_p5 }
  0x1e   :  { %1542 = shalt.err (!%p1539_p9)  }
  0x1f   :  { %s1543_s6 = scalar_lea.vmem %s3030_s16, 16  ;;  %s3056_s7 = scalar_lea.vmem %s3030_s16, 1024 }
  0x20   :  { %p1544_p10 = scmp.ne.s32.totalorder %s3030_s16, %s1543_s6  ;;  %p1548_p11 = scmp.lt.s32.totalorder %s3030_s16, %s3030_s16 }
  0x21   :  { %p1549_p12 = scmp.lt.s32.totalorder %s3056_s7, %s1543_s6 }
  0x23   :  { %p1550_p13 = por %p1549_p12, %p1548_p11 }
  0x25   :  { %p1551_p0 = pnand %p1550_p13, %p1544_p10 }
  0x27   :  { %1554 = shalt.err (!%p1551_p0)  }
  0x28   :  { %28 = dma.hbm_to_vmem [thread:$0]  %s17_s26, 16, %s3030_s16, [#allocation3] }
  0x29   :  { %s33_s10 = scalar_lea.hbm %s3943_s1, %s1330_s27  ;;  %s1332_s11 = sshll.u32 %s3032_s19, 4 }
  0x2a   :  { %s1555_s12 = scalar_lea.hbm %s33_s10, 16  ;;  %p1558_p2 = scmp.lt.s32.totalorder %s33_s10, %s3943_s1 }
  0x2b   :  { %p1556_p1 = scmp.ne.s32.totalorder %s33_s10, %s1555_s12  ;;  %p1559_p3 = scmp.lt.s32.totalorder %s3047_s3, %s1555_s12 }
  0x2d   :  { %p1560_p4 = por %p1559_p3, %p1558_p2 }
  0x2f   :  { %p1561_p5 = pnand %p1560_p4, %p1556_p1 }
  0x31   :  { %1564 = shalt.err (!%p1561_p5)  }
  0x32   :  { %s1565_s15 = scalar_lea.vmem %s3034_s18, 16  ;;  %p1570_p7 = scmp.lt.s32.totalorder %s3034_s18, %s3030_s16 }
  0x33   :  { %p1566_p6 = scmp.ne.s32.totalorder %s3034_s18, %s1565_s15  ;;  %p1571_p8 = scmp.lt.s32.totalorder %s3056_s7, %s1565_s15 }
  0x35   :  { %p1572_p9 = por %p1571_p8, %p1570_p7 }
  0x37   :  { %p1573_p10 = pnand %p1572_p9, %p1566_p6 }
  0x39   :  { %1576 = shalt.err (!%p1573_p10)  }
  0x3a   :  { %45 = dma.hbm_to_vmem [thread:$0]  %s33_s10, 16, %s3034_s18, [#allocation3] }
  0x3b   :  { %s50_s19 = scalar_lea.hbm %s3943_s1, %s1332_s11  ;;  %s1334_s20 = sshll.u32 %s3036_s22, 4 }
  0x3c   :  { %s1577_s23 = scalar_lea.hbm %s50_s19, 16  ;;  %p1580_p12 = scmp.lt.s32.totalorder %s50_s19, %s3943_s1 }
  0x3d   :  { %p1578_p11 = scmp.ne.s32.totalorder %s50_s19, %s1577_s23  ;;  %p1581_p13 = scmp.lt.s32.totalorder %s3047_s3, %s1577_s23 }
  0x3f   :  { %p1582_p0 = por %p1581_p13, %p1580_p12 }
  0x41   :  { %p1583_p1 = pnand %p1582_p0, %p1578_p11 }
  0x43   :  { %1586 = shalt.err (!%p1583_p1)  }
  0x44   :  { %s1587_s18 = scalar_lea.vmem %s3038_s21, 16  ;;  %p1592_p3 = scmp.lt.s32.totalorder %s3038_s21, %s3030_s16 }
  0x45   :  { %p1588_p2 = scmp.ne.s32.totalorder %s3038_s21, %s1587_s18  ;;  %p1593_p4 = scmp.lt.s32.totalorder %s3056_s7, %s1587_s18 }
  0x47   :  { %p1594_p5 = por %p1593_p4, %p1592_p3 }
  0x49   :  { %p1595_p6 = pnand %p1594_p5, %p1588_p2 }
  0x4b   :  { %1598 = shalt.err (!%p1595_p6)  }
  0x4c   :  { %62 = dma.hbm_to_vmem [thread:$0]  %s50_s19, 16, %s3038_s21, [#allocation3] }
  0x4d   :  { %s67_s27 = scalar_lea.hbm %s3943_s1, %s1334_s20  ;;  %s2949_s28 = smov [#allocation2 + $0x3]  }
  0x4e   :  { %s76_s29 = sshll.u32 %s2949_s28, 4  ;;  %s1335_s30 = sld [smem:[#allocation5 + $0x200]]  ;;  %s77_s29 = int_to_ptr.vmem [resolvable:$true] %s76_s29 }
  0x4f   :  { %s1599_s4 = scalar_lea.hbm %s67_s27, 16  ;;  %p1602_p8 = scmp.lt.s32.totalorder %s67_s27, %s3943_s1 }
  0x50   :  { %p1600_p7 = scmp.ne.s32.totalorder %s67_s27, %s1599_s4  ;;  %p1603_p9 = scmp.lt.s32.totalorder %s3047_s3, %s1599_s4 }
  0x52   :  { %p1604_p10 = por %p1603_p9, %p1602_p8 }
  0x54   :  { %p1605_p11 = pnand %p1604_p10, %p1600_p7 }
  0x56   :  { %1608 = shalt.err (!%p1605_p11)  }
  0x57   :  { %s1609_s8 = scalar_lea.vmem %s77_s29, 16  ;;  %p1614_p13 = scmp.lt.s32.totalorder %s77_s29, %s3030_s16 }
  0x58   :  { %p1610_p12 = scmp.ne.s32.totalorder %s77_s29, %s1609_s8  ;;  %p1615_p0 = scmp.lt.s32.totalorder %s3056_s7, %s1609_s8 }
  0x5a   :  { %p1616_p1 = por %p1615_p0, %p1614_p13 }
  0x5c   :  { %p1617_p2 = pnand %p1616_p1, %p1610_p12 }
  0x5e   :  { %1620 = shalt.err (!%p1617_p2)  }
  0x5f   :  { %79 = dma.hbm_to_vmem [thread:$0]  %s67_s27, 16, %s77_s29, [#allocation3] }
  0x60   :  { %s2950_s21 = smov [#allocation2 + $0x4]   ;;  %s1337_s10 = sld [smem:[#allocation5 + $0x280]] }
  0x61   :  { %s93_s9 = sshll.u32 %s2950_s21, 4  ;;  %s2951_s11 = smov [#allocation2 + $0x5]   ;;  %s94_s9 = int_to_ptr.vmem [resolvable:$true] %s93_s9 }
  0x62   :  { %s110_s12 = sshll.u32 %s2951_s11, 4  ;;  %s3099_s13 = sld [smem:[#allocation5 + $0x300]]  ;;  %s3101_s12 = int_to_ptr.vmem [resolvable:$true] %s110_s12 }
  0x63   :  { %s1336_s14 = sshll.u32 %s1335_s30, 4 }
  0x64   :  { %s84_s0 = scalar_lea.hbm %s3943_s1, %s1336_s14 }
  0x65   :  { %s1621_s19 = scalar_lea.hbm %s84_s0, 16  ;;  %p1624_p4 = scmp.lt.s32.totalorder %s84_s0, %s3943_s1 }
  0x66   :  { %p1622_p3 = scmp.ne.s32.totalorder %s84_s0, %s1621_s19  ;;  %p1625_p5 = scmp.lt.s32.totalorder %s3047_s3, %s1621_s19 }
  0x68   :  { %p1626_p6 = por %p1625_p5, %p1624_p4 }
  0x6a   :  { %p1627_p7 = pnand %p1626_p6, %p1622_p3 }
  0x6c   :  { %1630 = shalt.err (!%p1627_p7)  }
  0x6d   :  { %s1631_s24 = scalar_lea.vmem %s94_s9, 16  ;;  %p1636_p9 = scmp.lt.s32.totalorder %s94_s9, %s3030_s16 }
  0x6e   :  { %p1632_p8 = scmp.ne.s32.totalorder %s94_s9, %s1631_s24  ;;  %p1637_p10 = scmp.lt.s32.totalorder %s3056_s7, %s1631_s24 }
  0x70   :  { %p1638_p11 = por %p1637_p10, %p1636_p9 }
  0x72   :  { %p1639_p12 = pnand %p1638_p11, %p1632_p8 }
  0x74   :  { %1642 = shalt.err (!%p1639_p12)  }
  0x75   :  { %96 = dma.hbm_to_vmem [thread:$0]  %s84_s0, 16, %s94_s9, [#allocation3] }
  0x76   :  { %s1338_s25 = sshll.u32 %s1337_s10, 4  ;;  %s2952_s18 = smov [#allocation2 + $0x6]  }
  0x77   :  { %s127_s22 = sshll.u32 %s2952_s18, 4  ;;  %s101_s28 = scalar_lea.hbm %s3943_s1, %s1338_s25  ;;  %s3115_s22 = int_to_ptr.vmem [resolvable:$true] %s127_s22 }
  0x78   :  { %s1643_s29 = scalar_lea.hbm %s101_s28, 16  ;;  %p1646_p0 = scmp.lt.s32.totalorder %s101_s28, %s3943_s1 }
  0x79   :  { %p1644_p13 = scmp.ne.s32.totalorder %s101_s28, %s1643_s29  ;;  %p1647_p1 = scmp.lt.s32.totalorder %s3047_s3, %s1643_s29 }
  0x7b   :  { %p1648_p2 = por %p1647_p1, %p1646_p0 }
  0x7d   :  { %p1649_p3 = pnand %p1648_p2, %p1644_p13 }
  0x7f   :  { %1652 = shalt.err (!%p1649_p3)  }
  0x80   :  { %s1653_s5 = scalar_lea.vmem %s3101_s12, 16  ;;  %p1658_p5 = scmp.lt.s32.totalorder %s3101_s12, %s3030_s16 }
  0x81   :  { %p1654_p4 = scmp.ne.s32.totalorder %s3101_s12, %s1653_s5  ;;  %p1659_p6 = scmp.lt.s32.totalorder %s3056_s7, %s1653_s5 }
  0x83   :  { %p1660_p7 = por %p1659_p6, %p1658_p5 }
  0x85   :  { %p1661_p8 = pnand %p1660_p7, %p1654_p4 }
  0x87   :  { %1664 = shalt.err (!%p1661_p8)  }
  0x88   :  { %113 = dma.hbm_to_vmem [thread:$0]  %s101_s28, 16, %s3101_s12, [#allocation3] }
  0x89   :  { %s1340_s6 = sshll.u32 %s3099_s13, 4  ;;  %s1341_s8 = sld [smem:[#allocation5 + $0x380]] }
  0x8a   :  { %s118_s10 = scalar_lea.hbm %s3943_s1, %s1340_s6 }
  0x8b   :  { %s1665_s11 = scalar_lea.hbm %s118_s10, 16  ;;  %p1668_p10 = scmp.lt.s32.totalorder %s118_s10, %s3943_s1 }
  0x8c   :  { %p1666_p9 = scmp.ne.s32.totalorder %s118_s10, %s1665_s11  ;;  %p1669_p11 = scmp.lt.s32.totalorder %s3047_s3, %s1665_s11 }
  0x8e   :  { %p1670_p12 = por %p1669_p11, %p1668_p10 }
  0x90   :  { %p1671_p13 = pnand %p1670_p12, %p1666_p9 }
  0x92   :  { %1674 = shalt.err (!%p1671_p13)  }
  0x93   :  { %s1675_s12 = scalar_lea.vmem %s3115_s22, 16  ;;  %p1680_p1 = scmp.lt.s32.totalorder %s3115_s22, %s3030_s16 }
  0x94   :  { %p1676_p0 = scmp.ne.s32.totalorder %s3115_s22, %s1675_s12  ;;  %p1681_p2 = scmp.lt.s32.totalorder %s3056_s7, %s1675_s12 }
  0x96   :  { %p1682_p3 = por %p1681_p2, %p1680_p1 }
  0x98   :  { %p1683_p4 = pnand %p1682_p3, %p1676_p0 }
  0x9a   :  { %1686 = shalt.err (!%p1683_p4)  }
  0x9b   :  { %130 = dma.hbm_to_vmem [thread:$0]  %s118_s10, 16, %s3115_s22, [#allocation3] }
  0x9c   :  { %s2953_s13 = smov [#allocation2 + $0x7]   ;;  %s1343_s0 = sld [smem:[#allocation5 + $0x1]] }
  0x9d   :  { %s144_s17 = sshll.u32 %s2953_s13, 4  ;;  %s2954_s19 = smov [#allocation2 + $0x8]   ;;  %s145_s17 = int_to_ptr.vmem [resolvable:$true] %s144_s17 }
  0x9e   :  { %s160_s20 = sshll.u32 %s2954_s19, 4  ;;  %s3141_s23 = sld [smem:[#allocation5 + $0x81]]  ;;  %s3143_s20 = int_to_ptr.vmem [resolvable:$true] %s160_s20 }
  0x9f   :  { %s1342_s24 = sshll.u32 %s1341_s8, 4 }
  0xa0   :  { %s135_s26 = scalar_lea.hbm %s3943_s1, %s1342_s24 }
  0xa1   :  { %s1687_s27 = scalar_lea.hbm %s135_s26, 16  ;;  %p1690_p6 = scmp.lt.s32.totalorder %s135_s26, %s3943_s1 }
  0xa2   :  { %p1688_p5 = scmp.ne.s32.totalorder %s135_s26, %s1687_s27  ;;  %p1691_p7 = scmp.lt.s32.totalorder %s3047_s3, %s1687_s27 }
  0xa4   :  { %p1692_p8 = por %p1691_p7, %p1690_p6 }
  0xa6   :  { %p1693_p9 = pnand %p1692_p8, %p1688_p5 }
  0xa8   :  { %1696 = shalt.err (!%p1693_p9)  }
  0xa9   :  { %s1697_s22 = scalar_lea.vmem %s145_s17, 16  ;;  %p1702_p11 = scmp.lt.s32.totalorder %s145_s17, %s3030_s16 }
  0xaa   :  { %p1698_p10 = scmp.ne.s32.totalorder %s145_s17, %s1697_s22  ;;  %p1703_p12 = scmp.lt.s32.totalorder %s3056_s7, %s1697_s22 }
  0xac   :  { %p1704_p13 = por %p1703_p12, %p1702_p11 }
  0xae   :  { %p1705_p0 = pnand %p1704_p13, %p1698_p10 }
  0xb0   :  { %1708 = shalt.err (!%p1705_p0)  }
  0xb1   :  { %147 = dma.hbm_to_vmem [thread:$0]  %s135_s26, 16, %s145_s17, [#allocation3] }
  0xb2   :  { %s1344_s30 = sshll.u32 %s1343_s0, 4  ;;  %s2955_s4 = smov [#allocation2 + $0x9]  }
  0xb3   :  { %s176_s5 = sshll.u32 %s2955_s4, 4  ;;  %s151_s21 = scalar_lea.hbm %s3943_s1, %s1344_s30  ;;  %s3157_s5 = int_to_ptr.vmem [resolvable:$true] %s176_s5 }
  0xb4   :  { %s1709_s9 = scalar_lea.hbm %s151_s21, 16  ;;  %p1712_p2 = scmp.lt.s32.totalorder %s151_s21, %s3943_s1 }
  0xb5   :  { %p1710_p1 = scmp.ne.s32.totalorder %s151_s21, %s1709_s9  ;;  %p1713_p3 = scmp.lt.s32.totalorder %s3047_s3, %s1709_s9 }
  0xb7   :  { %p1714_p4 = por %p1713_p3, %p1712_p2 }
  0xb9   :  { %p1715_p5 = pnand %p1714_p4, %p1710_p1 }
  0xbb   :  { %1718 = shalt.err (!%p1715_p5)  }
  0xbc   :  { %s1719_s14 = scalar_lea.vmem %s3143_s20, 16  ;;  %p1724_p7 = scmp.lt.s32.totalorder %s3143_s20, %s3030_s16 }
  0xbd   :  { %p1720_p6 = scmp.ne.s32.totalorder %s3143_s20, %s1719_s14  ;;  %p1725_p8 = scmp.lt.s32.totalorder %s3056_s7, %s1719_s14 }
  0xbf   :  { %p1726_p9 = por %p1725_p8, %p1724_p7 }
  0xc1   :  { %p1727_p10 = pnand %p1726_p9, %p1720_p6 }
  0xc3   :  { %1730 = shalt.err (!%p1727_p10)  }
  0xc4   :  { %163 = dma.hbm_to_vmem [thread:$0]  %s151_s21, 16, %s3143_s20, [#allocation3] }
  0xc5   :  { %s1346_s15 = sshll.u32 %s3141_s23, 4  ;;  %s1347_s12 = sld [smem:[#allocation5 + $0x101]] }
  0xc6   :  { %s167_s0 = scalar_lea.hbm %s3943_s1, %s1346_s15 }
  0xc7   :  { %s1731_s19 = scalar_lea.hbm %s167_s0, 16  ;;  %p1734_p12 = scmp.lt.s32.totalorder %s167_s0, %s3943_s1 }
  0xc8   :  { %p1732_p11 = scmp.ne.s32.totalorder %s167_s0, %s1731_s19  ;;  %p1735_p13 = scmp.lt.s32.totalorder %s3047_s3, %s1731_s19 }
  0xca   :  { %p1736_p0 = por %p1735_p13, %p1734_p12 }
  0xcc   :  { %p1737_p1 = pnand %p1736_p0, %p1732_p11 }
  0xce   :  { %1740 = shalt.err (!%p1737_p1)  }
  0xcf   :  { %s1741_s20 = scalar_lea.vmem %s3157_s5, 16  ;;  %p1746_p3 = scmp.lt.s32.totalorder %s3157_s5, %s3030_s16 }
  0xd0   :  { %p1742_p2 = scmp.ne.s32.totalorder %s3157_s5, %s1741_s20  ;;  %p1747_p4 = scmp.lt.s32.totalorder %s3056_s7, %s1741_s20 }
  0xd2   :  { %p1748_p5 = por %p1747_p4, %p1746_p3 }
  0xd4   :  { %p1749_p6 = pnand %p1748_p5, %p1742_p2 }
  0xd6   :  { %1752 = shalt.err (!%p1749_p6)  }
  0xd7   :  { %179 = dma.hbm_to_vmem [thread:$0]  %s167_s0, 16, %s3157_s5, [#allocation3] }
  0xd8   :  { %s2956_s23 = smov [#allocation2 + $0xa]   ;;  %s1349_s26 = sld [smem:[#allocation5 + $0x181]] }
  0xd9   :  { %s192_s18 = sshll.u32 %s2956_s23, 4  ;;  %s2957_s27 = smov [#allocation2 + $0xb]   ;;  %s193_s18 = int_to_ptr.vmem [resolvable:$true] %s192_s18 }
  0xda   :  { %s208_s28 = sshll.u32 %s2957_s27, 4  ;;  %s3183_s29 = sld [smem:[#allocation5 + $0x201]]  ;;  %s3185_s28 = int_to_ptr.vmem [resolvable:$true] %s208_s28 }
  0xdb   :  { %s1348_s22 = sshll.u32 %s1347_s12, 4 }
  0xdc   :  { %s183_s6 = scalar_lea.hbm %s3943_s1, %s1348_s22 }
  0xdd   :  { %s1753_s8 = scalar_lea.hbm %s183_s6, 16  ;;  %p1756_p8 = scmp.lt.s32.totalorder %s183_s6, %s3943_s1 }
  0xde   :  { %p1754_p7 = scmp.ne.s32.totalorder %s183_s6, %s1753_s8  ;;  %p1757_p9 = scmp.lt.s32.totalorder %s3047_s3, %s1753_s8 }
  0xe0   :  { %p1758_p10 = por %p1757_p9, %p1756_p8 }
  0xe2   :  { %p1759_p11 = pnand %p1758_p10, %p1754_p7 }
  0xe4   :  { %1762 = shalt.err (!%p1759_p11)  }
  0xe5   :  { %s1763_s5 = scalar_lea.vmem %s193_s18, 16  ;;  %p1768_p13 = scmp.lt.s32.totalorder %s193_s18, %s3030_s16 }
  0xe6   :  { %p1764_p12 = scmp.ne.s32.totalorder %s193_s18, %s1763_s5  ;;  %p1769_p0 = scmp.lt.s32.totalorder %s3056_s7, %s1763_s5 }
  0xe8   :  { %p1770_p1 = por %p1769_p0, %p1768_p13 }
  0xea   :  { %p1771_p2 = pnand %p1770_p1, %p1764_p12 }
  0xec   :  { %1774 = shalt.err (!%p1771_p2)  }
  0xed   :  { %195 = dma.hbm_to_vmem [thread:$0]  %s183_s6, 16, %s193_s18, [#allocation3] }
  0xee   :  { %s1350_s10 = sshll.u32 %s1349_s26, 4  ;;  %s2958_s11 = smov [#allocation2 + $0xc]  }
  0xef   :  { %s224_s14 = sshll.u32 %s2958_s11, 4  ;;  %s199_s13 = scalar_lea.hbm %s3943_s1, %s1350_s10  ;;  %s3199_s14 = int_to_ptr.vmem [resolvable:$true] %s224_s14 }
  0xf0   :  { %s1775_s17 = scalar_lea.hbm %s199_s13, 16  ;;  %p1778_p4 = scmp.lt.s32.totalorder %s199_s13, %s3943_s1 }
  0xf1   :  { %p1776_p3 = scmp.ne.s32.totalorder %s199_s13, %s1775_s17  ;;  %p1779_p5 = scmp.lt.s32.totalorder %s3047_s3, %s1775_s17 }
  0xf3   :  { %p1780_p6 = por %p1779_p5, %p1778_p4 }
  0xf5   :  { %p1781_p7 = pnand %p1780_p6, %p1776_p3 }
  0xf7   :  { %1784 = shalt.err (!%p1781_p7)  }
  0xf8   :  { %s1785_s24 = scalar_lea.vmem %s3185_s28, 16  ;;  %p1790_p9 = scmp.lt.s32.totalorder %s3185_s28, %s3030_s16 }
  0xf9   :  { %p1786_p8 = scmp.ne.s32.totalorder %s3185_s28, %s1785_s24  ;;  %p1791_p10 = scmp.lt.s32.totalorder %s3056_s7, %s1785_s24 }
  0xfb   :  { %p1792_p11 = por %p1791_p10, %p1790_p9 }
  0xfd   :  { %p1793_p12 = pnand %p1792_p11, %p1786_p8 }
  0xff   :  { %1796 = shalt.err (!%p1793_p12)  }
 0x100   :  { %211 = dma.hbm_to_vmem [thread:$0]  %s199_s13, 16, %s3185_s28, [#allocation3] }
 0x101   :  { %s1352_s25 = sshll.u32 %s3183_s29, 4  ;;  %s1353_s20 = sld [smem:[#allocation5 + $0x281]] }
 0x102   :  { %s215_s26 = scalar_lea.hbm %s3943_s1, %s1352_s25 }
 0x103   :  { %s1797_s27 = scalar_lea.hbm %s215_s26, 16  ;;  %p1800_p0 = scmp.lt.s32.totalorder %s215_s26, %s3943_s1 }
 0x104   :  { %p1798_p13 = scmp.ne.s32.totalorder %s215_s26, %s1797_s27  ;;  %p1801_p1 = scmp.lt.s32.totalorder %s3047_s3, %s1797_s27 }
 0x106   :  { %p1802_p2 = por %p1801_p1, %p1800_p0 }
 0x108   :  { %p1803_p3 = pnand %p1802_p2, %p1798_p13 }
 0x10a   :  { %1806 = shalt.err (!%p1803_p3)  }
 0x10b   :  { %s1807_s28 = scalar_lea.vmem %s3199_s14, 16  ;;  %p1812_p5 = scmp.lt.s32.totalorder %s3199_s14, %s3030_s16 }
 0x10c   :  { %p1808_p4 = scmp.ne.s32.totalorder %s3199_s14, %s1807_s28  ;;  %p1813_p6 = scmp.lt.s32.totalorder %s3056_s7, %s1807_s28 }
 0x10e   :  { %p1814_p7 = por %p1813_p6, %p1812_p5 }
 0x110   :  { %p1815_p8 = pnand %p1814_p7, %p1808_p4 }
 0x112   :  { %1818 = shalt.err (!%p1815_p8)  }
 0x113   :  { %227 = dma.hbm_to_vmem [thread:$0]  %s215_s26, 16, %s3199_s14, [#allocation3] }
 0x114   :  { %s2959_s29 = smov [#allocation2 + $0xd]   ;;  %s1355_s6 = sld [smem:[#allocation5 + $0x301]] }
 0x115   :  { %s240_s4 = sshll.u32 %s2959_s29, 4  ;;  %s2960_s8 = smov [#allocation2 + $0xe]   ;;  %s241_s4 = int_to_ptr.vmem [resolvable:$true] %s240_s4 }
 0x116   :  { %s256_s21 = sshll.u32 %s2960_s8, 4  ;;  %s3225_s9 = sld [smem:[#allocation5 + $0x381]]  ;;  %s3227_s21 = int_to_ptr.vmem [resolvable:$true] %s256_s21 }
 0x117   :  { %s1354_s5 = sshll.u32 %s1353_s20, 4 }
 0x118   :  { %s231_s15 = scalar_lea.hbm %s3943_s1, %s1354_s5 }
 0x119   :  { %s1819_s12 = scalar_lea.hbm %s231_s15, 16  ;;  %p1822_p10 = scmp.lt.s32.totalorder %s231_s15, %s3943_s1 }
 0x11a   :  { %p1820_p9 = scmp.ne.s32.totalorder %s231_s15, %s1819_s12  ;;  %p1823_p11 = scmp.lt.s32.totalorder %s3047_s3, %s1819_s12 }
 0x11c   :  { %p1824_p12 = por %p1823_p11, %p1822_p10 }
 0x11e   :  { %p1825_p13 = pnand %p1824_p12, %p1820_p9 }
 0x120   :  { %1828 = shalt.err (!%p1825_p13)  }
 0x121   :  { %s1829_s14 = scalar_lea.vmem %s241_s4, 16  ;;  %p1834_p1 = scmp.lt.s32.totalorder %s241_s4, %s3030_s16 }
 0x122   :  { %p1830_p0 = scmp.ne.s32.totalorder %s241_s4, %s1829_s14  ;;  %p1835_p2 = scmp.lt.s32.totalorder %s3056_s7, %s1829_s14 }
 0x124   :  { %p1836_p3 = por %p1835_p2, %p1834_p1 }
 0x126   :  { %p1837_p4 = pnand %p1836_p3, %p1830_p0 }
 0x128   :  { %1840 = shalt.err (!%p1837_p4)  }
 0x129   :  { %243 = dma.hbm_to_vmem [thread:$0]  %s231_s15, 16, %s241_s4, [#allocation3] }
 0x12a   :  { %s1356_s0 = sshll.u32 %s1355_s6, 4  ;;  %s2961_s19 = smov [#allocation2 + $0xf]  }
 0x12b   :  { %s272_s24 = sshll.u32 %s2961_s19, 4  ;;  %s247_s23 = scalar_lea.hbm %s3943_s1, %s1356_s0  ;;  %s3241_s24 = int_to_ptr.vmem [resolvable:$true] %s272_s24 }
 0x12c   :  { %s1841_s18 = scalar_lea.hbm %s247_s23, 16  ;;  %p1844_p6 = scmp.lt.s32.totalorder %s247_s23, %s3943_s1 }
 0x12d   :  { %p1842_p5 = scmp.ne.s32.totalorder %s247_s23, %s1841_s18  ;;  %p1845_p7 = scmp.lt.s32.totalorder %s3047_s3, %s1841_s18 }
 0x12f   :  { %p1846_p8 = por %p1845_p7, %p1844_p6 }
 0x131   :  { %p1847_p9 = pnand %p1846_p8, %p1842_p5 }
 0x133   :  { %1850 = shalt.err (!%p1847_p9)  }
 0x134   :  { %s1851_s22 = scalar_lea.vmem %s3227_s21, 16  ;;  %p1856_p11 = scmp.lt.s32.totalorder %s3227_s21, %s3030_s16 }
 0x135   :  { %p1852_p10 = scmp.ne.s32.totalorder %s3227_s21, %s1851_s22  ;;  %p1857_p12 = scmp.lt.s32.totalorder %s3056_s7, %s1851_s22 }
 0x137   :  { %p1858_p13 = por %p1857_p12, %p1856_p11 }
 0x139   :  { %p1859_p0 = pnand %p1858_p13, %p1852_p10 }
 0x13b   :  { %1862 = shalt.err (!%p1859_p0)  }
 0x13c   :  { %259 = dma.hbm_to_vmem [thread:$0]  %s247_s23, 16, %s3227_s21, [#allocation3] }
 0x13d   :  { %s1358_s30 = sshll.u32 %s3225_s9, 4  ;;  %s1359_s28 = sld [smem:[#allocation5 + $0x2]] }
 0x13e   :  { %s263_s6 = scalar_lea.hbm %s3943_s1, %s1358_s30 }
 0x13f   :  { %s1863_s8 = scalar_lea.hbm %s263_s6, 16  ;;  %p1866_p2 = scmp.lt.s32.totalorder %s263_s6, %s3943_s1 }
 0x140   :  { %p1864_p1 = scmp.ne.s32.totalorder %s263_s6, %s1863_s8  ;;  %p1867_p3 = scmp.lt.s32.totalorder %s3047_s3, %s1863_s8 }
 0x142   :  { %p1868_p4 = por %p1867_p3, %p1866_p2 }
 0x144   :  { %p1869_p5 = pnand %p1868_p4, %p1864_p1 }
 0x146   :  { %1872 = shalt.err (!%p1869_p5)  }
 0x147   :  { %s1873_s21 = scalar_lea.vmem %s3241_s24, 16  ;;  %p1878_p7 = scmp.lt.s32.totalorder %s3241_s24, %s3030_s16 }
 0x148   :  { %p1874_p6 = scmp.ne.s32.totalorder %s3241_s24, %s1873_s21  ;;  %p1879_p8 = scmp.lt.s32.totalorder %s3056_s7, %s1873_s21 }
 0x14a   :  { %p1880_p9 = por %p1879_p8, %p1878_p7 }
 0x14c   :  { %p1881_p10 = pnand %p1880_p9, %p1874_p6 }
 0x14e   :  { %1884 = shalt.err (!%p1881_p10)  }
 0x14f   :  { %275 = dma.hbm_to_vmem [thread:$0]  %s263_s6, 16, %s3241_s24, [#allocation3] }
 0x150   :  { %s2962_s9 = smov [#allocation2 + $0x10]   ;;  %s1361_s15 = sld [smem:[#allocation5 + $0x82]] }
 0x151   :  { %s288_s11 = sshll.u32 %s2962_s9, 4  ;;  %s2963_s12 = smov [#allocation2 + $0x11]   ;;  %s289_s11 = int_to_ptr.vmem [resolvable:$true] %s288_s11 }
 0x152   :  { %s304_s13 = sshll.u32 %s2963_s12, 4  ;;  %s3267_s17 = sld [smem:[#allocation5 + $0x102]]  ;;  %s3269_s13 = int_to_ptr.vmem [resolvable:$true] %s304_s13 }
 0x153   :  { %s1360_s14 = sshll.u32 %s1359_s28, 4 }
 0x154   :  { %s279_s25 = scalar_lea.hbm %s3943_s1, %s1360_s14 }
 0x155   :  { %s1885_s20 = scalar_lea.hbm %s279_s25, 16  ;;  %p1888_p12 = scmp.lt.s32.totalorder %s279_s25, %s3943_s1 }
 0x156   :  { %p1886_p11 = scmp.ne.s32.totalorder %s279_s25, %s1885_s20  ;;  %p1889_p13 = scmp.lt.s32.totalorder %s3047_s3, %s1885_s20 }
 0x158   :  { %p1890_p0 = por %p1889_p13, %p1888_p12 }
 0x15a   :  { %p1891_p1 = pnand %p1890_p0, %p1886_p11 }
 0x15c   :  { %1894 = shalt.err (!%p1891_p1)  }
 0x15d   :  { %s1895_s24 = scalar_lea.vmem %s289_s11, 16  ;;  %p1900_p3 = scmp.lt.s32.totalorder %s289_s11, %s3030_s16 }
 0x15e   :  { %p1896_p2 = scmp.ne.s32.totalorder %s289_s11, %s1895_s24  ;;  %p1901_p4 = scmp.lt.s32.totalorder %s3056_s7, %s1895_s24 }
 0x160   :  { %p1902_p5 = por %p1901_p4, %p1900_p3 }
 0x162   :  { %p1903_p6 = pnand %p1902_p5, %p1896_p2 }
 0x164   :  { %1906 = shalt.err (!%p1903_p6)  }
 0x165   :  { %291 = dma.hbm_to_vmem [thread:$0]  %s279_s25, 16, %s289_s11, [#allocation3] }
 0x166   :  { %s1362_s26 = sshll.u32 %s1361_s15, 4  ;;  %s2964_s27 = smov [#allocation2 + $0x12]  }
 0x167   :  { %s320_s22 = sshll.u32 %s2964_s27, 4  ;;  %s295_s29 = scalar_lea.hbm %s3943_s1, %s1362_s26  ;;  %s3283_s22 = int_to_ptr.vmem [resolvable:$true] %s320_s22 }
 0x168   :  { %s1907_s4 = scalar_lea.hbm %s295_s29, 16  ;;  %p1910_p8 = scmp.lt.s32.totalorder %s295_s29, %s3943_s1 }
 0x169   :  { %p1908_p7 = scmp.ne.s32.totalorder %s295_s29, %s1907_s4  ;;  %p1911_p9 = scmp.lt.s32.totalorder %s3047_s3, %s1907_s4 }
 0x16b   :  { %p1912_p10 = por %p1911_p9, %p1910_p8 }
 0x16d   :  { %p1913_p11 = pnand %p1912_p10, %p1908_p7 }
 0x16f   :  { %1916 = shalt.err (!%p1913_p11)  }
 0x170   :  { %s1917_s5 = scalar_lea.vmem %s3269_s13, 16  ;;  %p1922_p13 = scmp.lt.s32.totalorder %s3269_s13, %s3030_s16 }
 0x171   :  { %p1918_p12 = scmp.ne.s32.totalorder %s3269_s13, %s1917_s5  ;;  %p1923_p0 = scmp.lt.s32.totalorder %s3056_s7, %s1917_s5 }
 0x173   :  { %p1924_p1 = por %p1923_p0, %p1922_p13 }
 0x175   :  { %p1925_p2 = pnand %p1924_p1, %p1918_p12 }
 0x177   :  { %1928 = shalt.err (!%p1925_p2)  }
 0x178   :  { %307 = dma.hbm_to_vmem [thread:$0]  %s295_s29, 16, %s3269_s13, [#allocation3] }
 0x179   :  { %s1364_s10 = sshll.u32 %s3267_s17, 4  ;;  %s1365_s21 = sld [smem:[#allocation5 + $0x182]] }
 0x17a   :  { %s311_s15 = scalar_lea.hbm %s3943_s1, %s1364_s10 }
 0x17b   :  { %s1929_s12 = scalar_lea.hbm %s311_s15, 16  ;;  %p1932_p4 = scmp.lt.s32.totalorder %s311_s15, %s3943_s1 }
 0x17c   :  { %p1930_p3 = scmp.ne.s32.totalorder %s311_s15, %s1929_s12  ;;  %p1933_p5 = scmp.lt.s32.totalorder %s3047_s3, %s1929_s12 }
 0x17e   :  { %p1934_p6 = por %p1933_p5, %p1932_p4 }
 0x180   :  { %p1935_p7 = pnand %p1934_p6, %p1930_p3 }
 0x182   :  { %1938 = shalt.err (!%p1935_p7)  }
 0x183   :  { %s1939_s13 = scalar_lea.vmem %s3283_s22, 16  ;;  %p1944_p9 = scmp.lt.s32.totalorder %s3283_s22, %s3030_s16 }
 0x184   :  { %p1940_p8 = scmp.ne.s32.totalorder %s3283_s22, %s1939_s13  ;;  %p1945_p10 = scmp.lt.s32.totalorder %s3056_s7, %s1939_s13 }
 0x186   :  { %p1946_p11 = por %p1945_p10, %p1944_p9 }
 0x188   :  { %p1947_p12 = pnand %p1946_p11, %p1940_p8 }
 0x18a   :  { %1950 = shalt.err (!%p1947_p12)  }
 0x18b   :  { %323 = dma.hbm_to_vmem [thread:$0]  %s311_s15, 16, %s3283_s22, [#allocation3] }
 0x18c   :  { %s2965_s17 = smov [#allocation2 + $0x13]   ;;  %s1367_s25 = sld [smem:[#allocation5 + $0x202]] }
 0x18d   :  { %s336_s19 = sshll.u32 %s2965_s17, 4  ;;  %s2966_s20 = smov [#allocation2 + $0x14]   ;;  %s337_s19 = int_to_ptr.vmem [resolvable:$true] %s336_s19 }
 0x18e   :  { %s352_s23 = sshll.u32 %s2966_s20, 4  ;;  %s3309_s18 = sld [smem:[#allocation5 + $0x282]]  ;;  %s3311_s23 = int_to_ptr.vmem [resolvable:$true] %s352_s23 }
 0x18f   :  { %s1366_s24 = sshll.u32 %s1365_s21, 4 }
 0x190   :  { %s327_s30 = scalar_lea.hbm %s3943_s1, %s1366_s24 }
 0x191   :  { %s1951_s28 = scalar_lea.hbm %s327_s30, 16  ;;  %p1954_p0 = scmp.lt.s32.totalorder %s327_s30, %s3943_s1 }
 0x192   :  { %p1952_p13 = scmp.ne.s32.totalorder %s327_s30, %s1951_s28  ;;  %p1955_p1 = scmp.lt.s32.totalorder %s3047_s3, %s1951_s28 }
 0x194   :  { %p1956_p2 = por %p1955_p1, %p1954_p0 }
 0x196   :  { %p1957_p3 = pnand %p1956_p2, %p1952_p13 }
 0x198   :  { %1960 = shalt.err (!%p1957_p3)  }
 0x199   :  { %s1961_s22 = scalar_lea.vmem %s337_s19, 16  ;;  %p1966_p5 = scmp.lt.s32.totalorder %s337_s19, %s3030_s16 }
 0x19a   :  { %p1962_p4 = scmp.ne.s32.totalorder %s337_s19, %s1961_s22  ;;  %p1967_p6 = scmp.lt.s32.totalorder %s3056_s7, %s1961_s22 }
 0x19c   :  { %p1968_p7 = por %p1967_p6, %p1966_p5 }
 0x19e   :  { %p1969_p8 = pnand %p1968_p7, %p1962_p4 }
 0x1a0   :  { %1972 = shalt.err (!%p1969_p8)  }
 0x1a1   :  { %339 = dma.hbm_to_vmem [thread:$0]  %s327_s30, 16, %s337_s19, [#allocation3] }
 0x1a2   :  { %s1368_s6 = sshll.u32 %s1367_s25, 4  ;;  %s2967_s8 = smov [#allocation2 + $0x15]  }
 0x1a3   :  { %s368_s5 = sshll.u32 %s2967_s8, 4  ;;  %s343_s9 = scalar_lea.hbm %s3943_s1, %s1368_s6  ;;  %s3325_s5 = int_to_ptr.vmem [resolvable:$true] %s368_s5 }
 0x1a4   :  { %s1973_s11 = scalar_lea.hbm %s343_s9, 16  ;;  %p1976_p10 = scmp.lt.s32.totalorder %s343_s9, %s3943_s1 }
 0x1a5   :  { %p1974_p9 = scmp.ne.s32.totalorder %s343_s9, %s1973_s11  ;;  %p1977_p11 = scmp.lt.s32.totalorder %s3047_s3, %s1973_s11 }
 0x1a7   :  { %p1978_p12 = por %p1977_p11, %p1976_p10 }
 0x1a9   :  { %p1979_p13 = pnand %p1978_p12, %p1974_p9 }
 0x1ab   :  { %1982 = shalt.err (!%p1979_p13)  }
 0x1ac   :  { %s1983_s14 = scalar_lea.vmem %s3311_s23, 16  ;;  %p1988_p1 = scmp.lt.s32.totalorder %s3311_s23, %s3030_s16 }
 0x1ad   :  { %p1984_p0 = scmp.ne.s32.totalorder %s3311_s23, %s1983_s14  ;;  %p1989_p2 = scmp.lt.s32.totalorder %s3056_s7, %s1983_s14 }
 0x1af   :  { %p1990_p3 = por %p1989_p2, %p1988_p1 }
 0x1b1   :  { %p1991_p4 = pnand %p1990_p3, %p1984_p0 }
 0x1b3   :  { %1994 = shalt.err (!%p1991_p4)  }
 0x1b4   :  { %355 = dma.hbm_to_vmem [thread:$0]  %s343_s9, 16, %s3311_s23, [#allocation3] }
 0x1b5   :  { %s1370_s0 = sshll.u32 %s3309_s18, 4  ;;  %s1371_s13 = sld [smem:[#allocation5 + $0x302]] }
 0x1b6   :  { %s359_s25 = scalar_lea.hbm %s3943_s1, %s1370_s0 }
 0x1b7   :  { %s1995_s20 = scalar_lea.hbm %s359_s25, 16  ;;  %p1998_p6 = scmp.lt.s32.totalorder %s359_s25, %s3943_s1 }
 0x1b8   :  { %p1996_p5 = scmp.ne.s32.totalorder %s359_s25, %s1995_s20  ;;  %p1999_p7 = scmp.lt.s32.totalorder %s3047_s3, %s1995_s20 }
 0x1ba   :  { %p2000_p8 = por %p1999_p7, %p1998_p6 }
 0x1bc   :  { %p2001_p9 = pnand %p2000_p8, %p1996_p5 }
 0x1be   :  { %2004 = shalt.err (!%p2001_p9)  }
 0x1bf   :  { %s2005_s23 = scalar_lea.vmem %s3325_s5, 16  ;;  %p2010_p11 = scmp.lt.s32.totalorder %s3325_s5, %s3030_s16 }
 0x1c0   :  { %p2006_p10 = scmp.ne.s32.totalorder %s3325_s5, %s2005_s23  ;;  %p2011_p12 = scmp.lt.s32.totalorder %s3056_s7, %s2005_s23 }
 0x1c2   :  { %p2012_p13 = por %p2011_p12, %p2010_p11 }
 0x1c4   :  { %p2013_p0 = pnand %p2012_p13, %p2006_p10 }
 0x1c6   :  { %2016 = shalt.err (!%p2013_p0)  }
 0x1c7   :  { %371 = dma.hbm_to_vmem [thread:$0]  %s359_s25, 16, %s3325_s5, [#allocation3] }
 0x1c8   :  { %s2968_s18 = smov [#allocation2 + $0x16]   ;;  %s1373_s30 = sld [smem:[#allocation5 + $0x382]] }
 0x1c9   :  { %s384_s27 = sshll.u32 %s2968_s18, 4  ;;  %s2969_s28 = smov [#allocation2 + $0x17]   ;;  %s385_s27 = int_to_ptr.vmem [resolvable:$true] %s384_s27 }
 0x1ca   :  { %s400_s29 = sshll.u32 %s2969_s28, 4  ;;  %s3351_s4 = sld [smem:[#allocation5 + $0x3]]  ;;  %s3353_s29 = int_to_ptr.vmem [resolvable:$true] %s400_s29 }
 0x1cb   :  { %s1372_s22 = sshll.u32 %s1371_s13, 4 }
 0x1cc   :  { %s375_s10 = scalar_lea.hbm %s3943_s1, %s1372_s22 }
 0x1cd   :  { %s2017_s21 = scalar_lea.hbm %s375_s10, 16  ;;  %p2020_p2 = scmp.lt.s32.totalorder %s375_s10, %s3943_s1 }
 0x1ce   :  { %p2018_p1 = scmp.ne.s32.totalorder %s375_s10, %s2017_s21  ;;  %p2021_p3 = scmp.lt.s32.totalorder %s3047_s3, %s2017_s21 }
 0x1d0   :  { %p2022_p4 = por %p2021_p3, %p2020_p2 }
 0x1d2   :  { %p2023_p5 = pnand %p2022_p4, %p2018_p1 }
 0x1d4   :  { %2026 = shalt.err (!%p2023_p5)  }
 0x1d5   :  { %s2027_s5 = scalar_lea.vmem %s385_s27, 16  ;;  %p2032_p7 = scmp.lt.s32.totalorder %s385_s27, %s3030_s16 }
 0x1d6   :  { %p2028_p6 = scmp.ne.s32.totalorder %s385_s27, %s2027_s5  ;;  %p2033_p8 = scmp.lt.s32.totalorder %s3056_s7, %s2027_s5 }
 0x1d8   :  { %p2034_p9 = por %p2033_p8, %p2032_p7 }
 0x1da   :  { %p2035_p10 = pnand %p2034_p9, %p2028_p6 }
 0x1dc   :  { %2038 = shalt.err (!%p2035_p10)  }
 0x1dd   :  { %387 = dma.hbm_to_vmem [thread:$0]  %s375_s10, 16, %s385_s27, [#allocation3] }
 0x1de   :  { %s1374_s15 = sshll.u32 %s1373_s30, 4  ;;  %s2970_s12 = smov [#allocation2 + $0x18]  }
 0x1df   :  { %s416_s14 = sshll.u32 %s2970_s12, 4  ;;  %s391_s17 = scalar_lea.hbm %s3943_s1, %s1374_s15  ;;  %s3367_s14 = int_to_ptr.vmem [resolvable:$true] %s416_s14 }
 0x1e0   :  { %s2039_s19 = scalar_lea.hbm %s391_s17, 16  ;;  %p2042_p12 = scmp.lt.s32.totalorder %s391_s17, %s3943_s1 }
 0x1e1   :  { %p2040_p11 = scmp.ne.s32.totalorder %s391_s17, %s2039_s19  ;;  %p2043_p13 = scmp.lt.s32.totalorder %s3047_s3, %s2039_s19 }
 0x1e3   :  { %p2044_p0 = por %p2043_p13, %p2042_p12 }
 0x1e5   :  { %p2045_p1 = pnand %p2044_p0, %p2040_p11 }
 0x1e7   :  { %2048 = shalt.err (!%p2045_p1)  }
 0x1e8   :  { %s2049_s24 = scalar_lea.vmem %s3353_s29, 16  ;;  %p2054_p3 = scmp.lt.s32.totalorder %s3353_s29, %s3030_s16 }
 0x1e9   :  { %p2050_p2 = scmp.ne.s32.totalorder %s3353_s29, %s2049_s24  ;;  %p2055_p4 = scmp.lt.s32.totalorder %s3056_s7, %s2049_s24 }
 0x1eb   :  { %p2056_p5 = por %p2055_p4, %p2054_p3 }
 0x1ed   :  { %p2057_p6 = pnand %p2056_p5, %p2050_p2 }
 0x1ef   :  { %2060 = shalt.err (!%p2057_p6)  }
 0x1f0   :  { %403 = dma.hbm_to_vmem [thread:$0]  %s391_s17, 16, %s3353_s29, [#allocation3] }
 0x1f1   :  { %s1376_s26 = sshll.u32 %s3351_s4, 4  ;;  %s1377_s23 = sld [smem:[#allocation5 + $0x83]] }
 0x1f2   :  { %s407_s30 = scalar_lea.hbm %s3943_s1, %s1376_s26 }
 0x1f3   :  { %s2061_s28 = scalar_lea.hbm %s407_s30, 16  ;;  %p2064_p8 = scmp.lt.s32.totalorder %s407_s30, %s3943_s1 }
 0x1f4   :  { %p2062_p7 = scmp.ne.s32.totalorder %s407_s30, %s2061_s28  ;;  %p2065_p9 = scmp.lt.s32.totalorder %s3047_s3, %s2061_s28 }
 0x1f6   :  { %p2066_p10 = por %p2065_p9, %p2064_p8 }
 0x1f8   :  { %p2067_p11 = pnand %p2066_p10, %p2062_p7 }
 0x1fa   :  { %2070 = shalt.err (!%p2067_p11)  }
 0x1fb   :  { %s2071_s29 = scalar_lea.vmem %s3367_s14, 16  ;;  %p2076_p13 = scmp.lt.s32.totalorder %s3367_s14, %s3030_s16 }
 0x1fc   :  { %p2072_p12 = scmp.ne.s32.totalorder %s3367_s14, %s2071_s29  ;;  %p2077_p0 = scmp.lt.s32.totalorder %s3056_s7, %s2071_s29 }
 0x1fe   :  { %p2078_p1 = por %p2077_p0, %p2076_p13 }
 0x200   :  { %p2079_p2 = pnand %p2078_p1, %p2072_p12 }
 0x202   :  { %2082 = shalt.err (!%p2079_p2)  }
 0x203   :  { %419 = dma.hbm_to_vmem [thread:$0]  %s407_s30, 16, %s3367_s14, [#allocation3] }
 0x204   :  { %s2971_s4 = smov [#allocation2 + $0x19]   ;;  %s1379_s10 = sld [smem:[#allocation5 + $0x103]] }
 0x205   :  { %s432_s8 = sshll.u32 %s2971_s4, 4  ;;  %s2972_s21 = smov [#allocation2 + $0x1a]   ;;  %s433_s8 = int_to_ptr.vmem [resolvable:$true] %s432_s8 }
 0x206   :  { %s448_s9 = sshll.u32 %s2972_s21, 4  ;;  %s3393_s11 = sld [smem:[#allocation5 + $0x183]]  ;;  %s3395_s9 = int_to_ptr.vmem [resolvable:$true] %s448_s9 }
 0x207   :  { %s1378_s5 = sshll.u32 %s1377_s23, 4 }
 0x208   :  { %s423_s0 = scalar_lea.hbm %s3943_s1, %s1378_s5 }
 0x209   :  { %s2083_s13 = scalar_lea.hbm %s423_s0, 16  ;;  %p2086_p4 = scmp.lt.s32.totalorder %s423_s0, %s3943_s1 }
 0x20a   :  { %p2084_p3 = scmp.ne.s32.totalorder %s423_s0, %s2083_s13  ;;  %p2087_p5 = scmp.lt.s32.totalorder %s3047_s3, %s2083_s13 }
 0x20c   :  { %p2088_p6 = por %p2087_p5, %p2086_p4 }
 0x20e   :  { %p2089_p7 = pnand %p2088_p6, %p2084_p3 }
 0x210   :  { %2092 = shalt.err (!%p2089_p7)  }
 0x211   :  { %s2093_s14 = scalar_lea.vmem %s433_s8, 16  ;;  %p2098_p9 = scmp.lt.s32.totalorder %s433_s8, %s3030_s16 }
 0x212   :  { %p2094_p8 = scmp.ne.s32.totalorder %s433_s8, %s2093_s14  ;;  %p2099_p10 = scmp.lt.s32.totalorder %s3056_s7, %s2093_s14 }
 0x214   :  { %p2100_p11 = por %p2099_p10, %p2098_p9 }
 0x216   :  { %p2101_p12 = pnand %p2100_p11, %p2094_p8 }
 0x218   :  { %2104 = shalt.err (!%p2101_p12)  }
 0x219   :  { %435 = dma.hbm_to_vmem [thread:$0]  %s423_s0, 16, %s433_s8, [#allocation3] }
 0x21a   :  { %s1380_s25 = sshll.u32 %s1379_s10, 4  ;;  %s2973_s20 = smov [#allocation2 + $0x1b]  }
 0x21b   :  { %s464_s24 = sshll.u32 %s2973_s20, 4  ;;  %s439_s18 = scalar_lea.hbm %s3943_s1, %s1380_s25  ;;  %s3409_s24 = int_to_ptr.vmem [resolvable:$true] %s464_s24 }
 0x21c   :  { %s2105_s27 = scalar_lea.hbm %s439_s18, 16  ;;  %p2108_p0 = scmp.lt.s32.totalorder %s439_s18, %s3943_s1 }
 0x21d   :  { %p2106_p13 = scmp.ne.s32.totalorder %s439_s18, %s2105_s27  ;;  %p2109_p1 = scmp.lt.s32.totalorder %s3047_s3, %s2105_s27 }
 0x21f   :  { %p2110_p2 = por %p2109_p1, %p2108_p0 }
 0x221   :  { %p2111_p3 = pnand %p2110_p2, %p2106_p13 }
 0x223   :  { %2114 = shalt.err (!%p2111_p3)  }
 0x224   :  { %s2115_s22 = scalar_lea.vmem %s3395_s9, 16  ;;  %p2120_p5 = scmp.lt.s32.totalorder %s3395_s9, %s3030_s16 }
 0x225   :  { %p2116_p4 = scmp.ne.s32.totalorder %s3395_s9, %s2115_s22  ;;  %p2121_p6 = scmp.lt.s32.totalorder %s3056_s7, %s2115_s22 }
 0x227   :  { %p2122_p7 = por %p2121_p6, %p2120_p5 }
 0x229   :  { %p2123_p8 = pnand %p2122_p7, %p2116_p4 }
 0x22b   :  { %2126 = shalt.err (!%p2123_p8)  }
 0x22c   :  { %451 = dma.hbm_to_vmem [thread:$0]  %s439_s18, 16, %s3395_s9, [#allocation3] }
 0x22d   :  { %s1382_s6 = sshll.u32 %s3393_s11, 4  ;;  %s1383_s29 = sld [smem:[#allocation5 + $0x203]] }
 0x22e   :  { %s455_s10 = scalar_lea.hbm %s3943_s1, %s1382_s6 }
 0x22f   :  { %s2127_s21 = scalar_lea.hbm %s455_s10, 16  ;;  %p2130_p10 = scmp.lt.s32.totalorder %s455_s10, %s3943_s1 }
 0x230   :  { %p2128_p9 = scmp.ne.s32.totalorder %s455_s10, %s2127_s21  ;;  %p2131_p11 = scmp.lt.s32.totalorder %s3047_s3, %s2127_s21 }
 0x232   :  { %p2132_p12 = por %p2131_p11, %p2130_p10 }
 0x234   :  { %p2133_p13 = pnand %p2132_p12, %p2128_p9 }
 0x236   :  { %2136 = shalt.err (!%p2133_p13)  }
 0x237   :  { %s2137_s9 = scalar_lea.vmem %s3409_s24, 16  ;;  %p2142_p1 = scmp.lt.s32.totalorder %s3409_s24, %s3030_s16 }
 0x238   :  { %p2138_p0 = scmp.ne.s32.totalorder %s3409_s24, %s2137_s9  ;;  %p2143_p2 = scmp.lt.s32.totalorder %s3056_s7, %s2137_s9 }
 0x23a   :  { %p2144_p3 = por %p2143_p2, %p2142_p1 }
 0x23c   :  { %p2145_p4 = pnand %p2144_p3, %p2138_p0 }
 0x23e   :  { %2148 = shalt.err (!%p2145_p4)  }
 0x23f   :  { %467 = dma.hbm_to_vmem [thread:$0]  %s455_s10, 16, %s3409_s24, [#allocation3] }
 0x240   :  { %s2974_s11 = smov [#allocation2 + $0x1c]   ;;  %s1385_s0 = sld [smem:[#allocation5 + $0x283]] }
 0x241   :  { %s480_s12 = sshll.u32 %s2974_s11, 4  ;;  %s2975_s13 = smov [#allocation2 + $0x1d]   ;;  %s481_s12 = int_to_ptr.vmem [resolvable:$true] %s480_s12 }
 0x242   :  { %s496_s17 = sshll.u32 %s2975_s13, 4  ;;  %s3435_s19 = sld [smem:[#allocation5 + $0x303]]  ;;  %s3437_s17 = int_to_ptr.vmem [resolvable:$true] %s496_s17 }
 0x243   :  { %s1384_s14 = sshll.u32 %s1383_s29, 4 }
 0x244   :  { %s471_s26 = scalar_lea.hbm %s3943_s1, %s1384_s14 }
 0x245   :  { %s2149_s23 = scalar_lea.hbm %s471_s26, 16  ;;  %p2152_p6 = scmp.lt.s32.totalorder %s471_s26, %s3943_s1 }
 0x246   :  { %p2150_p5 = scmp.ne.s32.totalorder %s471_s26, %s2149_s23  ;;  %p2153_p7 = scmp.lt.s32.totalorder %s3047_s3, %s2149_s23 }
 0x248   :  { %p2154_p8 = por %p2153_p7, %p2152_p6 }
 0x24a   :  { %p2155_p9 = pnand %p2154_p8, %p2150_p5 }
 0x24c   :  { %2158 = shalt.err (!%p2155_p9)  }
 0x24d   :  { %s2159_s24 = scalar_lea.vmem %s481_s12, 16  ;;  %p2164_p11 = scmp.lt.s32.totalorder %s481_s12, %s3030_s16 }
 0x24e   :  { %p2160_p10 = scmp.ne.s32.totalorder %s481_s12, %s2159_s24  ;;  %p2165_p12 = scmp.lt.s32.totalorder %s3056_s7, %s2159_s24 }
 0x250   :  { %p2166_p13 = por %p2165_p12, %p2164_p11 }
 0x252   :  { %p2167_p0 = pnand %p2166_p13, %p2160_p10 }
 0x254   :  { %2170 = shalt.err (!%p2167_p0)  }
 0x255   :  { %483 = dma.hbm_to_vmem [thread:$0]  %s471_s26, 16, %s481_s12, [#allocation3] }
 0x256   :  { %s1386_s30 = sshll.u32 %s1385_s0, 4  ;;  %s2976_s28 = smov [#allocation2 + $0x1e]  }
 0x257   :  { %s512_s22 = sshll.u32 %s2976_s28, 4  ;;  %s487_s4 = scalar_lea.hbm %s3943_s1, %s1386_s30  ;;  %s3451_s22 = int_to_ptr.vmem [resolvable:$true] %s512_s22 }
 0x258   :  { %s2171_s8 = scalar_lea.hbm %s487_s4, 16  ;;  %p2174_p2 = scmp.lt.s32.totalorder %s487_s4, %s3943_s1 }
 0x259   :  { %p2172_p1 = scmp.ne.s32.totalorder %s487_s4, %s2171_s8  ;;  %p2175_p3 = scmp.lt.s32.totalorder %s3047_s3, %s2171_s8 }
 0x25b   :  { %p2176_p4 = por %p2175_p3, %p2174_p2 }
 0x25d   :  { %p2177_p5 = pnand %p2176_p4, %p2172_p1 }
 0x25f   :  { %2180 = shalt.err (!%p2177_p5)  }
 0x260   :  { %s2181_s5 = scalar_lea.vmem %s3437_s17, 16  ;;  %p2186_p7 = scmp.lt.s32.totalorder %s3437_s17, %s3030_s16 }
 0x261   :  { %p2182_p6 = scmp.ne.s32.totalorder %s3437_s17, %s2181_s5  ;;  %p2187_p8 = scmp.lt.s32.totalorder %s3056_s7, %s2181_s5 }
 0x263   :  { %p2188_p9 = por %p2187_p8, %p2186_p7 }
 0x265   :  { %p2189_p10 = pnand %p2188_p9, %p2182_p6 }
 0x267   :  { %2192 = shalt.err (!%p2189_p10)  }
 0x268   :  { %499 = dma.hbm_to_vmem [thread:$0]  %s487_s4, 16, %s3437_s17, [#allocation3] }
 0x269   :  { %s1388_s15 = sshll.u32 %s3435_s19, 4  ;;  %s1389_s9 = sld [smem:[#allocation5 + $0x383]] }
 0x26a   :  { %s503_s0 = scalar_lea.hbm %s3943_s1, %s1388_s15 }
 0x26b   :  { %s2193_s13 = scalar_lea.hbm %s503_s0, 16  ;;  %p2196_p12 = scmp.lt.s32.totalorder %s503_s0, %s3943_s1 }
 0x26c   :  { %p2194_p11 = scmp.ne.s32.totalorder %s503_s0, %s2193_s13  ;;  %p2197_p13 = scmp.lt.s32.totalorder %s3047_s3, %s2193_s13 }
 0x26e   :  { %p2198_p0 = por %p2197_p13, %p2196_p12 }
 0x270   :  { %p2199_p1 = pnand %p2198_p0, %p2194_p11 }
 0x272   :  { %2202 = shalt.err (!%p2199_p1)  }
 0x273   :  { %s2203_s17 = scalar_lea.vmem %s3451_s22, 16  ;;  %p2208_p3 = scmp.lt.s32.totalorder %s3451_s22, %s3030_s16 }
 0x274   :  { %p2204_p2 = scmp.ne.s32.totalorder %s3451_s22, %s2203_s17  ;;  %p2209_p4 = scmp.lt.s32.totalorder %s3056_s7, %s2203_s17 }
 0x276   :  { %p2210_p5 = por %p2209_p4, %p2208_p3 }
 0x278   :  { %p2211_p6 = pnand %p2210_p5, %p2204_p2 }
 0x27a   :  { %2214 = shalt.err (!%p2211_p6)  }
 0x27b   :  { %515 = dma.hbm_to_vmem [thread:$0]  %s503_s0, 16, %s3451_s22, [#allocation3] }
 0x27c   :  { %s2977_s19 = smov [#allocation2 + $0x1f]   ;;  %s1391_s26 = sld [smem:[#allocation5 + $0x4]] }
 0x27d   :  { %s528_s20 = sshll.u32 %s2977_s19, 4  ;;  %s2978_s23 = smov [#allocation2 + $0x20]   ;;  %s529_s20 = int_to_ptr.vmem [resolvable:$true] %s528_s20 }
 0x27e   :  { %s544_s18 = sshll.u32 %s2978_s23, 4  ;;  %s3477_s27 = sld [smem:[#allocation5 + $0x84]]  ;;  %s3479_s18 = int_to_ptr.vmem [resolvable:$true] %s544_s18 }
 0x27f   :  { %s1390_s24 = sshll.u32 %s1389_s9, 4 }
 0x280   :  { %s519_s6 = scalar_lea.hbm %s3943_s1, %s1390_s24 }
 0x281   :  { %s2215_s29 = scalar_lea.hbm %s519_s6, 16  ;;  %p2218_p8 = scmp.lt.s32.totalorder %s519_s6, %s3943_s1 }
 0x282   :  { %p2216_p7 = scmp.ne.s32.totalorder %s519_s6, %s2215_s29  ;;  %p2219_p9 = scmp.lt.s32.totalorder %s3047_s3, %s2215_s29 }
 0x284   :  { %p2220_p10 = por %p2219_p9, %p2218_p8 }
 0x286   :  { %p2221_p11 = pnand %p2220_p10, %p2216_p7 }
 0x288   :  { %2224 = shalt.err (!%p2221_p11)  }
 0x289   :  { %s2225_s22 = scalar_lea.vmem %s529_s20, 16  ;;  %p2230_p13 = scmp.lt.s32.totalorder %s529_s20, %s3030_s16 }
 0x28a   :  { %p2226_p12 = scmp.ne.s32.totalorder %s529_s20, %s2225_s22  ;;  %p2231_p0 = scmp.lt.s32.totalorder %s3056_s7, %s2225_s22 }
 0x28c   :  { %p2232_p1 = por %p2231_p0, %p2230_p13 }
 0x28e   :  { %p2233_p2 = pnand %p2232_p1, %p2226_p12 }
 0x290   :  { %2236 = shalt.err (!%p2233_p2)  }
 0x291   :  { %531 = dma.hbm_to_vmem [thread:$0]  %s519_s6, 16, %s529_s20, [#allocation3] }
 0x292   :  { %s1392_s10 = sshll.u32 %s1391_s26, 4  ;;  %s2979_s21 = smov [#allocation2 + $0x21]  }
 0x293   :  { %s560_s5 = sshll.u32 %s2979_s21, 4  ;;  %s535_s11 = scalar_lea.hbm %s3943_s1, %s1392_s10  ;;  %s3493_s5 = int_to_ptr.vmem [resolvable:$true] %s560_s5 }
 0x294   :  { %s2237_s12 = scalar_lea.hbm %s535_s11, 16  ;;  %p2240_p4 = scmp.lt.s32.totalorder %s535_s11, %s3943_s1 }
 0x295   :  { %p2238_p3 = scmp.ne.s32.totalorder %s535_s11, %s2237_s12  ;;  %p2241_p5 = scmp.lt.s32.totalorder %s3047_s3, %s2237_s12 }
 0x297   :  { %p2242_p6 = por %p2241_p5, %p2240_p4 }
 0x299   :  { %p2243_p7 = pnand %p2242_p6, %p2238_p3 }
 0x29b   :  { %2246 = shalt.err (!%p2243_p7)  }
 0x29c   :  { %s2247_s14 = scalar_lea.vmem %s3479_s18, 16  ;;  %p2252_p9 = scmp.lt.s32.totalorder %s3479_s18, %s3030_s16 }
 0x29d   :  { %p2248_p8 = scmp.ne.s32.totalorder %s3479_s18, %s2247_s14  ;;  %p2253_p10 = scmp.lt.s32.totalorder %s3056_s7, %s2247_s14 }
 0x29f   :  { %p2254_p11 = por %p2253_p10, %p2252_p9 }
 0x2a1   :  { %p2255_p12 = pnand %p2254_p11, %p2248_p8 }
 0x2a3   :  { %2258 = shalt.err (!%p2255_p12)  }
 0x2a4   :  { %547 = dma.hbm_to_vmem [thread:$0]  %s535_s11, 16, %s3479_s18, [#allocation3] }
 0x2a5   :  { %s1394_s25 = sshll.u32 %s3477_s27, 4  ;;  %s1395_s17 = sld [smem:[#allocation5 + $0x104]] }
 0x2a6   :  { %s551_s26 = scalar_lea.hbm %s3943_s1, %s1394_s25 }
 0x2a7   :  { %s2259_s23 = scalar_lea.hbm %s551_s26, 16  ;;  %p2262_p0 = scmp.lt.s32.totalorder %s551_s26, %s3943_s1 }
 0x2a8   :  { %p2260_p13 = scmp.ne.s32.totalorder %s551_s26, %s2259_s23  ;;  %p2263_p1 = scmp.lt.s32.totalorder %s3047_s3, %s2259_s23 }
 0x2aa   :  { %p2264_p2 = por %p2263_p1, %p2262_p0 }
 0x2ac   :  { %p2265_p3 = pnand %p2264_p2, %p2260_p13 }
 0x2ae   :  { %2268 = shalt.err (!%p2265_p3)  }
 0x2af   :  { %s2269_s18 = scalar_lea.vmem %s3493_s5, 16  ;;  %p2274_p5 = scmp.lt.s32.totalorder %s3493_s5, %s3030_s16 }
 0x2b0   :  { %p2270_p4 = scmp.ne.s32.totalorder %s3493_s5, %s2269_s18  ;;  %p2275_p6 = scmp.lt.s32.totalorder %s3056_s7, %s2269_s18 }
 0x2b2   :  { %p2276_p7 = por %p2275_p6, %p2274_p5 }
 0x2b4   :  { %p2277_p8 = pnand %p2276_p7, %p2270_p4 }
 0x2b6   :  { %2280 = shalt.err (!%p2277_p8)  }
 0x2b7   :  { %563 = dma.hbm_to_vmem [thread:$0]  %s551_s26, 16, %s3493_s5, [#allocation3] }
 0x2b8   :  { %s2980_s27 = smov [#allocation2 + $0x22]   ;;  %s1397_s6 = sld [smem:[#allocation5 + $0x184]] }
 0x2b9   :  { %s576_s28 = sshll.u32 %s2980_s27, 4  ;;  %s2981_s29 = smov [#allocation2 + $0x23]   ;;  %s577_s28 = int_to_ptr.vmem [resolvable:$true] %s576_s28 }
 0x2ba   :  { %s592_s4 = sshll.u32 %s2981_s29, 4  ;;  %s3519_s8 = sld [smem:[#allocation5 + $0x204]]  ;;  %s3521_s4 = int_to_ptr.vmem [resolvable:$true] %s592_s4 }
 0x2bb   :  { %s1396_s22 = sshll.u32 %s1395_s17, 4 }
 0x2bc   :  { %s567_s15 = scalar_lea.hbm %s3943_s1, %s1396_s22 }
 0x2bd   :  { %s2281_s9 = scalar_lea.hbm %s567_s15, 16  ;;  %p2284_p10 = scmp.lt.s32.totalorder %s567_s15, %s3943_s1 }
 0x2be   :  { %p2282_p9 = scmp.ne.s32.totalorder %s567_s15, %s2281_s9  ;;  %p2285_p11 = scmp.lt.s32.totalorder %s3047_s3, %s2281_s9 }
 0x2c0   :  { %p2286_p12 = por %p2285_p11, %p2284_p10 }
 0x2c2   :  { %p2287_p13 = pnand %p2286_p12, %p2282_p9 }
 0x2c4   :  { %2290 = shalt.err (!%p2287_p13)  }
 0x2c5   :  { %s2291_s5 = scalar_lea.vmem %s577_s28, 16  ;;  %p2296_p1 = scmp.lt.s32.totalorder %s577_s28, %s3030_s16 }
 0x2c6   :  { %p2292_p0 = scmp.ne.s32.totalorder %s577_s28, %s2291_s5  ;;  %p2297_p2 = scmp.lt.s32.totalorder %s3056_s7, %s2291_s5 }
 0x2c8   :  { %p2298_p3 = por %p2297_p2, %p2296_p1 }
 0x2ca   :  { %p2299_p4 = pnand %p2298_p3, %p2292_p0 }
 0x2cc   :  { %2302 = shalt.err (!%p2299_p4)  }
 0x2cd   :  { %579 = dma.hbm_to_vmem [thread:$0]  %s567_s15, 16, %s577_s28, [#allocation3] }
 0x2ce   :  { %s1398_s0 = sshll.u32 %s1397_s6, 4  ;;  %s2982_s13 = smov [#allocation2 + $0x24]  }
 0x2cf   :  { %s608_s14 = sshll.u32 %s2982_s13, 4  ;;  %s583_s19 = scalar_lea.hbm %s3943_s1, %s1398_s0  ;;  %s3535_s14 = int_to_ptr.vmem [resolvable:$true] %s608_s14 }
 0x2d0   :  { %s2303_s20 = scalar_lea.hbm %s583_s19, 16  ;;  %p2306_p6 = scmp.lt.s32.totalorder %s583_s19, %s3943_s1 }
 0x2d1   :  { %p2304_p5 = scmp.ne.s32.totalorder %s583_s19, %s2303_s20  ;;  %p2307_p7 = scmp.lt.s32.totalorder %s3047_s3, %s2303_s20 }
 0x2d3   :  { %p2308_p8 = por %p2307_p7, %p2306_p6 }
 0x2d5   :  { %p2309_p9 = pnand %p2308_p8, %p2304_p5 }
 0x2d7   :  { %2312 = shalt.err (!%p2309_p9)  }
 0x2d8   :  { %s2313_s24 = scalar_lea.vmem %s3521_s4, 16  ;;  %p2318_p11 = scmp.lt.s32.totalorder %s3521_s4, %s3030_s16 }
 0x2d9   :  { %p2314_p10 = scmp.ne.s32.totalorder %s3521_s4, %s2313_s24  ;;  %p2319_p12 = scmp.lt.s32.totalorder %s3056_s7, %s2313_s24 }
 0x2db   :  { %p2320_p13 = por %p2319_p12, %p2318_p11 }
 0x2dd   :  { %p2321_p0 = pnand %p2320_p13, %p2314_p10 }
 0x2df   :  { %2324 = shalt.err (!%p2321_p0)  }
 0x2e0   :  { %595 = dma.hbm_to_vmem [thread:$0]  %s583_s19, 16, %s3521_s4, [#allocation3] }
 0x2e1   :  { %s1400_s30 = sshll.u32 %s3519_s8, 4  ;;  %s1401_s18 = sld [smem:[#allocation5 + $0x284]] }
 0x2e2   :  { %s599_s6 = scalar_lea.hbm %s3943_s1, %s1400_s30 }
 0x2e3   :  { %s2325_s29 = scalar_lea.hbm %s599_s6, 16  ;;  %p2328_p2 = scmp.lt.s32.totalorder %s599_s6, %s3943_s1 }
 0x2e4   :  { %p2326_p1 = scmp.ne.s32.totalorder %s599_s6, %s2325_s29  ;;  %p2329_p3 = scmp.lt.s32.totalorder %s3047_s3, %s2325_s29 }
 0x2e6   :  { %p2330_p4 = por %p2329_p3, %p2328_p2 }
 0x2e8   :  { %p2331_p5 = pnand %p2330_p4, %p2326_p1 }
 0x2ea   :  { %2334 = shalt.err (!%p2331_p5)  }
 0x2eb   :  { %s2335_s4 = scalar_lea.vmem %s3535_s14, 16  ;;  %p2340_p7 = scmp.lt.s32.totalorder %s3535_s14, %s3030_s16 }
 0x2ec   :  { %p2336_p6 = scmp.ne.s32.totalorder %s3535_s14, %s2335_s4  ;;  %p2341_p8 = scmp.lt.s32.totalorder %s3056_s7, %s2335_s4 }
 0x2ee   :  { %p2342_p9 = por %p2341_p8, %p2340_p7 }
 0x2f0   :  { %p2343_p10 = pnand %p2342_p9, %p2336_p6 }
 0x2f2   :  { %2346 = shalt.err (!%p2343_p10)  }
 0x2f3   :  { %611 = dma.hbm_to_vmem [thread:$0]  %s599_s6, 16, %s3535_s14, [#allocation3] }
 0x2f4   :  { %s2983_s8 = smov [#allocation2 + $0x25]   ;;  %s1403_s15 = sld [smem:[#allocation5 + $0x304]] }
 0x2f5   :  { %s624_s21 = sshll.u32 %s2983_s8, 4  ;;  %s2984_s9 = smov [#allocation2 + $0x26]   ;;  %s625_s21 = int_to_ptr.vmem [resolvable:$true] %s624_s21 }
 0x2f6   :  { %s640_s11 = sshll.u32 %s2984_s9, 4  ;;  %s3561_s12 = sld [smem:[#allocation5 + $0x384]]  ;;  %s3563_s11 = int_to_ptr.vmem [resolvable:$true] %s640_s11 }
 0x2f7   :  { %s1402_s5 = sshll.u32 %s1401_s18, 4 }
 0x2f8   :  { %s615_s25 = scalar_lea.hbm %s3943_s1, %s1402_s5 }
 0x2f9   :  { %s2347_s17 = scalar_lea.hbm %s615_s25, 16  ;;  %p2350_p12 = scmp.lt.s32.totalorder %s615_s25, %s3943_s1 }
 0x2fa   :  { %p2348_p11 = scmp.ne.s32.totalorder %s615_s25, %s2347_s17  ;;  %p2351_p13 = scmp.lt.s32.totalorder %s3047_s3, %s2347_s17 }
 0x2fc   :  { %p2352_p0 = por %p2351_p13, %p2350_p12 }
 0x2fe   :  { %p2353_p1 = pnand %p2352_p0, %p2348_p11 }
 0x300   :  { %2356 = shalt.err (!%p2353_p1)  }
 0x301   :  { %s2357_s14 = scalar_lea.vmem %s625_s21, 16  ;;  %p2362_p3 = scmp.lt.s32.totalorder %s625_s21, %s3030_s16 }
 0x302   :  { %p2358_p2 = scmp.ne.s32.totalorder %s625_s21, %s2357_s14  ;;  %p2363_p4 = scmp.lt.s32.totalorder %s3056_s7, %s2357_s14 }
 0x304   :  { %p2364_p5 = por %p2363_p4, %p2362_p3 }
 0x306   :  { %p2365_p6 = pnand %p2364_p5, %p2358_p2 }
 0x308   :  { %2368 = shalt.err (!%p2365_p6)  }
 0x309   :  { %627 = dma.hbm_to_vmem [thread:$0]  %s615_s25, 16, %s625_s21, [#allocation3] }
 0x30a   :  { %s1404_s26 = sshll.u32 %s1403_s15, 4  ;;  %s2985_s23 = smov [#allocation2 + $0x27]  }
 0x30b   :  { %s656_s24 = sshll.u32 %s2985_s23, 4  ;;  %s631_s27 = scalar_lea.hbm %s3943_s1, %s1404_s26  ;;  %s3577_s24 = int_to_ptr.vmem [resolvable:$true] %s656_s24 }
 0x30c   :  { %s2369_s28 = scalar_lea.hbm %s631_s27, 16  ;;  %p2372_p8 = scmp.lt.s32.totalorder %s631_s27, %s3943_s1 }
 0x30d   :  { %p2370_p7 = scmp.ne.s32.totalorder %s631_s27, %s2369_s28  ;;  %p2373_p9 = scmp.lt.s32.totalorder %s3047_s3, %s2369_s28 }
 0x30f   :  { %p2374_p10 = por %p2373_p9, %p2372_p8 }
 0x311   :  { %p2375_p11 = pnand %p2374_p10, %p2370_p7 }
 0x313   :  { %2378 = shalt.err (!%p2375_p11)  }
 0x314   :  { %s2379_s22 = scalar_lea.vmem %s3563_s11, 16  ;;  %p2384_p13 = scmp.lt.s32.totalorder %s3563_s11, %s3030_s16 }
 0x315   :  { %p2380_p12 = scmp.ne.s32.totalorder %s3563_s11, %s2379_s22  ;;  %p2385_p0 = scmp.lt.s32.totalorder %s3056_s7, %s2379_s22 }
 0x317   :  { %p2386_p1 = por %p2385_p0, %p2384_p13 }
 0x319   :  { %p2387_p2 = pnand %p2386_p1, %p2380_p12 }
 0x31b   :  { %2390 = shalt.err (!%p2387_p2)  }
 0x31c   :  { %643 = dma.hbm_to_vmem [thread:$0]  %s631_s27, 16, %s3563_s11, [#allocation3] }
 0x31d   :  { %s1406_s10 = sshll.u32 %s3561_s12, 4  ;;  %s1407_s4 = sld [smem:[#allocation5 + $0x5]] }
 0x31e   :  { %s647_s15 = scalar_lea.hbm %s3943_s1, %s1406_s10 }
 0x31f   :  { %s2391_s9 = scalar_lea.hbm %s647_s15, 16  ;;  %p2394_p4 = scmp.lt.s32.totalorder %s647_s15, %s3943_s1 }
 0x320   :  { %p2392_p3 = scmp.ne.s32.totalorder %s647_s15, %s2391_s9  ;;  %p2395_p5 = scmp.lt.s32.totalorder %s3047_s3, %s2391_s9 }
 0x322   :  { %p2396_p6 = por %p2395_p5, %p2394_p4 }
 0x324   :  { %p2397_p7 = pnand %p2396_p6, %p2392_p3 }
 0x326   :  { %2400 = shalt.err (!%p2397_p7)  }
 0x327   :  { %s2401_s11 = scalar_lea.vmem %s3577_s24, 16  ;;  %p2406_p9 = scmp.lt.s32.totalorder %s3577_s24, %s3030_s16 }
 0x328   :  { %p2402_p8 = scmp.ne.s32.totalorder %s3577_s24, %s2401_s11  ;;  %p2407_p10 = scmp.lt.s32.totalorder %s3056_s7, %s2401_s11 }
 0x32a   :  { %p2408_p11 = por %p2407_p10, %p2406_p9 }
 0x32c   :  { %p2409_p12 = pnand %p2408_p11, %p2402_p8 }
 0x32e   :  { %2412 = shalt.err (!%p2409_p12)  }
 0x32f   :  { %659 = dma.hbm_to_vmem [thread:$0]  %s647_s15, 16, %s3577_s24, [#allocation3] }
 0x330   :  { %s2986_s12 = smov [#allocation2 + $0x28]   ;;  %s1409_s25 = sld [smem:[#allocation5 + $0x85]] }
 0x331   :  { %s672_s13 = sshll.u32 %s2986_s12, 4  ;;  %s2987_s17 = smov [#allocation2 + $0x29]   ;;  %s673_s13 = int_to_ptr.vmem [resolvable:$true] %s672_s13 }
 0x332   :  { %s688_s19 = sshll.u32 %s2987_s17, 4  ;;  %s3603_s20 = sld [smem:[#allocation5 + $0x105]]  ;;  %s3605_s19 = int_to_ptr.vmem [resolvable:$true] %s688_s19 }
 0x333   :  { %s1408_s14 = sshll.u32 %s1407_s4, 4 }
 0x334   :  { %s663_s30 = scalar_lea.hbm %s3943_s1, %s1408_s14 }
 0x335   :  { %s2413_s18 = scalar_lea.hbm %s663_s30, 16  ;;  %p2416_p0 = scmp.lt.s32.totalorder %s663_s30, %s3943_s1 }
 0x336   :  { %p2414_p13 = scmp.ne.s32.totalorder %s663_s30, %s2413_s18  ;;  %p2417_p1 = scmp.lt.s32.totalorder %s3047_s3, %s2413_s18 }
 0x338   :  { %p2418_p2 = por %p2417_p1, %p2416_p0 }
 0x33a   :  { %p2419_p3 = pnand %p2418_p2, %p2414_p13 }
 0x33c   :  { %2422 = shalt.err (!%p2419_p3)  }
 0x33d   :  { %s2423_s24 = scalar_lea.vmem %s673_s13, 16  ;;  %p2428_p5 = scmp.lt.s32.totalorder %s673_s13, %s3030_s16 }
 0x33e   :  { %p2424_p4 = scmp.ne.s32.totalorder %s673_s13, %s2423_s24  ;;  %p2429_p6 = scmp.lt.s32.totalorder %s3056_s7, %s2423_s24 }
 0x340   :  { %p2430_p7 = por %p2429_p6, %p2428_p5 }
 0x342   :  { %p2431_p8 = pnand %p2430_p7, %p2424_p4 }
 0x344   :  { %2434 = shalt.err (!%p2431_p8)  }
 0x345   :  { %675 = dma.hbm_to_vmem [thread:$0]  %s663_s30, 16, %s673_s13, [#allocation3] }
 0x346   :  { %s1410_s6 = sshll.u32 %s1409_s25, 4  ;;  %s2988_s29 = smov [#allocation2 + $0x2a]  }
 0x347   :  { %s704_s22 = sshll.u32 %s2988_s29, 4  ;;  %s679_s8 = scalar_lea.hbm %s3943_s1, %s1410_s6  ;;  %s3619_s22 = int_to_ptr.vmem [resolvable:$true] %s704_s22 }
 0x348   :  { %s2435_s21 = scalar_lea.hbm %s679_s8, 16  ;;  %p2438_p10 = scmp.lt.s32.totalorder %s679_s8, %s3943_s1 }
 0x349   :  { %p2436_p9 = scmp.ne.s32.totalorder %s679_s8, %s2435_s21  ;;  %p2439_p11 = scmp.lt.s32.totalorder %s3047_s3, %s2435_s21 }
 0x34b   :  { %p2440_p12 = por %p2439_p11, %p2438_p10 }
 0x34d   :  { %p2441_p13 = pnand %p2440_p12, %p2436_p9 }
 0x34f   :  { %2444 = shalt.err (!%p2441_p13)  }
 0x350   :  { %s2445_s5 = scalar_lea.vmem %s3605_s19, 16  ;;  %p2450_p1 = scmp.lt.s32.totalorder %s3605_s19, %s3030_s16 }
 0x351   :  { %p2446_p0 = scmp.ne.s32.totalorder %s3605_s19, %s2445_s5  ;;  %p2451_p2 = scmp.lt.s32.totalorder %s3056_s7, %s2445_s5 }
 0x353   :  { %p2452_p3 = por %p2451_p2, %p2450_p1 }
 0x355   :  { %p2453_p4 = pnand %p2452_p3, %p2446_p0 }
 0x357   :  { %2456 = shalt.err (!%p2453_p4)  }
 0x358   :  { %691 = dma.hbm_to_vmem [thread:$0]  %s679_s8, 16, %s3605_s19, [#allocation3] }
 0x359   :  { %s1412_s0 = sshll.u32 %s3603_s20, 4  ;;  %s1413_s11 = sld [smem:[#allocation5 + $0x185]] }
 0x35a   :  { %s695_s25 = scalar_lea.hbm %s3943_s1, %s1412_s0 }
 0x35b   :  { %s2457_s17 = scalar_lea.hbm %s695_s25, 16  ;;  %p2460_p6 = scmp.lt.s32.totalorder %s695_s25, %s3943_s1 }
 0x35c   :  { %p2458_p5 = scmp.ne.s32.totalorder %s695_s25, %s2457_s17  ;;  %p2461_p7 = scmp.lt.s32.totalorder %s3047_s3, %s2457_s17 }
 0x35e   :  { %p2462_p8 = por %p2461_p7, %p2460_p6 }
 0x360   :  { %p2463_p9 = pnand %p2462_p8, %p2458_p5 }
 0x362   :  { %2466 = shalt.err (!%p2463_p9)  }
 0x363   :  { %s2467_s19 = scalar_lea.vmem %s3619_s22, 16  ;;  %p2472_p11 = scmp.lt.s32.totalorder %s3619_s22, %s3030_s16 }
 0x364   :  { %p2468_p10 = scmp.ne.s32.totalorder %s3619_s22, %s2467_s19  ;;  %p2473_p12 = scmp.lt.s32.totalorder %s3056_s7, %s2467_s19 }
 0x366   :  { %p2474_p13 = por %p2473_p12, %p2472_p11 }
 0x368   :  { %p2475_p0 = pnand %p2474_p13, %p2468_p10 }
 0x36a   :  { %2478 = shalt.err (!%p2475_p0)  }
 0x36b   :  { %707 = dma.hbm_to_vmem [thread:$0]  %s695_s25, 16, %s3619_s22, [#allocation3] }
 0x36c   :  { %s2989_s20 = smov [#allocation2 + $0x2b]   ;;  %s1415_s30 = sld [smem:[#allocation5 + $0x205]] }
 0x36d   :  { %s720_s23 = sshll.u32 %s2989_s20, 4  ;;  %s2990_s18 = smov [#allocation2 + $0x2c]   ;;  %s721_s23 = int_to_ptr.vmem [resolvable:$true] %s720_s23 }
 0x36e   :  { %s736_s27 = sshll.u32 %s2990_s18, 4  ;;  %s3645_s28 = sld [smem:[#allocation5 + $0x285]]  ;;  %s3647_s27 = int_to_ptr.vmem [resolvable:$true] %s736_s27 }
 0x36f   :  { %s1414_s24 = sshll.u32 %s1413_s11, 4 }
 0x370   :  { %s711_s10 = scalar_lea.hbm %s3943_s1, %s1414_s24 }
 0x371   :  { %s2479_s4 = scalar_lea.hbm %s711_s10, 16  ;;  %p2482_p2 = scmp.lt.s32.totalorder %s711_s10, %s3943_s1 }
 0x372   :  { %p2480_p1 = scmp.ne.s32.totalorder %s711_s10, %s2479_s4  ;;  %p2483_p3 = scmp.lt.s32.totalorder %s3047_s3, %s2479_s4 }
 0x374   :  { %p2484_p4 = por %p2483_p3, %p2482_p2 }
 0x376   :  { %p2485_p5 = pnand %p2484_p4, %p2480_p1 }
 0x378   :  { %2488 = shalt.err (!%p2485_p5)  }
 0x379   :  { %s2489_s22 = scalar_lea.vmem %s721_s23, 16  ;;  %p2494_p7 = scmp.lt.s32.totalorder %s721_s23, %s3030_s16 }
 0x37a   :  { %p2490_p6 = scmp.ne.s32.totalorder %s721_s23, %s2489_s22  ;;  %p2495_p8 = scmp.lt.s32.totalorder %s3056_s7, %s2489_s22 }
 0x37c   :  { %p2496_p9 = por %p2495_p8, %p2494_p7 }
 0x37e   :  { %p2497_p10 = pnand %p2496_p9, %p2490_p6 }
 0x380   :  { %2500 = shalt.err (!%p2497_p10)  }
 0x381   :  { %723 = dma.hbm_to_vmem [thread:$0]  %s711_s10, 16, %s721_s23, [#allocation3] }
 0x382   :  { %s1416_s15 = sshll.u32 %s1415_s30, 4  ;;  %s2991_s9 = smov [#allocation2 + $0x2d]  }
 0x383   :  { %s752_s5 = sshll.u32 %s2991_s9, 4  ;;  %s727_s12 = scalar_lea.hbm %s3943_s1, %s1416_s15  ;;  %s3661_s5 = int_to_ptr.vmem [resolvable:$true] %s752_s5 }
 0x384   :  { %s2501_s13 = scalar_lea.hbm %s727_s12, 16  ;;  %p2504_p12 = scmp.lt.s32.totalorder %s727_s12, %s3943_s1 }
 0x385   :  { %p2502_p11 = scmp.ne.s32.totalorder %s727_s12, %s2501_s13  ;;  %p2505_p13 = scmp.lt.s32.totalorder %s3047_s3, %s2501_s13 }
 0x387   :  { %p2506_p0 = por %p2505_p13, %p2504_p12 }
 0x389   :  { %p2507_p1 = pnand %p2506_p0, %p2502_p11 }
 0x38b   :  { %2510 = shalt.err (!%p2507_p1)  }
 0x38c   :  { %s2511_s14 = scalar_lea.vmem %s3647_s27, 16  ;;  %p2516_p3 = scmp.lt.s32.totalorder %s3647_s27, %s3030_s16 }
 0x38d   :  { %p2512_p2 = scmp.ne.s32.totalorder %s3647_s27, %s2511_s14  ;;  %p2517_p4 = scmp.lt.s32.totalorder %s3056_s7, %s2511_s14 }
 0x38f   :  { %p2518_p5 = por %p2517_p4, %p2516_p3 }
 0x391   :  { %p2519_p6 = pnand %p2518_p5, %p2512_p2 }
 0x393   :  { %2522 = shalt.err (!%p2519_p6)  }
 0x394   :  { %739 = dma.hbm_to_vmem [thread:$0]  %s727_s12, 16, %s3647_s27, [#allocation3] }
 0x395   :  { %s1418_s26 = sshll.u32 %s3645_s28, 4  ;;  %s1419_s19 = sld [smem:[#allocation5 + $0x305]] }
 0x396   :  { %s743_s30 = scalar_lea.hbm %s3943_s1, %s1418_s26 }
 0x397   :  { %s2523_s18 = scalar_lea.hbm %s743_s30, 16  ;;  %p2526_p8 = scmp.lt.s32.totalorder %s743_s30, %s3943_s1 }
 0x398   :  { %p2524_p7 = scmp.ne.s32.totalorder %s743_s30, %s2523_s18  ;;  %p2527_p9 = scmp.lt.s32.totalorder %s3047_s3, %s2523_s18 }
 0x39a   :  { %p2528_p10 = por %p2527_p9, %p2526_p8 }
 0x39c   :  { %p2529_p11 = pnand %p2528_p10, %p2524_p7 }
 0x39e   :  { %2532 = shalt.err (!%p2529_p11)  }
 0x39f   :  { %s2533_s27 = scalar_lea.vmem %s3661_s5, 16  ;;  %p2538_p13 = scmp.lt.s32.totalorder %s3661_s5, %s3030_s16 }
 0x3a0   :  { %p2534_p12 = scmp.ne.s32.totalorder %s3661_s5, %s2533_s27  ;;  %p2539_p0 = scmp.lt.s32.totalorder %s3056_s7, %s2533_s27 }
 0x3a2   :  { %p2540_p1 = por %p2539_p0, %p2538_p13 }
 0x3a4   :  { %p2541_p2 = pnand %p2540_p1, %p2534_p12 }
 0x3a6   :  { %2544 = shalt.err (!%p2541_p2)  }
 0x3a7   :  { %755 = dma.hbm_to_vmem [thread:$0]  %s743_s30, 16, %s3661_s5, [#allocation3] }
 0x3a8   :  { %s2992_s28 = smov [#allocation2 + $0x2e]   ;;  %s1421_s10 = sld [smem:[#allocation5 + $0x385]] }
 0x3a9   :  { %s768_s29 = sshll.u32 %s2992_s28, 4  ;;  %s2993_s4 = smov [#allocation2 + $0x2f]   ;;  %s769_s29 = int_to_ptr.vmem [resolvable:$true] %s768_s29 }
 0x3aa   :  { %s784_s8 = sshll.u32 %s2993_s4, 4  ;;  %s3687_s21 = sld [smem:[#allocation5 + $0x6]]  ;;  %s3689_s8 = int_to_ptr.vmem [resolvable:$true] %s784_s8 }
 0x3ab   :  { %s1420_s22 = sshll.u32 %s1419_s19, 4 }
 0x3ac   :  { %s759_s0 = scalar_lea.hbm %s3943_s1, %s1420_s22 }
 0x3ad   :  { %s2545_s11 = scalar_lea.hbm %s759_s0, 16  ;;  %p2548_p4 = scmp.lt.s32.totalorder %s759_s0, %s3943_s1 }
 0x3ae   :  { %p2546_p3 = scmp.ne.s32.totalorder %s759_s0, %s2545_s11  ;;  %p2549_p5 = scmp.lt.s32.totalorder %s3047_s3, %s2545_s11 }
 0x3b0   :  { %p2550_p6 = por %p2549_p5, %p2548_p4 }
 0x3b2   :  { %p2551_p7 = pnand %p2550_p6, %p2546_p3 }
 0x3b4   :  { %2554 = shalt.err (!%p2551_p7)  }
 0x3b5   :  { %s2555_s5 = scalar_lea.vmem %s769_s29, 16  ;;  %p2560_p9 = scmp.lt.s32.totalorder %s769_s29, %s3030_s16 }
 0x3b6   :  { %p2556_p8 = scmp.ne.s32.totalorder %s769_s29, %s2555_s5  ;;  %p2561_p10 = scmp.lt.s32.totalorder %s3056_s7, %s2555_s5 }
 0x3b8   :  { %p2562_p11 = por %p2561_p10, %p2560_p9 }
 0x3ba   :  { %p2563_p12 = pnand %p2562_p11, %p2556_p8 }
 0x3bc   :  { %2566 = shalt.err (!%p2563_p12)  }
 0x3bd   :  { %771 = dma.hbm_to_vmem [thread:$0]  %s759_s0, 16, %s769_s29, [#allocation3] }
 0x3be   :  { %s1422_s25 = sshll.u32 %s1421_s10, 4  ;;  %s2994_s17 = smov [#allocation2 + $0x30]  }
 0x3bf   :  { %s800_s14 = sshll.u32 %s2994_s17, 4  ;;  %s775_s20 = scalar_lea.hbm %s3943_s1, %s1422_s25  ;;  %s3703_s14 = int_to_ptr.vmem [resolvable:$true] %s800_s14 }
 0x3c0   :  { %s2567_s23 = scalar_lea.hbm %s775_s20, 16  ;;  %p2570_p0 = scmp.lt.s32.totalorder %s775_s20, %s3943_s1 }
 0x3c1   :  { %p2568_p13 = scmp.ne.s32.totalorder %s775_s20, %s2567_s23  ;;  %p2571_p1 = scmp.lt.s32.totalorder %s3047_s3, %s2567_s23 }
 0x3c3   :  { %p2572_p2 = por %p2571_p1, %p2570_p0 }
 0x3c5   :  { %p2573_p3 = pnand %p2572_p2, %p2568_p13 }
 0x3c7   :  { %2576 = shalt.err (!%p2573_p3)  }
 0x3c8   :  { %s2577_s24 = scalar_lea.vmem %s3689_s8, 16  ;;  %p2582_p5 = scmp.lt.s32.totalorder %s3689_s8, %s3030_s16 }
 0x3c9   :  { %p2578_p4 = scmp.ne.s32.totalorder %s3689_s8, %s2577_s24  ;;  %p2583_p6 = scmp.lt.s32.totalorder %s3056_s7, %s2577_s24 }
 0x3cb   :  { %p2584_p7 = por %p2583_p6, %p2582_p5 }
 0x3cd   :  { %p2585_p8 = pnand %p2584_p7, %p2578_p4 }
 0x3cf   :  { %2588 = shalt.err (!%p2585_p8)  }
 0x3d0   :  { %787 = dma.hbm_to_vmem [thread:$0]  %s775_s20, 16, %s3689_s8, [#allocation3] }
 0x3d1   :  { %s1424_s6 = sshll.u32 %s3687_s21, 4  ;;  %s1425_s27 = sld [smem:[#allocation5 + $0x86]] }
 0x3d2   :  { %s791_s10 = scalar_lea.hbm %s3943_s1, %s1424_s6 }
 0x3d3   :  { %s2589_s4 = scalar_lea.hbm %s791_s10, 16  ;;  %p2592_p10 = scmp.lt.s32.totalorder %s791_s10, %s3943_s1 }
 0x3d4   :  { %p2590_p9 = scmp.ne.s32.totalorder %s791_s10, %s2589_s4  ;;  %p2593_p11 = scmp.lt.s32.totalorder %s3047_s3, %s2589_s4 }
 0x3d6   :  { %p2594_p12 = por %p2593_p11, %p2592_p10 }
 0x3d8   :  { %p2595_p13 = pnand %p2594_p12, %p2590_p9 }
 0x3da   :  { %2598 = shalt.err (!%p2595_p13)  }
 0x3db   :  { %s2599_s8 = scalar_lea.vmem %s3703_s14, 16  ;;  %p2604_p1 = scmp.lt.s32.totalorder %s3703_s14, %s3030_s16 }
 0x3dc   :  { %p2600_p0 = scmp.ne.s32.totalorder %s3703_s14, %s2599_s8  ;;  %p2605_p2 = scmp.lt.s32.totalorder %s3056_s7, %s2599_s8 }
 0x3de   :  { %p2606_p3 = por %p2605_p2, %p2604_p1 }
 0x3e0   :  { %p2607_p4 = pnand %p2606_p3, %p2600_p0 }
 0x3e2   :  { %2610 = shalt.err (!%p2607_p4)  }
 0x3e3   :  { %803 = dma.hbm_to_vmem [thread:$0]  %s791_s10, 16, %s3703_s14, [#allocation3] }
 0x3e4   :  { %s2995_s21 = smov [#allocation2 + $0x31]   ;;  %s1427_s0 = sld [smem:[#allocation5 + $0x106]] }
 0x3e5   :  { %s816_s9 = sshll.u32 %s2995_s21, 4  ;;  %s2996_s11 = smov [#allocation2 + $0x32]   ;;  %s817_s9 = int_to_ptr.vmem [resolvable:$true] %s816_s9 }
 0x3e6   :  { %s832_s12 = sshll.u32 %s2996_s11, 4  ;;  %s3729_s13 = sld [smem:[#allocation5 + $0x186]]  ;;  %s3731_s12 = int_to_ptr.vmem [resolvable:$true] %s832_s12 }
 0x3e7   :  { %s1426_s5 = sshll.u32 %s1425_s27, 4 }
 0x3e8   :  { %s807_s26 = scalar_lea.hbm %s3943_s1, %s1426_s5 }
 0x3e9   :  { %s2611_s19 = scalar_lea.hbm %s807_s26, 16  ;;  %p2614_p6 = scmp.lt.s32.totalorder %s807_s26, %s3943_s1 }
 0x3ea   :  { %p2612_p5 = scmp.ne.s32.totalorder %s807_s26, %s2611_s19  ;;  %p2615_p7 = scmp.lt.s32.totalorder %s3047_s3, %s2611_s19 }
 0x3ec   :  { %p2616_p8 = por %p2615_p7, %p2614_p6 }
 0x3ee   :  { %p2617_p9 = pnand %p2616_p8, %p2612_p5 }
 0x3f0   :  { %2620 = shalt.err (!%p2617_p9)  }
 0x3f1   :  { %s2621_s14 = scalar_lea.vmem %s817_s9, 16  ;;  %p2626_p11 = scmp.lt.s32.totalorder %s817_s9, %s3030_s16 }
 0x3f2   :  { %p2622_p10 = scmp.ne.s32.totalorder %s817_s9, %s2621_s14  ;;  %p2627_p12 = scmp.lt.s32.totalorder %s3056_s7, %s2621_s14 }
 0x3f4   :  { %p2628_p13 = por %p2627_p12, %p2626_p11 }
 0x3f6   :  { %p2629_p0 = pnand %p2628_p13, %p2622_p10 }
 0x3f8   :  { %2632 = shalt.err (!%p2629_p0)  }
 0x3f9   :  { %819 = dma.hbm_to_vmem [thread:$0]  %s807_s26, 16, %s817_s9, [#allocation3] }
 0x3fa   :  { %s1428_s30 = sshll.u32 %s1427_s0, 4  ;;  %s2997_s18 = smov [#allocation2 + $0x33]  }
 0x3fb   :  { %s848_s24 = sshll.u32 %s2997_s18, 4  ;;  %s823_s28 = scalar_lea.hbm %s3943_s1, %s1428_s30  ;;  %s3745_s24 = int_to_ptr.vmem [resolvable:$true] %s848_s24 }
 0x3fc   :  { %s2633_s29 = scalar_lea.hbm %s823_s28, 16  ;;  %p2636_p2 = scmp.lt.s32.totalorder %s823_s28, %s3943_s1 }
 0x3fd   :  { %p2634_p1 = scmp.ne.s32.totalorder %s823_s28, %s2633_s29  ;;  %p2637_p3 = scmp.lt.s32.totalorder %s3047_s3, %s2633_s29 }
 0x3ff   :  { %p2638_p4 = por %p2637_p3, %p2636_p2 }
 0x401   :  { %p2639_p5 = pnand %p2638_p4, %p2634_p1 }
 0x403   :  { %2642 = shalt.err (!%p2639_p5)  }
 0x404   :  { %s2643_s22 = scalar_lea.vmem %s3731_s12, 16  ;;  %p2648_p7 = scmp.lt.s32.totalorder %s3731_s12, %s3030_s16 }
 0x405   :  { %p2644_p6 = scmp.ne.s32.totalorder %s3731_s12, %s2643_s22  ;;  %p2649_p8 = scmp.lt.s32.totalorder %s3056_s7, %s2643_s22 }
 0x407   :  { %p2650_p9 = por %p2649_p8, %p2648_p7 }
 0x409   :  { %p2651_p10 = pnand %p2650_p9, %p2644_p6 }
 0x40b   :  { %2654 = shalt.err (!%p2651_p10)  }
 0x40c   :  { %835 = dma.hbm_to_vmem [thread:$0]  %s823_s28, 16, %s3731_s12, [#allocation3] }
 0x40d   :  { %s1430_s15 = sshll.u32 %s3729_s13, 4  ;;  %s1431_s8 = sld [smem:[#allocation5 + $0x206]] }
 0x40e   :  { %s839_s0 = scalar_lea.hbm %s3943_s1, %s1430_s15 }
 0x40f   :  { %s2655_s11 = scalar_lea.hbm %s839_s0, 16  ;;  %p2658_p12 = scmp.lt.s32.totalorder %s839_s0, %s3943_s1 }
 0x410   :  { %p2656_p11 = scmp.ne.s32.totalorder %s839_s0, %s2655_s11  ;;  %p2659_p13 = scmp.lt.s32.totalorder %s3047_s3, %s2655_s11 }
 0x412   :  { %p2660_p0 = por %p2659_p13, %p2658_p12 }
 0x414   :  { %p2661_p1 = pnand %p2660_p0, %p2656_p11 }
 0x416   :  { %2664 = shalt.err (!%p2661_p1)  }
 0x417   :  { %s2665_s12 = scalar_lea.vmem %s3745_s24, 16  ;;  %p2670_p3 = scmp.lt.s32.totalorder %s3745_s24, %s3030_s16 }
 0x418   :  { %p2666_p2 = scmp.ne.s32.totalorder %s3745_s24, %s2665_s12  ;;  %p2671_p4 = scmp.lt.s32.totalorder %s3056_s7, %s2665_s12 }
 0x41a   :  { %p2672_p5 = por %p2671_p4, %p2670_p3 }
 0x41c   :  { %p2673_p6 = pnand %p2672_p5, %p2666_p2 }
 0x41e   :  { %2676 = shalt.err (!%p2673_p6)  }
 0x41f   :  { %851 = dma.hbm_to_vmem [thread:$0]  %s839_s0, 16, %s3745_s24, [#allocation3] }
 0x420   :  { %s2998_s13 = smov [#allocation2 + $0x34]   ;;  %s1433_s26 = sld [smem:[#allocation5 + $0x286]] }
 0x421   :  { %s864_s17 = sshll.u32 %s2998_s13, 4  ;;  %s2999_s19 = smov [#allocation2 + $0x35]   ;;  %s865_s17 = int_to_ptr.vmem [resolvable:$true] %s864_s17 }
 0x422   :  { %s880_s20 = sshll.u32 %s2999_s19, 4  ;;  %s3771_s23 = sld [smem:[#allocation5 + $0x306]]  ;;  %s3773_s20 = int_to_ptr.vmem [resolvable:$true] %s880_s20 }
 0x423   :  { %s1432_s14 = sshll.u32 %s1431_s8, 4 }
 0x424   :  { %s855_s6 = scalar_lea.hbm %s3943_s1, %s1432_s14 }
 0x425   :  { %s2677_s27 = scalar_lea.hbm %s855_s6, 16  ;;  %p2680_p8 = scmp.lt.s32.totalorder %s855_s6, %s3943_s1 }
 0x426   :  { %p2678_p7 = scmp.ne.s32.totalorder %s855_s6, %s2677_s27  ;;  %p2681_p9 = scmp.lt.s32.totalorder %s3047_s3, %s2677_s27 }
 0x428   :  { %p2682_p10 = por %p2681_p9, %p2680_p8 }
 0x42a   :  { %p2683_p11 = pnand %p2682_p10, %p2678_p7 }
 0x42c   :  { %2686 = shalt.err (!%p2683_p11)  }
 0x42d   :  { %s2687_s24 = scalar_lea.vmem %s865_s17, 16  ;;  %p2692_p13 = scmp.lt.s32.totalorder %s865_s17, %s3030_s16 }
 0x42e   :  { %p2688_p12 = scmp.ne.s32.totalorder %s865_s17, %s2687_s24  ;;  %p2693_p0 = scmp.lt.s32.totalorder %s3056_s7, %s2687_s24 }
 0x430   :  { %p2694_p1 = por %p2693_p0, %p2692_p13 }
 0x432   :  { %p2695_p2 = pnand %p2694_p1, %p2688_p12 }
 0x434   :  { %2698 = shalt.err (!%p2695_p2)  }
 0x435   :  { %867 = dma.hbm_to_vmem [thread:$0]  %s855_s6, 16, %s865_s17, [#allocation3] }
 0x436   :  { %s1434_s10 = sshll.u32 %s1433_s26, 4  ;;  %s3000_s4 = smov [#allocation2 + $0x36]  }
 0x437   :  { %s896_s22 = sshll.u32 %s3000_s4, 4  ;;  %s871_s21 = scalar_lea.hbm %s3943_s1, %s1434_s10  ;;  %s3787_s22 = int_to_ptr.vmem [resolvable:$true] %s896_s22 }
 0x438   :  { %s2699_s9 = scalar_lea.hbm %s871_s21, 16  ;;  %p2702_p4 = scmp.lt.s32.totalorder %s871_s21, %s3943_s1 }
 0x439   :  { %p2700_p3 = scmp.ne.s32.totalorder %s871_s21, %s2699_s9  ;;  %p2703_p5 = scmp.lt.s32.totalorder %s3047_s3, %s2699_s9 }
 0x43b   :  { %p2704_p6 = por %p2703_p5, %p2702_p4 }
 0x43d   :  { %p2705_p7 = pnand %p2704_p6, %p2700_p3 }
 0x43f   :  { %2708 = shalt.err (!%p2705_p7)  }
 0x440   :  { %s2709_s5 = scalar_lea.vmem %s3773_s20, 16  ;;  %p2714_p9 = scmp.lt.s32.totalorder %s3773_s20, %s3030_s16 }
 0x441   :  { %p2710_p8 = scmp.ne.s32.totalorder %s3773_s20, %s2709_s5  ;;  %p2715_p10 = scmp.lt.s32.totalorder %s3056_s7, %s2709_s5 }
 0x443   :  { %p2716_p11 = por %p2715_p10, %p2714_p9 }
 0x445   :  { %p2717_p12 = pnand %p2716_p11, %p2710_p8 }
 0x447   :  { %2720 = shalt.err (!%p2717_p12)  }
 0x448   :  { %883 = dma.hbm_to_vmem [thread:$0]  %s871_s21, 16, %s3773_s20, [#allocation3] }
 0x449   :  { %s1436_s25 = sshll.u32 %s3771_s23, 4  ;;  %s1437_s12 = sld [smem:[#allocation5 + $0x386]] }
 0x44a   :  { %s887_s26 = scalar_lea.hbm %s3943_s1, %s1436_s25 }
 0x44b   :  { %s2721_s19 = scalar_lea.hbm %s887_s26, 16  ;;  %p2724_p0 = scmp.lt.s32.totalorder %s887_s26, %s3943_s1 }
 0x44c   :  { %p2722_p13 = scmp.ne.s32.totalorder %s887_s26, %s2721_s19  ;;  %p2725_p1 = scmp.lt.s32.totalorder %s3047_s3, %s2721_s19 }
 0x44e   :  { %p2726_p2 = por %p2725_p1, %p2724_p0 }
 0x450   :  { %p2727_p3 = pnand %p2726_p2, %p2722_p13 }
 0x452   :  { %2730 = shalt.err (!%p2727_p3)  }
 0x453   :  { %s2731_s20 = scalar_lea.vmem %s3787_s22, 16  ;;  %p2736_p5 = scmp.lt.s32.totalorder %s3787_s22, %s3030_s16 }
 0x454   :  { %p2732_p4 = scmp.ne.s32.totalorder %s3787_s22, %s2731_s20  ;;  %p2737_p6 = scmp.lt.s32.totalorder %s3056_s7, %s2731_s20 }
 0x456   :  { %p2738_p7 = por %p2737_p6, %p2736_p5 }
 0x458   :  { %p2739_p8 = pnand %p2738_p7, %p2732_p4 }
 0x45a   :  { %2742 = shalt.err (!%p2739_p8)  }
 0x45b   :  { %899 = dma.hbm_to_vmem [thread:$0]  %s887_s26, 16, %s3787_s22, [#allocation3] }
 0x45c   :  { %s3001_s23 = smov [#allocation2 + $0x37]   ;;  %s1439_s6 = sld [smem:[#allocation5 + $0x7]] }
 0x45d   :  { %s912_s18 = sshll.u32 %s3001_s23, 4  ;;  %s3002_s27 = smov [#allocation2 + $0x38]   ;;  %s913_s18 = int_to_ptr.vmem [resolvable:$true] %s912_s18 }
 0x45e   :  { %s928_s28 = sshll.u32 %s3002_s27, 4  ;;  %s3813_s29 = sld [smem:[#allocation5 + $0x87]]  ;;  %s3815_s28 = int_to_ptr.vmem [resolvable:$true] %s928_s28 }
 0x45f   :  { %s1438_s24 = sshll.u32 %s1437_s12, 4 }
 0x460   :  { %s903_s15 = scalar_lea.hbm %s3943_s1, %s1438_s24 }
 0x461   :  { %s2743_s8 = scalar_lea.hbm %s903_s15, 16  ;;  %p2746_p10 = scmp.lt.s32.totalorder %s903_s15, %s3943_s1 }
 0x462   :  { %p2744_p9 = scmp.ne.s32.totalorder %s903_s15, %s2743_s8  ;;  %p2747_p11 = scmp.lt.s32.totalorder %s3047_s3, %s2743_s8 }
 0x464   :  { %p2748_p12 = por %p2747_p11, %p2746_p10 }
 0x466   :  { %p2749_p13 = pnand %p2748_p12, %p2744_p9 }
 0x468   :  { %2752 = shalt.err (!%p2749_p13)  }
 0x469   :  { %s2753_s22 = scalar_lea.vmem %s913_s18, 16  ;;  %p2758_p1 = scmp.lt.s32.totalorder %s913_s18, %s3030_s16 }
 0x46a   :  { %p2754_p0 = scmp.ne.s32.totalorder %s913_s18, %s2753_s22  ;;  %p2759_p2 = scmp.lt.s32.totalorder %s3056_s7, %s2753_s22 }
 0x46c   :  { %p2760_p3 = por %p2759_p2, %p2758_p1 }
 0x46e   :  { %p2761_p4 = pnand %p2760_p3, %p2754_p0 }
 0x470   :  { %2764 = shalt.err (!%p2761_p4)  }
 0x471   :  { %915 = dma.hbm_to_vmem [thread:$0]  %s903_s15, 16, %s913_s18, [#allocation3] }
 0x472   :  { %s1440_s0 = sshll.u32 %s1439_s6, 4  ;;  %s3003_s11 = smov [#allocation2 + $0x39]  }
 0x473   :  { %s944_s5 = sshll.u32 %s3003_s11, 4  ;;  %s919_s13 = scalar_lea.hbm %s3943_s1, %s1440_s0  ;;  %s3829_s5 = int_to_ptr.vmem [resolvable:$true] %s944_s5 }
 0x474   :  { %s2765_s17 = scalar_lea.hbm %s919_s13, 16  ;;  %p2768_p6 = scmp.lt.s32.totalorder %s919_s13, %s3943_s1 }
 0x475   :  { %p2766_p5 = scmp.ne.s32.totalorder %s919_s13, %s2765_s17  ;;  %p2769_p7 = scmp.lt.s32.totalorder %s3047_s3, %s2765_s17 }
 0x477   :  { %p2770_p8 = por %p2769_p7, %p2768_p6 }
 0x479   :  { %p2771_p9 = pnand %p2770_p8, %p2766_p5 }
 0x47b   :  { %2774 = shalt.err (!%p2771_p9)  }
 0x47c   :  { %s2775_s14 = scalar_lea.vmem %s3815_s28, 16  ;;  %p2780_p11 = scmp.lt.s32.totalorder %s3815_s28, %s3030_s16 }
 0x47d   :  { %p2776_p10 = scmp.ne.s32.totalorder %s3815_s28, %s2775_s14  ;;  %p2781_p12 = scmp.lt.s32.totalorder %s3056_s7, %s2775_s14 }
 0x47f   :  { %p2782_p13 = por %p2781_p12, %p2780_p11 }
 0x481   :  { %p2783_p0 = pnand %p2782_p13, %p2776_p10 }
 0x483   :  { %2786 = shalt.err (!%p2783_p0)  }
 0x484   :  { %931 = dma.hbm_to_vmem [thread:$0]  %s919_s13, 16, %s3815_s28, [#allocation3] }
 0x485   :  { %s1442_s30 = sshll.u32 %s3813_s29, 4  ;;  %s1443_s20 = sld [smem:[#allocation5 + $0x107]] }
 0x486   :  { %s935_s6 = scalar_lea.hbm %s3943_s1, %s1442_s30 }
 0x487   :  { %s2787_s27 = scalar_lea.hbm %s935_s6, 16  ;;  %p2790_p2 = scmp.lt.s32.totalorder %s935_s6, %s3943_s1 }
 0x488   :  { %p2788_p1 = scmp.ne.s32.totalorder %s935_s6, %s2787_s27  ;;  %p2791_p3 = scmp.lt.s32.totalorder %s3047_s3, %s2787_s27 }
 0x48a   :  { %p2792_p4 = por %p2791_p3, %p2790_p2 }
 0x48c   :  { %p2793_p5 = pnand %p2792_p4, %p2788_p1 }
 0x48e   :  { %2796 = shalt.err (!%p2793_p5)  }
 0x48f   :  { %s2797_s28 = scalar_lea.vmem %s3829_s5, 16  ;;  %p2802_p7 = scmp.lt.s32.totalorder %s3829_s5, %s3030_s16 }
 0x490   :  { %p2798_p6 = scmp.ne.s32.totalorder %s3829_s5, %s2797_s28  ;;  %p2803_p8 = scmp.lt.s32.totalorder %s3056_s7, %s2797_s28 }
 0x492   :  { %p2804_p9 = por %p2803_p8, %p2802_p7 }
 0x494   :  { %p2805_p10 = pnand %p2804_p9, %p2798_p6 }
 0x496   :  { %2808 = shalt.err (!%p2805_p10)  }
 0x497   :  { %947 = dma.hbm_to_vmem [thread:$0]  %s935_s6, 16, %s3829_s5, [#allocation3] }
 0x498   :  { %s3004_s29 = smov [#allocation2 + $0x3a]   ;;  %s1445_s15 = sld [smem:[#allocation5 + $0x187]] }
 0x499   :  { %s960_s4 = sshll.u32 %s3004_s29, 4  ;;  %s3005_s8 = smov [#allocation2 + $0x3b]   ;;  %s961_s4 = int_to_ptr.vmem [resolvable:$true] %s960_s4 }
 0x49a   :  { %s976_s21 = sshll.u32 %s3005_s8, 4  ;;  %s3855_s9 = sld [smem:[#allocation5 + $0x207]]  ;;  %s3857_s21 = int_to_ptr.vmem [resolvable:$true] %s976_s21 }
 0x49b   :  { %s1444_s22 = sshll.u32 %s1443_s20, 4 }
 0x49c   :  { %s951_s25 = scalar_lea.hbm %s3943_s1, %s1444_s22 }
 0x49d   :  { %s2809_s12 = scalar_lea.hbm %s951_s25, 16  ;;  %p2812_p12 = scmp.lt.s32.totalorder %s951_s25, %s3943_s1 }
 0x49e   :  { %p2810_p11 = scmp.ne.s32.totalorder %s951_s25, %s2809_s12  ;;  %p2813_p13 = scmp.lt.s32.totalorder %s3047_s3, %s2809_s12 }
 0x4a0   :  { %p2814_p0 = por %p2813_p13, %p2812_p12 }
 0x4a2   :  { %p2815_p1 = pnand %p2814_p0, %p2810_p11 }
 0x4a4   :  { %2818 = shalt.err (!%p2815_p1)  }
 0x4a5   :  { %s2819_s5 = scalar_lea.vmem %s961_s4, 16  ;;  %p2824_p3 = scmp.lt.s32.totalorder %s961_s4, %s3030_s16 }
 0x4a6   :  { %p2820_p2 = scmp.ne.s32.totalorder %s961_s4, %s2819_s5  ;;  %p2825_p4 = scmp.lt.s32.totalorder %s3056_s7, %s2819_s5 }
 0x4a8   :  { %p2826_p5 = por %p2825_p4, %p2824_p3 }
 0x4aa   :  { %p2827_p6 = pnand %p2826_p5, %p2820_p2 }
 0x4ac   :  { %2830 = shalt.err (!%p2827_p6)  }
 0x4ad   :  { %963 = dma.hbm_to_vmem [thread:$0]  %s951_s25, 16, %s961_s4, [#allocation3] }
 0x4ae   :  { %s1446_s26 = sshll.u32 %s1445_s15, 4  ;;  %s3006_s19 = smov [#allocation2 + $0x3c]  }
 0x4af   :  { %s992_s14 = sshll.u32 %s3006_s19, 4  ;;  %s967_s23 = scalar_lea.hbm %s3943_s1, %s1446_s26  ;;  %s3871_s14 = int_to_ptr.vmem [resolvable:$true] %s992_s14 }
 0x4b0   :  { %s2831_s18 = scalar_lea.hbm %s967_s23, 16  ;;  %p2834_p8 = scmp.lt.s32.totalorder %s967_s23, %s3943_s1 }
 0x4b1   :  { %p2832_p7 = scmp.ne.s32.totalorder %s967_s23, %s2831_s18  ;;  %p2835_p9 = scmp.lt.s32.totalorder %s3047_s3, %s2831_s18 }
 0x4b3   :  { %p2836_p10 = por %p2835_p9, %p2834_p8 }
 0x4b5   :  { %p2837_p11 = pnand %p2836_p10, %p2832_p7 }
 0x4b7   :  { %2840 = shalt.err (!%p2837_p11)  }
 0x4b8   :  { %s2841_s24 = scalar_lea.vmem %s3857_s21, 16  ;;  %p2846_p13 = scmp.lt.s32.totalorder %s3857_s21, %s3030_s16 }
 0x4b9   :  { %p2842_p12 = scmp.ne.s32.totalorder %s3857_s21, %s2841_s24  ;;  %p2847_p0 = scmp.lt.s32.totalorder %s3056_s7, %s2841_s24 }
 0x4bb   :  { %p2848_p1 = por %p2847_p0, %p2846_p13 }
 0x4bd   :  { %p2849_p2 = pnand %p2848_p1, %p2842_p12 }
 0x4bf   :  { %2852 = shalt.err (!%p2849_p2)  }
 0x4c0   :  { %979 = dma.hbm_to_vmem [thread:$0]  %s967_s23, 16, %s3857_s21, [#allocation3] }
 0x4c1   :  { %s1448_s10 = sshll.u32 %s3855_s9, 4  ;;  %s1449_s28 = sld [smem:[#allocation5 + $0x287]] }
 0x4c2   :  { %s983_s15 = scalar_lea.hbm %s3943_s1, %s1448_s10 }
 0x4c3   :  { %s2853_s8 = scalar_lea.hbm %s983_s15, 16  ;;  %p2856_p4 = scmp.lt.s32.totalorder %s983_s15, %s3943_s1 }
 0x4c4   :  { %p2854_p3 = scmp.ne.s32.totalorder %s983_s15, %s2853_s8  ;;  %p2857_p5 = scmp.lt.s32.totalorder %s3047_s3, %s2853_s8 }
 0x4c6   :  { %p2858_p6 = por %p2857_p5, %p2856_p4 }
 0x4c8   :  { %p2859_p7 = pnand %p2858_p6, %p2854_p3 }
 0x4ca   :  { %2862 = shalt.err (!%p2859_p7)  }
 0x4cb   :  { %s2863_s21 = scalar_lea.vmem %s3871_s14, 16  ;;  %p2868_p9 = scmp.lt.s32.totalorder %s3871_s14, %s3030_s16 }
 0x4cc   :  { %p2864_p8 = scmp.ne.s32.totalorder %s3871_s14, %s2863_s21  ;;  %p2869_p10 = scmp.lt.s32.totalorder %s3056_s7, %s2863_s21 }
 0x4ce   :  { %p2870_p11 = por %p2869_p10, %p2868_p9 }
 0x4d0   :  { %p2871_p12 = pnand %p2870_p11, %p2864_p8 }
 0x4d2   :  { %2874 = shalt.err (!%p2871_p12)  }
 0x4d3   :  { %995 = dma.hbm_to_vmem [thread:$0]  %s983_s15, 16, %s3871_s14, [#allocation3] }
 0x4d4   :  { %s3007_s9 = smov [#allocation2 + $0x3d]   ;;  %s1451_s25 = sld [smem:[#allocation5 + $0x307]] }
 0x4d5   :  { %s1008_s11 = sshll.u32 %s3007_s9, 4  ;;  %s3008_s12 = smov [#allocation2 + $0x3e]   ;;  %s1009_s11 = int_to_ptr.vmem [resolvable:$true] %s1008_s11 }
 0x4d6   :  { %s1024_s13 = sshll.u32 %s3008_s12, 4  ;;  %s3897_s17 = sld [smem:[#allocation5 + $0x387]]  ;;  %s3899_s13 = int_to_ptr.vmem [resolvable:$true] %s1024_s13 }
 0x4d7   :  { %s1450_s5 = sshll.u32 %s1449_s28, 4 }
 0x4d8   :  { %s999_s30 = scalar_lea.hbm %s3943_s1, %s1450_s5 }
 0x4d9   :  { %s2875_s20 = scalar_lea.hbm %s999_s30, 16  ;;  %p2878_p0 = scmp.lt.s32.totalorder %s999_s30, %s3943_s1 }
 0x4da   :  { %p2876_p13 = scmp.ne.s32.totalorder %s999_s30, %s2875_s20  ;;  %p2879_p1 = scmp.lt.s32.totalorder %s3047_s3, %s2875_s20 }
 0x4dc   :  { %p2880_p2 = por %p2879_p1, %p2878_p0 }
 0x4de   :  { %p2881_p3 = pnand %p2880_p2, %p2876_p13 }
 0x4e0   :  { %2884 = shalt.err (!%p2881_p3)  }
 0x4e1   :  { %s2885_s14 = scalar_lea.vmem %s1009_s11, 16  ;;  %p2890_p5 = scmp.lt.s32.totalorder %s1009_s11, %s3030_s16 }
 0x4e2   :  { %p2886_p4 = scmp.ne.s32.totalorder %s1009_s11, %s2885_s14  ;;  %p2891_p6 = scmp.lt.s32.totalorder %s3056_s7, %s2885_s14 }
 0x4e4   :  { %p2892_p7 = por %p2891_p6, %p2890_p5 }
 0x4e6   :  { %p2893_p8 = pnand %p2892_p7, %p2886_p4 }
 0x4e8   :  { %2896 = shalt.err (!%p2893_p8)  }
 0x4e9   :  { %1011 = dma.hbm_to_vmem [thread:$0]  %s999_s30, 16, %s1009_s11, [#allocation3] }
 0x4ea   :  { %s1452_s6 = sshll.u32 %s1451_s25, 4  ;;  %s3009_s27 = smov [#allocation2 + $0x3f]  }
 0x4eb   :  { %s1040_s24 = sshll.u32 %s3009_s27, 4  ;;  %s1015_s29 = scalar_lea.hbm %s3943_s1, %s1452_s6  ;;  %s3913_s24 = int_to_ptr.vmem [resolvable:$true] %s1040_s24 }
 0x4ec   :  { %s2897_s4 = scalar_lea.hbm %s1015_s29, 16  ;;  %p2900_p10 = scmp.lt.s32.totalorder %s1015_s29, %s3943_s1 }
 0x4ed   :  { %p2898_p9 = scmp.ne.s32.totalorder %s1015_s29, %s2897_s4  ;;  %p2901_p11 = scmp.lt.s32.totalorder %s3047_s3, %s2897_s4 }
 0x4ef   :  { %p2902_p12 = por %p2901_p11, %p2900_p10 }
 0x4f1   :  { %p2903_p13 = pnand %p2902_p12, %p2898_p9 }
 0x4f3   :  { %2906 = shalt.err (!%p2903_p13)  }
 0x4f4   :  { %s2907_s22 = scalar_lea.vmem %s3899_s13, 16  ;;  %p2912_p1 = scmp.lt.s32.totalorder %s3899_s13, %s3030_s16 }
 0x4f5   :  { %p2908_p0 = scmp.ne.s32.totalorder %s3899_s13, %s2907_s22  ;;  %p2913_p2 = scmp.lt.s32.totalorder %s3056_s7, %s2907_s22 }
 0x4f7   :  { %p2914_p3 = por %p2913_p2, %p2912_p1 }
 0x4f9   :  { %p2915_p4 = pnand %p2914_p3, %p2908_p0 }
 0x4fb   :  { %2918 = shalt.err (!%p2915_p4)  }
 0x4fc   :  { %1027 = dma.hbm_to_vmem [thread:$0]  %s1015_s29, 16, %s3899_s13, [#allocation3] }
 0x4fd   :  { %s1454_s0 = sshll.u32 %s3897_s17, 4 }
 0x4fe   :  { %s1031_s11 = scalar_lea.hbm %s3943_s1, %s1454_s0 }
 0x4ff   :  { %s2919_s25 = scalar_lea.hbm %s1031_s11, 16  ;;  %p2922_p6 = scmp.lt.s32.totalorder %s1031_s11, %s3943_s1 }
 0x500   :  { %p2920_p5 = scmp.ne.s32.totalorder %s1031_s11, %s2919_s25  ;;  %p2923_p7 = scmp.lt.s32.totalorder %s3047_s3, %s2919_s25 }
 0x502   :  { %p2924_p8 = por %p2923_p7, %p2922_p6 }
 0x504   :  { %p2925_p9 = pnand %p2924_p8, %p2920_p5 }
 0x506   :  { %2928 = shalt.err (!%p2925_p9)  }
 0x507   :  { %s2929_s13 = scalar_lea.vmem %s3913_s24, 16  ;;  %p2934_p11 = scmp.lt.s32.totalorder %s3913_s24, %s3030_s16 }
 0x508   :  { %p2930_p10 = scmp.ne.s32.totalorder %s3913_s24, %s2929_s13  ;;  %p2935_p12 = scmp.lt.s32.totalorder %s3056_s7, %s2929_s13 }
 0x50a   :  { %p2936_p13 = por %p2935_p12, %p2934_p11 }
 0x50c   :  { %p2937_p0 = pnand %p2936_p13, %p2930_p10 }
 0x50e   :  { %2940 = shalt.err (!%p2937_p0)  }
 0x50f   :  { %1043 = dma.hbm_to_vmem [thread:$0]  %s1031_s11, 16, %s3913_s24, [#allocation3] }
 0x510   :  { %2943 = dma.done.wait [#allocation3], 1024 }
 0x511   :  { %2944 = vsyncadd [#allocation3], 4294966272  ;;  %v1173_v0 = vld [vmem:[#allocation2] sm:$0xff]  ;;  %v1174_v1 = vld [vmem:[#allocation2 + $0x8] sm:$0xff] }
 0x512   :  { %v1176_v2 = vld [vmem:[#allocation2 + $0x10] sm:$0xff]  ;;  %v1175_v3 = vadd.f32 %v1174_v1, %v1173_v0  ;;  %v1178_v4 = vld [vmem:[#allocation2 + $0x18] sm:$0xff]  ;;  %v1180_v6 = vld [vmem:[#allocation2 + $0x20] sm:$0xff] }
 0x513   :  { %v1182_v8 = vld [vmem:[#allocation2 + $0x28] sm:$0xff]  ;;  %v1184_v10 = vld [vmem:[#allocation2 + $0x30] sm:$0xff]  ;;  %v1186_v12 = vld [vmem:[#allocation2 + $0x38] sm:$0xff] }
 0x514   :  { %v1177_v5 = vadd.f32 %v1176_v2, %v1175_v3 }
 0x516   :  { %v1179_v7 = vadd.f32 %v1178_v4, %v1177_v5 }
 0x518   :  { %v1181_v9 = vadd.f32 %v1180_v6, %v1179_v7 }
 0x51a   :  { %v1183_v11 = vadd.f32 %v1182_v8, %v1181_v9 }
 0x51c   :  { %v1185_v13 = vadd.f32 %v1184_v10, %v1183_v11 }
 0x51e   :  { %v1187_v14 = vadd.f32 %v1186_v12, %v1185_v13 }
 0x520   :  { %v1188_v15 = vmul.f32 0.125, %v1187_v14 }
 0x522   :  { %1189 = vst [vmem:[%s3944_s2] sm:$0xff] %v1188_v15 }
 0x523   :  { %1194 = vsyncmov [#allocation3] }
 0x526   :  { %s1195_s3 = vpop.sfrf %1194 }
 0x527   :  { %p1455_p1 = scmp.ne.s32.totalorder %s1195_s3, 0 }
 0x529   :  { %1199 = shalt.err (%p1455_p1)  }

</bundles_post_ra>
